<compile_context>
chip_gen: v6e
topology: v6e:2x2x1
jax: 0.10.0
libtpu: 0.0.40
codegen_flags: <defaults>
</compile_context>

<pallas_src>
import jax
import jax.numpy as jnp
from jax import lax
from jax.experimental import pallas as pl
from jax.experimental.pallas import tpu as pltpu


# ------------------------------ fused forward kernel ------------------------------
def _make_fused_kernel(num_layers, T, Tp, B, H):
    G = 4 * H
    f32 = jnp.float32
    bf16 = jnp.bfloat16

    def kernel(x_ref, *refs):
        # refs = [wih_0, whh_0, b_0, ..., wih_{L-1}, whh_{L-1}, b_{L-1},
        #         b1, b2, w1_hbm, w2_hbm,              (inputs)
        #         o_ref,                               (output)
        #         w1_vmem, w2_vmem, dma_sem, y_ref]    (scratch)
        layer_refs = [refs[3 * l: 3 * l + 3] for l in range(num_layers)]
        (b1_ref, b2_ref, w1_hbm, w2_hbm,
         o_ref, w1_vmem, w2_vmem, dma_sem, y_ref) = refs[3 * num_layers:]
        H1 = w1_vmem.shape[-1]

        # Kick off the big MLP-head weight fetch (HBM -> VMEM) immediately so
        # it overlaps the serial LSTM recurrence below (manual double-buffer
        # style P4 pattern, single-shot).
        cp_w1 = pltpu.make_async_copy(w1_hbm, w1_vmem, dma_sem.at[0])
        cp_w2 = pltpu.make_async_copy(w2_hbm, w2_vmem, dma_sem.at[1])
        cp_w1.start()
        cp_w2.start()

        # Hoist all weight loads and bias broadcasts out of the loops
        # (broadcast_in_dim is not CSE'd across iterations).
        w_ih = [lr[0][...] for lr in layer_refs]                      # bf16
        w_hh = [lr[1][...] for lr in layer_refs]                      # bf16
        b_bc = [jnp.broadcast_to(lr[2][...], (B, G)) for lr in layer_refs]  # f32

        # Padded rows T..Tp-1 of the hidden-state scratch feed padded (sliced
        # off) output rows; keep them finite.
        y_ref[...] = jnp.zeros((Tp, B, H), f32)

        # Layer-0 input projection: ONE bf16 matmul over the whole (T*B, Din)
        # block (no recurrence dependence), sliced per time step afterwards.
        g0 = jnp.dot(x_ref[...], w_ih[0], preferred_element_type=f32)
        gx = [[g0[t * B:(t + 1) * B, :] + b_bc[0] for t in range(T)]]
        gx += [[None] * T for _ in range(num_layers - 1)]

        # ---------------- LSTM stack, fully unrolled (T static & tiny) ----------------
        for l in range(num_layers):
            h_bf = jnp.zeros((B, H), bf16)
            c = jnp.zeros((B, H), f32)
            for t in range(T):
                # serial chain of the recurrence: only one bf16 h @ W_hh per step
                gates = gx[l][t] + jnp.dot(h_bf, w_hh[l],
                                           preferred_element_type=f32)   # (B, 4H) f32
                # ONE EUP pass over the full 4H gate vreg; g-gate columns were
                # pre-scaled by 2 on the host, so tanh(g) = 2*sigmoid(2g) - 1.
                sig = jax.nn.sigmoid(gates)
                i_g = sig[:, 0 * H:1 * H]
                f_g = sig[:, 1 * H:2 * H]
                g_g = 2.0 * sig[:, 2 * H:3 * H] - 1.0
                o_g = sig[:, 3 * H:4 * H]
                c = f_g * c + i_g * g_g
                h = o_g * jnp.tanh(c)          # only H lanes wide
                h_bf = h.astype(bf16)
                if l + 1 < num_layers:
                    # Next layer's input projection: hoisted out of *its*
                    # recurrence, overlapped with this layer's remaining steps.
                    gx[l + 1][t] = b_bc[l + 1] + jnp.dot(
                        h_bf, w_ih[l + 1], preferred_element_type=f32)
                else:
                    y_ref[t] = h               # final hidden states -> VMEM scratch

        # -------- MLP head:  relu(Y.reshape(Tp, B*H) @ W1 + b1) @ W2 + b2 --------
        # Only now do we need the big weights -> wait for the overlapped DMA.
        cp_w1.wait()
        cp_w2.wait()
        # The flatten is expressed as a sum over the length axis (no in-kernel
        # relayout); W1 arrives pre-reshaped as (B, H, 1024) in bf16.
        acc = jnp.zeros((Tp, H1), f32)
        for b in range(B):
            acc = acc + jnp.dot(y_ref[:, b, :].astype(bf16), w1_vmem[b],
                                preferred_element_type=f32)
        h1 = jnp.maximum(acc + b1_ref[...], 0.0)
        # TODO(synk): nn.Dropout is identity at inference (eval mode); omitted.
        o_ref[...] = (jnp.dot(h1.astype(bf16), w2_vmem[...],
                              preferred_element_type=f32) + b2_ref[...])

    return kernel


# ------------------------------ Python wrapper ------------------------------
def peptide_lstm_forward(x, lstm_params, fc_params):
    """x: (batch, length, input_dim) -- fed to the LSTM exactly as in the
    PyTorch module (time axis = batch, LSTM batch = length)."""
    T, B, Din = x.shape
    H = lstm_params[0][1].shape[0]
    num_layers = len(lstm_params)
    w1_t, b1, w2_t, b2 = fc_params
    F, H1 = w1_t.shape
    Out = w2_t.shape[1]
    assert F == B * H
    Tp = ((T + 7) // 8) * 8          # pad output rows to a sublane multiple

    # tanh(x) = 2*sigmoid(2x) - 1: pre-scale the g-gate columns by 2 so the
    # kernel needs a single sigmoid pass per step (scaling by 2 is exact).
    def scale_g(w):
        return w.at[..., 2 * H:3 * H].multiply(2.0)

    # Layout plumbing (free XLA-level ops): flatten (T,B,Din)->(T*B,Din),
    # reshape W1 -> (B,H,1024); everything that hits the MXU is cast to bf16
    # (f32 accumulate inside the kernel).
    x_flat = x.reshape(T * B, Din).astype(jnp.bfloat16)
    layer_args = []
    for (wih_t, whh_t, bb) in lstm_params:
        layer_args += [scale_g(wih_t).astype(jnp.bfloat16),
                       scale_g(whh_t).astype(jnp.bfloat16),
                       scale_g(bb)]                       # bias stays f32
    w1_3d = w1_t.reshape(B, H, H1).astype(jnp.bfloat16)
    w2_bf = w2_t.astype(jnp.bfloat16)

    args = [x_flat] + layer_args + [b1, b2, w1_3d, w2_bf]

    num_vmem_inputs = 1 + 3 * num_layers + 2
    in_specs = ([pl.BlockSpec(memory_space=pltpu.MemorySpace.VMEM)] * num_vmem_inputs
                + [pl.BlockSpec(memory_space=pl.ANY)] * 2)   # W1 / W2 stay in HBM

    # Advisory cost hint for XLA scheduling.
    flops = 2 * T * B * Din * 4 * H                        # layer-0 input proj
    flops += 2 * (num_layers - 1) * T * B * H * 4 * H      # deeper input projs
    flops += 2 * num_layers * T * B * H * 4 * H            # recurrent matmuls
    flops += 2 * Tp * F * H1 + 2 * Tp * H1 * Out           # MLP head
    transcendentals = num_layers * T * (B * 4 * H + B * H)
    bytes_accessed = 2 * (int(x_flat.size) + int(w1_3d.size) + int(w2_bf.size))
    bytes_accessed += 4 * (Tp * Out + int(b1.size) + int(b2.size))
    bytes_accessed += 2 * sum(int(p[0].size) + int(p[1].size) for p in lstm_params)
    bytes_accessed += 4 * sum(int(p[2].size) for p in lstm_params)

    out = pl.pallas_call(
        _make_fused_kernel(num_layers, T, Tp, B, H),
        out_shape=jax.ShapeDtypeStruct((Tp, Out), jnp.float32),
        in_specs=in_specs,
        out_specs=pl.BlockSpec(memory_space=pltpu.MemorySpace.VMEM),
        scratch_shapes=[
            pltpu.VMEM((B, H, H1), jnp.bfloat16),   # W1 landing buffer
            pltpu.VMEM((H1, Out), jnp.bfloat16),    # W2 landing buffer
            pltpu.SemaphoreType.DMA((2,)),          # one sem per weight DMA
            pltpu.VMEM((Tp, B, H), jnp.float32),    # LSTM output scratch
        ],
        cost_estimate=pl.CostEstimate(flops=int(flops),
                                      transcendentals=int(transcendentals),
                                      bytes_accessed=int(bytes_accessed)),
    )(*args)
    return out[:T]


# --------------------------------- reference ----------------------------------
def _lstm_layer_ref(x, wih_t, whh_t, b):
    T, B, _ = x.shape
    H = whh_t.shape[0]
    h = jnp.zeros((B, H), jnp.float32)
    c = jnp.zeros((B, H), jnp.float32)
    ys = []
    hp = jax.lax.Precision.HIGHEST
    for t in range(T):
        gates = (jnp.dot(x[t], wih_t, precision=hp)
                 + jnp.dot(h, whh_t, precision=hp) + b)
        i = jax.nn.sigmoid(gates[:, :H])
        f = jax.nn.sigmoid(gates[:, H:2 * H])
        g = jnp.tanh(gates[:, 2 * H:3 * H])
        o = jax.nn.sigmoid(gates[:, 3 * H:])
        c = f * c + i * g
        h = o * jnp.tanh(c)
        ys.append(h)
    return jnp.stack(ys)


def _forward_ref(x, lstm_params, fc_params):
    y = x
    for (wih_t, whh_t, b) in lstm_params:
        y = _lstm_layer_ref(y, wih_t, whh_t, b)
    y = y.reshape(y.shape[0], -1)
    w1_t, b1, w2_t, b2 = fc_params
    hp = jax.lax.Precision.HIGHEST
    h = jnp.maximum(jnp.dot(y, w1_t, precision=hp) + b1, 0.0)
    return jnp.dot(h, w2_t, precision=hp) + b2


# ----------------------------------- main --------------------------------------
if __name__ == "__main__":
    # module hyper-parameters (small, consistent with the forward pass)
    params = dict(batch_size=4, length_peptide_sequence=8, peptide_input_dim=16,
                  hidden_size=32, num_layers=2, dropout_rate=0.1)
    Bt = params["batch_size"]                        # torch batch = LSTM "time"
    L = params["length_peptide_sequence"]            # LSTM "batch"
    D = params["peptide_input_dim"]
    H = params["hidden_size"]
    NL = params["num_layers"]
    output_dimension = L * H                         # what _get_output_dimension returns

    key = jax.random.PRNGKey(0)
    kx, *ks = jax.random.split(key, 1 + 4 * NL + 4)

    # deterministic init (PyTorch-style uniform bounds), gate order i,f,g,o
    lstm_params = []
    kidx = 0
    bound = 1.0 / jnp.sqrt(H)
    for layer in range(NL):
        d_in = D if layer == 0 else H
        w_ih = jax.random.uniform(ks[kidx + 0], (4 * H, d_in), jnp.float32, -bound, bound)
        w_hh = jax.random.uniform(ks[kidx + 1], (4 * H, H), jnp.float32, -bound, bound)
        b_ih = jax.random.uniform(ks[kidx + 2], (4 * H,), jnp.float32, -bound, bound)
        b_hh = jax.random.uniform(ks[kidx + 3], (4 * H,), jnp.float32, -bound, bound)
        kidx += 4
        lstm_params.append((w_ih.T, w_hh.T, (b_ih + b_hh)[None, :]))

    b1_bound = 1.0 / jnp.sqrt(output_dimension)
    b2_bound = 1.0 / jnp.sqrt(1024)
    W1 = jax.random.uniform(ks[kidx + 0], (1024, output_dimension), jnp.float32, -b1_bound, b1_bound)
    bb1 = jax.random.uniform(ks[kidx + 1], (1024,), jnp.float32, -b1_bound, b1_bound)
    W2 = jax.random.uniform(ks[kidx + 2], (256, 1024), jnp.float32, -b2_bound, b2_bound)
    bb2 = jax.random.uniform(ks[kidx + 3], (256,), jnp.float32, -b2_bound, b2_bound)
    fc_params = (W1.T, bb1[None, :], W2.T, bb2[None, :])

    # deterministic input: (batch, length, input_dim), as in the PyTorch forward
    x = jax.random.normal(kx, (Bt, L, D), jnp.float32)

    fwd = jax.jit(lambda xx: peptide_lstm_forward(xx, lstm_params, fc_params))
    out = jax.block_until_ready(fwd(x))

    # NOTE: kernel matmuls are bf16-operand / f32-accumulate (deliberate
    # precision tradeoff); reference is f32 Precision.HIGHEST.
    ref = _forward_ref(x, lstm_params, fc_params)
    assert out.shape == (Bt, 256), out.shape
    assert jnp.allclose(out, ref, rtol=1e-2, atol=1e-2), float(jnp.max(jnp.abs(out - ref)))

    print("KERNEL_OK")
</pallas_src>

<mosaic_0001>
module attributes {stable_mosaic.version = 11 : i64} {
  func.func @kernel(%arg0: memref<32x16xbf16, #tpu.memory_space<vmem>>, %arg1: memref<16x128xbf16, #tpu.memory_space<vmem>>, %arg2: memref<32x128xbf16, #tpu.memory_space<vmem>>, %arg3: memref<1x128xf32, #tpu.memory_space<vmem>>, %arg4: memref<32x128xbf16, #tpu.memory_space<vmem>>, %arg5: memref<32x128xbf16, #tpu.memory_space<vmem>>, %arg6: memref<1x128xf32, #tpu.memory_space<vmem>>, %arg7: memref<1x1024xf32, #tpu.memory_space<vmem>>, %arg8: memref<1x256xf32, #tpu.memory_space<vmem>>, %arg9: memref<8x32x1024xbf16, #tpu.memory_space<any>>, %arg10: memref<1024x256xbf16, #tpu.memory_space<any>>, %arg11: memref<8x256xf32, #tpu.memory_space<vmem>>, %arg12: memref<8x32x1024xbf16, #tpu.memory_space<vmem>>, %arg13: memref<1024x256xbf16, #tpu.memory_space<vmem>>, %arg14: memref<2x!tpu.dma_semaphore, #tpu.memory_space<semaphore_mem>>, %arg15: memref<8x8x32xf32, #tpu.memory_space<vmem>>) attributes {dimension_semantics = [], scalar_prefetch = 0 : i64, scratch_operands = 4 : i64, tpu.core_type = #tpu.core_type<tc>} {
    %c0_i32 = arith.constant 0 : i32
    %0 = tpu.memref_slice %arg14[%c0_i32] : memref<2x!tpu.dma_semaphore, #tpu.memory_space<semaphore_mem>> -> memref<1x!tpu.dma_semaphore, #tpu.memory_space<semaphore_mem>>
    %1 = tpu.memref_squeeze %0 : memref<1x!tpu.dma_semaphore, #tpu.memory_space<semaphore_mem>> -> memref<!tpu.dma_semaphore, #tpu.memory_space<semaphore_mem>>
    tpu.enqueue_dma source(%arg9 : memref<8x32x1024xbf16, #tpu.memory_space<any>>) target(%arg12 : memref<8x32x1024xbf16, #tpu.memory_space<vmem>>) target_semaphore(%1 : memref<!tpu.dma_semaphore, #tpu.memory_space<semaphore_mem>>)
    %c1_i32 = arith.constant 1 : i32
    %2 = tpu.memref_slice %arg14[%c1_i32] : memref<2x!tpu.dma_semaphore, #tpu.memory_space<semaphore_mem>> -> memref<1x!tpu.dma_semaphore, #tpu.memory_space<semaphore_mem>>
    %3 = tpu.memref_squeeze %2 : memref<1x!tpu.dma_semaphore, #tpu.memory_space<semaphore_mem>> -> memref<!tpu.dma_semaphore, #tpu.memory_space<semaphore_mem>>
    tpu.enqueue_dma source(%arg10 : memref<1024x256xbf16, #tpu.memory_space<any>>) target(%arg13 : memref<1024x256xbf16, #tpu.memory_space<vmem>>) target_semaphore(%3 : memref<!tpu.dma_semaphore, #tpu.memory_space<semaphore_mem>>)
    %c0 = arith.constant 0 : index
    %c0_0 = arith.constant 0 : index
    %4 = vector.load %arg1[%c0, %c0_0] : memref<16x128xbf16, #tpu.memory_space<vmem>>, vector<16x128xbf16>
    %c0_1 = arith.constant 0 : index
    %c0_2 = arith.constant 0 : index
    %5 = vector.load %arg4[%c0_1, %c0_2] : memref<32x128xbf16, #tpu.memory_space<vmem>>, vector<32x128xbf16>
    %c0_3 = arith.constant 0 : index
    %c0_4 = arith.constant 0 : index
    %6 = vector.load %arg2[%c0_3, %c0_4] : memref<32x128xbf16, #tpu.memory_space<vmem>>, vector<32x128xbf16>
    %c0_5 = arith.constant 0 : index
    %c0_6 = arith.constant 0 : index
    %7 = vector.load %arg5[%c0_5, %c0_6] : memref<32x128xbf16, #tpu.memory_space<vmem>>, vector<32x128xbf16>
    %c0_7 = arith.constant 0 : index
    %c0_8 = arith.constant 0 : index
    %8 = vector.load %arg3[%c0_7, %c0_8] : memref<1x128xf32, #tpu.memory_space<vmem>>, vector<1x128xf32>
    %9 = vector.shape_cast %8 : vector<1x128xf32> to vector<1x128xf32>
    %10 = vector.broadcast %9 : vector<1x128xf32> to vector<8x128xf32>
    %c0_9 = arith.constant 0 : index
    %c0_10 = arith.constant 0 : index
    %11 = vector.load %arg6[%c0_9, %c0_10] : memref<1x128xf32, #tpu.memory_space<vmem>>, vector<1x128xf32>
    %12 = vector.shape_cast %11 : vector<1x128xf32> to vector<1x128xf32>
    %13 = vector.broadcast %12 : vector<1x128xf32> to vector<8x128xf32>
    %cst = arith.constant 0.000000e+00 : f32
    %14 = vector.broadcast %cst : f32 to vector<8x8x32xf32>
    %c0_11 = arith.constant 0 : index
    %c0_12 = arith.constant 0 : index
    %c0_13 = arith.constant 0 : index
    %15 = vector.load %arg15[%c0_11, %c0_12, %c0_13] : memref<8x8x32xf32, #tpu.memory_space<vmem>>, vector<8x8x32xf32>
    tpu.vector_store %arg15[%c0_11, %c0_12, %c0_13], %14 {strides = array<i32>} : memref<8x8x32xf32, #tpu.memory_space<vmem>>, vector<8x8x32xf32>,
    %c0_14 = arith.constant 0 : index
    %c0_15 = arith.constant 0 : index
    %16 = vector.load %arg0[%c0_14, %c0_15] : memref<32x16xbf16, #tpu.memory_space<vmem>>, vector<32x16xbf16>
    %cst_16 = arith.constant dense<0.000000e+00> : vector<32x128xf32>
    %17 = tpu.matmul %16, %4, %cst_16 {dimension_numbers = #tpu.dot_dimension_numbers<[1], [0], [0], [1], [0, 0, 1, 1], [], []>} : vector<32x16xbf16>, vector<16x128xbf16>, vector<32x128xf32> -> vector<32x128xf32>
    %18 = vector.extract_strided_slice %17 {offsets = [0, 0], sizes = [8, 128], strides = [1, 1]} : vector<32x128xf32> to vector<8x128xf32>
    %19 = arith.addf %18, %10 : vector<8x128xf32>
    %20 = vector.extract_strided_slice %17 {offsets = [8, 0], sizes = [8, 128], strides = [1, 1]} : vector<32x128xf32> to vector<8x128xf32>
    %21 = arith.addf %20, %10 : vector<8x128xf32>
    %22 = vector.extract_strided_slice %17 {offsets = [16, 0], sizes = [8, 128], strides = [1, 1]} : vector<32x128xf32> to vector<8x128xf32>
    %23 = arith.addf %22, %10 : vector<8x128xf32>
    %24 = vector.extract_strided_slice %17 {offsets = [24, 0], sizes = [8, 128], strides = [1, 1]} : vector<32x128xf32> to vector<8x128xf32>
    %25 = arith.addf %24, %10 : vector<8x128xf32>
    %cst_17 = arith.constant 0.000000e+00 : bf16
    %26 = vector.broadcast %cst_17 : bf16 to vector<8x32xbf16>
    %cst_18 = arith.constant 0.000000e+00 : f32
    %27 = vector.broadcast %cst_18 : f32 to vector<8x32xf32>
    %cst_19 = arith.constant dense<0.000000e+00> : vector<8x128xf32>
    %28 = tpu.matmul %26, %6, %cst_19 {dimension_numbers = #tpu.dot_dimension_numbers<[1], [0], [0], [1], [0, 0, 1, 1], [], []>} : vector<8x32xbf16>, vector<32x128xbf16>, vector<8x128xf32> -> vector<8x128xf32>
    %29 = arith.addf %19, %28 : vector<8x128xf32>
    %30 = arith.negf %29 : vector<8x128xf32>
    %31 = math.exp %30 : vector<8x128xf32>
    %cst_20 = arith.constant 1.000000e+00 : f32
    %32 = vector.broadcast %cst_20 : f32 to vector<8x128xf32>
    %33 = arith.addf %32, %31 : vector<8x128xf32>
    %34 = arith.divf %32, %33 : vector<8x128xf32>
    %35 = vector.extract_strided_slice %34 {offsets = [0, 0], sizes = [8, 32], strides = [1, 1]} : vector<8x128xf32> to vector<8x32xf32>
    %36 = vector.extract_strided_slice %34 {offsets = [0, 32], sizes = [8, 32], strides = [1, 1]} : vector<8x128xf32> to vector<8x32xf32>
    %37 = vector.extract_strided_slice %34 {offsets = [0, 64], sizes = [8, 32], strides = [1, 1]} : vector<8x128xf32> to vector<8x32xf32>
    %cst_21 = arith.constant 2.000000e+00 : f32
    %38 = vector.broadcast %cst_21 : f32 to vector<8x32xf32>
    %39 = arith.mulf %38, %37 : vector<8x32xf32>
    %cst_22 = arith.constant 1.000000e+00 : f32
    %40 = vector.broadcast %cst_22 : f32 to vector<8x32xf32>
    %41 = arith.subf %39, %40 : vector<8x32xf32>
    %42 = vector.extract_strided_slice %34 {offsets = [0, 96], sizes = [8, 32], strides = [1, 1]} : vector<8x128xf32> to vector<8x32xf32>
    %43 = arith.mulf %36, %27 : vector<8x32xf32>
    %44 = arith.mulf %35, %41 : vector<8x32xf32>
    %45 = arith.addf %43, %44 : vector<8x32xf32>
    %46 = math.tanh %45 : vector<8x32xf32>
    %47 = arith.mulf %42, %46 : vector<8x32xf32>
    %48 = arith.truncf %47 : vector<8x32xf32> to vector<8x32xbf16>
    %cst_23 = arith.constant dense<0.000000e+00> : vector<8x128xf32>
    %49 = tpu.matmul %48, %5, %cst_23 {dimension_numbers = #tpu.dot_dimension_numbers<[1], [0], [0], [1], [0, 0, 1, 1], [], []>} : vector<8x32xbf16>, vector<32x128xbf16>, vector<8x128xf32> -> vector<8x128xf32>
    %50 = arith.addf %13, %49 : vector<8x128xf32>
    %cst_24 = arith.constant dense<0.000000e+00> : vector<8x128xf32>
    %51 = tpu.matmul %48, %6, %cst_24 {dimension_numbers = #tpu.dot_dimension_numbers<[1], [0], [0], [1], [0, 0, 1, 1], [], []>} : vector<8x32xbf16>, vector<32x128xbf16>, vector<8x128xf32> -> vector<8x128xf32>
    %52 = arith.addf %21, %51 : vector<8x128xf32>
    %53 = arith.negf %52 : vector<8x128xf32>
    %54 = math.exp %53 : vector<8x128xf32>
    %cst_25 = arith.constant 1.000000e+00 : f32
    %55 = vector.broadcast %cst_25 : f32 to vector<8x128xf32>
    %56 = arith.addf %55, %54 : vector<8x128xf32>
    %57 = arith.divf %55, %56 : vector<8x128xf32>
    %58 = vector.extract_strided_slice %57 {offsets = [0, 0], sizes = [8, 32], strides = [1, 1]} : vector<8x128xf32> to vector<8x32xf32>
    %59 = vector.extract_strided_slice %57 {offsets = [0, 32], sizes = [8, 32], strides = [1, 1]} : vector<8x128xf32> to vector<8x32xf32>
    %60 = vector.extract_strided_slice %57 {offsets = [0, 64], sizes = [8, 32], strides = [1, 1]} : vector<8x128xf32> to vector<8x32xf32>
    %cst_26 = arith.constant 2.000000e+00 : f32
    %61 = vector.broadcast %cst_26 : f32 to vector<8x32xf32>
    %62 = arith.mulf %61, %60 : vector<8x32xf32>
    %cst_27 = arith.constant 1.000000e+00 : f32
    %63 = vector.broadcast %cst_27 : f32 to vector<8x32xf32>
    %64 = arith.subf %62, %63 : vector<8x32xf32>
    %65 = vector.extract_strided_slice %57 {offsets = [0, 96], sizes = [8, 32], strides = [1, 1]} : vector<8x128xf32> to vector<8x32xf32>
    %66 = arith.mulf %59, %45 : vector<8x32xf32>
    %67 = arith.mulf %58, %64 : vector<8x32xf32>
    %68 = arith.addf %66, %67 : vector<8x32xf32>
    %69 = math.tanh %68 : vector<8x32xf32>
    %70 = arith.mulf %65, %69 : vector<8x32xf32>
    %71 = arith.truncf %70 : vector<8x32xf32> to vector<8x32xbf16>
    %cst_28 = arith.constant dense<0.000000e+00> : vector<8x128xf32>
    %72 = tpu.matmul %71, %5, %cst_28 {dimension_numbers = #tpu.dot_dimension_numbers<[1], [0], [0], [1], [0, 0, 1, 1], [], []>} : vector<8x32xbf16>, vector<32x128xbf16>, vector<8x128xf32> -> vector<8x128xf32>
    %73 = arith.addf %13, %72 : vector<8x128xf32>
    %cst_29 = arith.constant dense<0.000000e+00> : vector<8x128xf32>
    %74 = tpu.matmul %71, %6, %cst_29 {dimension_numbers = #tpu.dot_dimension_numbers<[1], [0], [0], [1], [0, 0, 1, 1], [], []>} : vector<8x32xbf16>, vector<32x128xbf16>, vector<8x128xf32> -> vector<8x128xf32>
    %75 = arith.addf %23, %74 : vector<8x128xf32>
    %76 = arith.negf %75 : vector<8x128xf32>
    %77 = math.exp %76 : vector<8x128xf32>
    %cst_30 = arith.constant 1.000000e+00 : f32
    %78 = vector.broadcast %cst_30 : f32 to vector<8x128xf32>
    %79 = arith.addf %78, %77 : vector<8x128xf32>
    %80 = arith.divf %78, %79 : vector<8x128xf32>
    %81 = vector.extract_strided_slice %80 {offsets = [0, 0], sizes = [8, 32], strides = [1, 1]} : vector<8x128xf32> to vector<8x32xf32>
    %82 = vector.extract_strided_slice %80 {offsets = [0, 32], sizes = [8, 32], strides = [1, 1]} : vector<8x128xf32> to vector<8x32xf32>
    %83 = vector.extract_strided_slice %80 {offsets = [0, 64], sizes = [8, 32], strides = [1, 1]} : vector<8x128xf32> to vector<8x32xf32>
    %cst_31 = arith.constant 2.000000e+00 : f32
    %84 = vector.broadcast %cst_31 : f32 to vector<8x32xf32>
    %85 = arith.mulf %84, %83 : vector<8x32xf32>
    %cst_32 = arith.constant 1.000000e+00 : f32
    %86 = vector.broadcast %cst_32 : f32 to vector<8x32xf32>
    %87 = arith.subf %85, %86 : vector<8x32xf32>
    %88 = vector.extract_strided_slice %80 {offsets = [0, 96], sizes = [8, 32], strides = [1, 1]} : vector<8x128xf32> to vector<8x32xf32>
    %89 = arith.mulf %82, %68 : vector<8x32xf32>
    %90 = arith.mulf %81, %87 : vector<8x32xf32>
    %91 = arith.addf %89, %90 : vector<8x32xf32>
    %92 = math.tanh %91 : vector<8x32xf32>
    %93 = arith.mulf %88, %92 : vector<8x32xf32>
    %94 = arith.truncf %93 : vector<8x32xf32> to vector<8x32xbf16>
    %cst_33 = arith.constant dense<0.000000e+00> : vector<8x128xf32>
    %95 = tpu.matmul %94, %5, %cst_33 {dimension_numbers = #tpu.dot_dimension_numbers<[1], [0], [0], [1], [0, 0, 1, 1], [], []>} : vector<8x32xbf16>, vector<32x128xbf16>, vector<8x128xf32> -> vector<8x128xf32>
    %96 = arith.addf %13, %95 : vector<8x128xf32>
    %cst_34 = arith.constant dense<0.000000e+00> : vector<8x128xf32>
    %97 = tpu.matmul %94, %6, %cst_34 {dimension_numbers = #tpu.dot_dimension_numbers<[1], [0], [0], [1], [0, 0, 1, 1], [], []>} : vector<8x32xbf16>, vector<32x128xbf16>, vector<8x128xf32> -> vector<8x128xf32>
    %98 = arith.addf %25, %97 : vector<8x128xf32>
    %99 = arith.negf %98 : vector<8x128xf32>
    %100 = math.exp %99 : vector<8x128xf32>
    %cst_35 = arith.constant 1.000000e+00 : f32
    %101 = vector.broadcast %cst_35 : f32 to vector<8x128xf32>
    %102 = arith.addf %101, %100 : vector<8x128xf32>
    %103 = arith.divf %101, %102 : vector<8x128xf32>
    %104 = vector.extract_strided_slice %103 {offsets = [0, 0], sizes = [8, 32], strides = [1, 1]} : vector<8x128xf32> to vector<8x32xf32>
    %105 = vector.extract_strided_slice %103 {offsets = [0, 32], sizes = [8, 32], strides = [1, 1]} : vector<8x128xf32> to vector<8x32xf32>
    %106 = vector.extract_strided_slice %103 {offsets = [0, 64], sizes = [8, 32], strides = [1, 1]} : vector<8x128xf32> to vector<8x32xf32>
    %cst_36 = arith.constant 2.000000e+00 : f32
    %107 = vector.broadcast %cst_36 : f32 to vector<8x32xf32>
    %108 = arith.mulf %107, %106 : vector<8x32xf32>
    %cst_37 = arith.constant 1.000000e+00 : f32
    %109 = vector.broadcast %cst_37 : f32 to vector<8x32xf32>
    %110 = arith.subf %108, %109 : vector<8x32xf32>
    %111 = vector.extract_strided_slice %103 {offsets = [0, 96], sizes = [8, 32], strides = [1, 1]} : vector<8x128xf32> to vector<8x32xf32>
    %112 = arith.mulf %105, %91 : vector<8x32xf32>
    %113 = arith.mulf %104, %110 : vector<8x32xf32>
    %114 = arith.addf %112, %113 : vector<8x32xf32>
    %115 = math.tanh %114 : vector<8x32xf32>
    %116 = arith.mulf %111, %115 : vector<8x32xf32>
    %117 = arith.truncf %116 : vector<8x32xf32> to vector<8x32xbf16>
    %cst_38 = arith.constant dense<0.000000e+00> : vector<8x128xf32>
    %118 = tpu.matmul %117, %5, %cst_38 {dimension_numbers = #tpu.dot_dimension_numbers<[1], [0], [0], [1], [0, 0, 1, 1], [], []>} : vector<8x32xbf16>, vector<32x128xbf16>, vector<8x128xf32> -> vector<8x128xf32>
    %119 = arith.addf %13, %118 : vector<8x128xf32>
    %cst_39 = arith.constant 0.000000e+00 : bf16
    %120 = vector.broadcast %cst_39 : bf16 to vector<8x32xbf16>
    %cst_40 = arith.constant 0.000000e+00 : f32
    %121 = vector.broadcast %cst_40 : f32 to vector<8x32xf32>
    %cst_41 = arith.constant dense<0.000000e+00> : vector<8x128xf32>
    %122 = tpu.matmul %120, %7, %cst_41 {dimension_numbers = #tpu.dot_dimension_numbers<[1], [0], [0], [1], [0, 0, 1, 1], [], []>} : vector<8x32xbf16>, vector<32x128xbf16>, vector<8x128xf32> -> vector<8x128xf32>
    %123 = arith.addf %50, %122 : vector<8x128xf32>
    %124 = arith.negf %123 : vector<8x128xf32>
    %125 = math.exp %124 : vector<8x128xf32>
    %cst_42 = arith.constant 1.000000e+00 : f32
    %126 = vector.broadcast %cst_42 : f32 to vector<8x128xf32>
    %127 = arith.addf %126, %125 : vector<8x128xf32>
    %128 = arith.divf %126, %127 : vector<8x128xf32>
    %129 = vector.extract_strided_slice %128 {offsets = [0, 0], sizes = [8, 32], strides = [1, 1]} : vector<8x128xf32> to vector<8x32xf32>
    %130 = vector.extract_strided_slice %128 {offsets = [0, 32], sizes = [8, 32], strides = [1, 1]} : vector<8x128xf32> to vector<8x32xf32>
    %131 = vector.extract_strided_slice %128 {offsets = [0, 64], sizes = [8, 32], strides = [1, 1]} : vector<8x128xf32> to vector<8x32xf32>
    %cst_43 = arith.constant 2.000000e+00 : f32
    %132 = vector.broadcast %cst_43 : f32 to vector<8x32xf32>
    %133 = arith.mulf %132, %131 : vector<8x32xf32>
    %cst_44 = arith.constant 1.000000e+00 : f32
    %134 = vector.broadcast %cst_44 : f32 to vector<8x32xf32>
    %135 = arith.subf %133, %134 : vector<8x32xf32>
    %136 = vector.extract_strided_slice %128 {offsets = [0, 96], sizes = [8, 32], strides = [1, 1]} : vector<8x128xf32> to vector<8x32xf32>
    %137 = arith.mulf %130, %121 : vector<8x32xf32>
    %138 = arith.mulf %129, %135 : vector<8x32xf32>
    %139 = arith.addf %137, %138 : vector<8x32xf32>
    %140 = math.tanh %139 : vector<8x32xf32>
    %141 = arith.mulf %136, %140 : vector<8x32xf32>
    %142 = arith.truncf %141 : vector<8x32xf32> to vector<8x32xbf16>
    %c0_45 = arith.constant 0 : index
    %c0_46 = arith.constant 0 : index
    %c0_47 = arith.constant 0 : index
    %143 = vector.load %arg15[%c0_45, %c0_46, %c0_47] : memref<8x8x32xf32, #tpu.memory_space<vmem>>, vector<1x8x32xf32>
    %144 = vector.shape_cast %143 : vector<1x8x32xf32> to vector<8x32xf32>
    %145 = vector.shape_cast %141 : vector<8x32xf32> to vector<1x8x32xf32>
    tpu.vector_store %arg15[%c0_45, %c0_46, %c0_47], %145 {strides = array<i32>} : memref<8x8x32xf32, #tpu.memory_space<vmem>>, vector<1x8x32xf32>,
    %cst_48 = arith.constant dense<0.000000e+00> : vector<8x128xf32>
    %146 = tpu.matmul %142, %7, %cst_48 {dimension_numbers = #tpu.dot_dimension_numbers<[1], [0], [0], [1], [0, 0, 1, 1], [], []>} : vector<8x32xbf16>, vector<32x128xbf16>, vector<8x128xf32> -> vector<8x128xf32>
    %147 = arith.addf %73, %146 : vector<8x128xf32>
    %148 = arith.negf %147 : vector<8x128xf32>
    %149 = math.exp %148 : vector<8x128xf32>
    %cst_49 = arith.constant 1.000000e+00 : f32
    %150 = vector.broadcast %cst_49 : f32 to vector<8x128xf32>
    %151 = arith.addf %150, %149 : vector<8x128xf32>
    %152 = arith.divf %150, %151 : vector<8x128xf32>
    %153 = vector.extract_strided_slice %152 {offsets = [0, 0], sizes = [8, 32], strides = [1, 1]} : vector<8x128xf32> to vector<8x32xf32>
    %154 = vector.extract_strided_slice %152 {offsets = [0, 32], sizes = [8, 32], strides = [1, 1]} : vector<8x128xf32> to vector<8x32xf32>
    %155 = vector.extract_strided_slice %152 {offsets = [0, 64], sizes = [8, 32], strides = [1, 1]} : vector<8x128xf32> to vector<8x32xf32>
    %cst_50 = arith.constant 2.000000e+00 : f32
    %156 = vector.broadcast %cst_50 : f32 to vector<8x32xf32>
    %157 = arith.mulf %156, %155 : vector<8x32xf32>
    %cst_51 = arith.constant 1.000000e+00 : f32
    %158 = vector.broadcast %cst_51 : f32 to vector<8x32xf32>
    %159 = arith.subf %157, %158 : vector<8x32xf32>
    %160 = vector.extract_strided_slice %152 {offsets = [0, 96], sizes = [8, 32], strides = [1, 1]} : vector<8x128xf32> to vector<8x32xf32>
    %161 = arith.mulf %154, %139 : vector<8x32xf32>
    %162 = arith.mulf %153, %159 : vector<8x32xf32>
    %163 = arith.addf %161, %162 : vector<8x32xf32>
    %164 = math.tanh %163 : vector<8x32xf32>
    %165 = arith.mulf %160, %164 : vector<8x32xf32>
    %166 = arith.truncf %165 : vector<8x32xf32> to vector<8x32xbf16>
    %c1 = arith.constant 1 : index
    %c0_52 = arith.constant 0 : index
    %c0_53 = arith.constant 0 : index
    %167 = vector.load %arg15[%c1, %c0_52, %c0_53] : memref<8x8x32xf32, #tpu.memory_space<vmem>>, vector<1x8x32xf32>
    %168 = vector.shape_cast %167 : vector<1x8x32xf32> to vector<8x32xf32>
    %169 = vector.shape_cast %165 : vector<8x32xf32> to vector<1x8x32xf32>
    tpu.vector_store %arg15[%c1, %c0_52, %c0_53], %169 {strides = array<i32>} : memref<8x8x32xf32, #tpu.memory_space<vmem>>, vector<1x8x32xf32>,
    %cst_54 = arith.constant dense<0.000000e+00> : vector<8x128xf32>
    %170 = tpu.matmul %166, %7, %cst_54 {dimension_numbers = #tpu.dot_dimension_numbers<[1], [0], [0], [1], [0, 0, 1, 1], [], []>} : vector<8x32xbf16>, vector<32x128xbf16>, vector<8x128xf32> -> vector<8x128xf32>
    %171 = arith.addf %96, %170 : vector<8x128xf32>
    %172 = arith.negf %171 : vector<8x128xf32>
    %173 = math.exp %172 : vector<8x128xf32>
    %cst_55 = arith.constant 1.000000e+00 : f32
    %174 = vector.broadcast %cst_55 : f32 to vector<8x128xf32>
    %175 = arith.addf %174, %173 : vector<8x128xf32>
    %176 = arith.divf %174, %175 : vector<8x128xf32>
    %177 = vector.extract_strided_slice %176 {offsets = [0, 0], sizes = [8, 32], strides = [1, 1]} : vector<8x128xf32> to vector<8x32xf32>
    %178 = vector.extract_strided_slice %176 {offsets = [0, 32], sizes = [8, 32], strides = [1, 1]} : vector<8x128xf32> to vector<8x32xf32>
    %179 = vector.extract_strided_slice %176 {offsets = [0, 64], sizes = [8, 32], strides = [1, 1]} : vector<8x128xf32> to vector<8x32xf32>
    %cst_56 = arith.constant 2.000000e+00 : f32
    %180 = vector.broadcast %cst_56 : f32 to vector<8x32xf32>
    %181 = arith.mulf %180, %179 : vector<8x32xf32>
    %cst_57 = arith.constant 1.000000e+00 : f32
    %182 = vector.broadcast %cst_57 : f32 to vector<8x32xf32>
    %183 = arith.subf %181, %182 : vector<8x32xf32>
    %184 = vector.extract_strided_slice %176 {offsets = [0, 96], sizes = [8, 32], strides = [1, 1]} : vector<8x128xf32> to vector<8x32xf32>
    %185 = arith.mulf %178, %163 : vector<8x32xf32>
    %186 = arith.mulf %177, %183 : vector<8x32xf32>
    %187 = arith.addf %185, %186 : vector<8x32xf32>
    %188 = math.tanh %187 : vector<8x32xf32>
    %189 = arith.mulf %184, %188 : vector<8x32xf32>
    %190 = arith.truncf %189 : vector<8x32xf32> to vector<8x32xbf16>
    %c2 = arith.constant 2 : index
    %c0_58 = arith.constant 0 : index
    %c0_59 = arith.constant 0 : index
    %191 = vector.load %arg15[%c2, %c0_58, %c0_59] : memref<8x8x32xf32, #tpu.memory_space<vmem>>, vector<1x8x32xf32>
    %192 = vector.shape_cast %191 : vector<1x8x32xf32> to vector<8x32xf32>
    %193 = vector.shape_cast %189 : vector<8x32xf32> to vector<1x8x32xf32>
    tpu.vector_store %arg15[%c2, %c0_58, %c0_59], %193 {strides = array<i32>} : memref<8x8x32xf32, #tpu.memory_space<vmem>>, vector<1x8x32xf32>,
    %cst_60 = arith.constant dense<0.000000e+00> : vector<8x128xf32>
    %194 = tpu.matmul %190, %7, %cst_60 {dimension_numbers = #tpu.dot_dimension_numbers<[1], [0], [0], [1], [0, 0, 1, 1], [], []>} : vector<8x32xbf16>, vector<32x128xbf16>, vector<8x128xf32> -> vector<8x128xf32>
    %195 = arith.addf %119, %194 : vector<8x128xf32>
    %196 = arith.negf %195 : vector<8x128xf32>
    %197 = math.exp %196 : vector<8x128xf32>
    %cst_61 = arith.constant 1.000000e+00 : f32
    %198 = vector.broadcast %cst_61 : f32 to vector<8x128xf32>
    %199 = arith.addf %198, %197 : vector<8x128xf32>
    %200 = arith.divf %198, %199 : vector<8x128xf32>
    %201 = vector.extract_strided_slice %200 {offsets = [0, 0], sizes = [8, 32], strides = [1, 1]} : vector<8x128xf32> to vector<8x32xf32>
    %202 = vector.extract_strided_slice %200 {offsets = [0, 32], sizes = [8, 32], strides = [1, 1]} : vector<8x128xf32> to vector<8x32xf32>
    %203 = vector.extract_strided_slice %200 {offsets = [0, 64], sizes = [8, 32], strides = [1, 1]} : vector<8x128xf32> to vector<8x32xf32>
    %cst_62 = arith.constant 2.000000e+00 : f32
    %204 = vector.broadcast %cst_62 : f32 to vector<8x32xf32>
    %205 = arith.mulf %204, %203 : vector<8x32xf32>
    %cst_63 = arith.constant 1.000000e+00 : f32
    %206 = vector.broadcast %cst_63 : f32 to vector<8x32xf32>
    %207 = arith.subf %205, %206 : vector<8x32xf32>
    %208 = vector.extract_strided_slice %200 {offsets = [0, 96], sizes = [8, 32], strides = [1, 1]} : vector<8x128xf32> to vector<8x32xf32>
    %209 = arith.mulf %202, %187 : vector<8x32xf32>
    %210 = arith.mulf %201, %207 : vector<8x32xf32>
    %211 = arith.addf %209, %210 : vector<8x32xf32>
    %212 = math.tanh %211 : vector<8x32xf32>
    %213 = arith.mulf %208, %212 : vector<8x32xf32>
    %c3 = arith.constant 3 : index
    %c0_64 = arith.constant 0 : index
    %c0_65 = arith.constant 0 : index
    %214 = vector.load %arg15[%c3, %c0_64, %c0_65] : memref<8x8x32xf32, #tpu.memory_space<vmem>>, vector<1x8x32xf32>
    %215 = vector.shape_cast %214 : vector<1x8x32xf32> to vector<8x32xf32>
    %216 = vector.shape_cast %213 : vector<8x32xf32> to vector<1x8x32xf32>
    tpu.vector_store %arg15[%c3, %c0_64, %c0_65], %216 {strides = array<i32>} : memref<8x8x32xf32, #tpu.memory_space<vmem>>, vector<1x8x32xf32>,
    %c0_i32_66 = arith.constant 0 : i32
    %217 = tpu.memref_slice %arg14[%c0_i32_66] : memref<2x!tpu.dma_semaphore, #tpu.memory_space<semaphore_mem>> -> memref<1x!tpu.dma_semaphore, #tpu.memory_space<semaphore_mem>>
    %218 = tpu.memref_squeeze %217 : memref<1x!tpu.dma_semaphore, #tpu.memory_space<semaphore_mem>> -> memref<!tpu.dma_semaphore, #tpu.memory_space<semaphore_mem>>
    tpu.wait_dma2 semaphore(%218 : memref<!tpu.dma_semaphore, #tpu.memory_space<semaphore_mem>>) src(%arg9 : memref<8x32x1024xbf16, #tpu.memory_space<any>>) dst(%arg12 : memref<8x32x1024xbf16, #tpu.memory_space<vmem>>)
    %c1_i32_67 = arith.constant 1 : i32
    %219 = tpu.memref_slice %arg14[%c1_i32_67] : memref<2x!tpu.dma_semaphore, #tpu.memory_space<semaphore_mem>> -> memref<1x!tpu.dma_semaphore, #tpu.memory_space<semaphore_mem>>
    %220 = tpu.memref_squeeze %219 : memref<1x!tpu.dma_semaphore, #tpu.memory_space<semaphore_mem>> -> memref<!tpu.dma_semaphore, #tpu.memory_space<semaphore_mem>>
    tpu.wait_dma2 semaphore(%220 : memref<!tpu.dma_semaphore, #tpu.memory_space<semaphore_mem>>) src(%arg10 : memref<1024x256xbf16, #tpu.memory_space<any>>) dst(%arg13 : memref<1024x256xbf16, #tpu.memory_space<vmem>>)
    %cst_68 = arith.constant 0.000000e+00 : f32
    %221 = vector.broadcast %cst_68 : f32 to vector<8x1024xf32>
    %c0_69 = arith.constant 0 : index
    %c0_70 = arith.constant 0 : index
    %c0_71 = arith.constant 0 : index
    %222 = vector.load %arg15[%c0_69, %c0_70, %c0_71] : memref<8x8x32xf32, #tpu.memory_space<vmem>>, vector<8x1x32xf32>
    %223 = vector.shape_cast %222 : vector<8x1x32xf32> to vector<8x32xf32>
    %224 = arith.truncf %223 : vector<8x32xf32> to vector<8x32xbf16>
    %c0_72 = arith.constant 0 : index
    %c0_73 = arith.constant 0 : index
    %c0_74 = arith.constant 0 : index
    %225 = vector.load %arg12[%c0_72, %c0_73, %c0_74] : memref<8x32x1024xbf16, #tpu.memory_space<vmem>>, vector<1x32x1024xbf16>
    %226 = vector.shape_cast %225 : vector<1x32x1024xbf16> to vector<32x1024xbf16>
    %cst_75 = arith.constant dense<0.000000e+00> : vector<8x1024xf32>
    %227 = tpu.matmul %224, %226, %cst_75 {dimension_numbers = #tpu.dot_dimension_numbers<[1], [0], [0], [1], [0, 0, 1, 1], [], []>} : vector<8x32xbf16>, vector<32x1024xbf16>, vector<8x1024xf32> -> vector<8x1024xf32>
    %228 = arith.addf %221, %227 : vector<8x1024xf32>
    %c0_76 = arith.constant 0 : index
    %c1_77 = arith.constant 1 : index
    %c0_78 = arith.constant 0 : index
    %229 = vector.load %arg15[%c0_76, %c1_77, %c0_78] : memref<8x8x32xf32, #tpu.memory_space<vmem>>, vector<8x1x32xf32>
    %230 = vector.shape_cast %229 : vector<8x1x32xf32> to vector<8x32xf32>
    %231 = arith.truncf %230 : vector<8x32xf32> to vector<8x32xbf16>
    %c1_79 = arith.constant 1 : index
    %c0_80 = arith.constant 0 : index
    %c0_81 = arith.constant 0 : index
    %232 = vector.load %arg12[%c1_79, %c0_80, %c0_81] : memref<8x32x1024xbf16, #tpu.memory_space<vmem>>, vector<1x32x1024xbf16>
    %233 = vector.shape_cast %232 : vector<1x32x1024xbf16> to vector<32x1024xbf16>
    %cst_82 = arith.constant dense<0.000000e+00> : vector<8x1024xf32>
    %234 = tpu.matmul %231, %233, %cst_82 {dimension_numbers = #tpu.dot_dimension_numbers<[1], [0], [0], [1], [0, 0, 1, 1], [], []>} : vector<8x32xbf16>, vector<32x1024xbf16>, vector<8x1024xf32> -> vector<8x1024xf32>
    %235 = arith.addf %228, %234 : vector<8x1024xf32>
    %c0_83 = arith.constant 0 : index
    %c2_84 = arith.constant 2 : index
    %c0_85 = arith.constant 0 : index
    %236 = vector.load %arg15[%c0_83, %c2_84, %c0_85] : memref<8x8x32xf32, #tpu.memory_space<vmem>>, vector<8x1x32xf32>
    %237 = vector.shape_cast %236 : vector<8x1x32xf32> to vector<8x32xf32>
    %238 = arith.truncf %237 : vector<8x32xf32> to vector<8x32xbf16>
    %c2_86 = arith.constant 2 : index
    %c0_87 = arith.constant 0 : index
    %c0_88 = arith.constant 0 : index
    %239 = vector.load %arg12[%c2_86, %c0_87, %c0_88] : memref<8x32x1024xbf16, #tpu.memory_space<vmem>>, vector<1x32x1024xbf16>
    %240 = vector.shape_cast %239 : vector<1x32x1024xbf16> to vector<32x1024xbf16>
    %cst_89 = arith.constant dense<0.000000e+00> : vector<8x1024xf32>
    %241 = tpu.matmul %238, %240, %cst_89 {dimension_numbers = #tpu.dot_dimension_numbers<[1], [0], [0], [1], [0, 0, 1, 1], [], []>} : vector<8x32xbf16>, vector<32x1024xbf16>, vector<8x1024xf32> -> vector<8x1024xf32>
    %242 = arith.addf %235, %241 : vector<8x1024xf32>
    %c0_90 = arith.constant 0 : index
    %c3_91 = arith.constant 3 : index
    %c0_92 = arith.constant 0 : index
    %243 = vector.load %arg15[%c0_90, %c3_91, %c0_92] : memref<8x8x32xf32, #tpu.memory_space<vmem>>, vector<8x1x32xf32>
    %244 = vector.shape_cast %243 : vector<8x1x32xf32> to vector<8x32xf32>
    %245 = arith.truncf %244 : vector<8x32xf32> to vector<8x32xbf16>
    %c3_93 = arith.constant 3 : index
    %c0_94 = arith.constant 0 : index
    %c0_95 = arith.constant 0 : index
    %246 = vector.load %arg12[%c3_93, %c0_94, %c0_95] : memref<8x32x1024xbf16, #tpu.memory_space<vmem>>, vector<1x32x1024xbf16>
    %247 = vector.shape_cast %246 : vector<1x32x1024xbf16> to vector<32x1024xbf16>
    %cst_96 = arith.constant dense<0.000000e+00> : vector<8x1024xf32>
    %248 = tpu.matmul %245, %247, %cst_96 {dimension_numbers = #tpu.dot_dimension_numbers<[1], [0], [0], [1], [0, 0, 1, 1], [], []>} : vector<8x32xbf16>, vector<32x1024xbf16>, vector<8x1024xf32> -> vector<8x1024xf32>
    %249 = arith.addf %242, %248 : vector<8x1024xf32>
    %c0_97 = arith.constant 0 : index
    %c4 = arith.constant 4 : index
    %c0_98 = arith.constant 0 : index
    %250 = vector.load %arg15[%c0_97, %c4, %c0_98] : memref<8x8x32xf32, #tpu.memory_space<vmem>>, vector<8x1x32xf32>
    %251 = vector.shape_cast %250 : vector<8x1x32xf32> to vector<8x32xf32>
    %252 = arith.truncf %251 : vector<8x32xf32> to vector<8x32xbf16>
    %c4_99 = arith.constant 4 : index
    %c0_100 = arith.constant 0 : index
    %c0_101 = arith.constant 0 : index
    %253 = vector.load %arg12[%c4_99, %c0_100, %c0_101] : memref<8x32x1024xbf16, #tpu.memory_space<vmem>>, vector<1x32x1024xbf16>
    %254 = vector.shape_cast %253 : vector<1x32x1024xbf16> to vector<32x1024xbf16>
    %cst_102 = arith.constant dense<0.000000e+00> : vector<8x1024xf32>
    %255 = tpu.matmul %252, %254, %cst_102 {dimension_numbers = #tpu.dot_dimension_numbers<[1], [0], [0], [1], [0, 0, 1, 1], [], []>} : vector<8x32xbf16>, vector<32x1024xbf16>, vector<8x1024xf32> -> vector<8x1024xf32>
    %256 = arith.addf %249, %255 : vector<8x1024xf32>
    %c0_103 = arith.constant 0 : index
    %c5 = arith.constant 5 : index
    %c0_104 = arith.constant 0 : index
    %257 = vector.load %arg15[%c0_103, %c5, %c0_104] : memref<8x8x32xf32, #tpu.memory_space<vmem>>, vector<8x1x32xf32>
    %258 = vector.shape_cast %257 : vector<8x1x32xf32> to vector<8x32xf32>
    %259 = arith.truncf %258 : vector<8x32xf32> to vector<8x32xbf16>
    %c5_105 = arith.constant 5 : index
    %c0_106 = arith.constant 0 : index
    %c0_107 = arith.constant 0 : index
    %260 = vector.load %arg12[%c5_105, %c0_106, %c0_107] : memref<8x32x1024xbf16, #tpu.memory_space<vmem>>, vector<1x32x1024xbf16>
    %261 = vector.shape_cast %260 : vector<1x32x1024xbf16> to vector<32x1024xbf16>
    %cst_108 = arith.constant dense<0.000000e+00> : vector<8x1024xf32>
    %262 = tpu.matmul %259, %261, %cst_108 {dimension_numbers = #tpu.dot_dimension_numbers<[1], [0], [0], [1], [0, 0, 1, 1], [], []>} : vector<8x32xbf16>, vector<32x1024xbf16>, vector<8x1024xf32> -> vector<8x1024xf32>
    %263 = arith.addf %256, %262 : vector<8x1024xf32>
    %c0_109 = arith.constant 0 : index
    %c6 = arith.constant 6 : index
    %c0_110 = arith.constant 0 : index
    %264 = vector.load %arg15[%c0_109, %c6, %c0_110] : memref<8x8x32xf32, #tpu.memory_space<vmem>>, vector<8x1x32xf32>
    %265 = vector.shape_cast %264 : vector<8x1x32xf32> to vector<8x32xf32>
    %266 = arith.truncf %265 : vector<8x32xf32> to vector<8x32xbf16>
    %c6_111 = arith.constant 6 : index
    %c0_112 = arith.constant 0 : index
    %c0_113 = arith.constant 0 : index
    %267 = vector.load %arg12[%c6_111, %c0_112, %c0_113] : memref<8x32x1024xbf16, #tpu.memory_space<vmem>>, vector<1x32x1024xbf16>
    %268 = vector.shape_cast %267 : vector<1x32x1024xbf16> to vector<32x1024xbf16>
    %cst_114 = arith.constant dense<0.000000e+00> : vector<8x1024xf32>
    %269 = tpu.matmul %266, %268, %cst_114 {dimension_numbers = #tpu.dot_dimension_numbers<[1], [0], [0], [1], [0, 0, 1, 1], [], []>} : vector<8x32xbf16>, vector<32x1024xbf16>, vector<8x1024xf32> -> vector<8x1024xf32>
    %270 = arith.addf %263, %269 : vector<8x1024xf32>
    %c0_115 = arith.constant 0 : index
    %c7 = arith.constant 7 : index
    %c0_116 = arith.constant 0 : index
    %271 = vector.load %arg15[%c0_115, %c7, %c0_116] : memref<8x8x32xf32, #tpu.memory_space<vmem>>, vector<8x1x32xf32>
    %272 = vector.shape_cast %271 : vector<8x1x32xf32> to vector<8x32xf32>
    %273 = arith.truncf %272 : vector<8x32xf32> to vector<8x32xbf16>
    %c7_117 = arith.constant 7 : index
    %c0_118 = arith.constant 0 : index
    %c0_119 = arith.constant 0 : index
    %274 = vector.load %arg12[%c7_117, %c0_118, %c0_119] : memref<8x32x1024xbf16, #tpu.memory_space<vmem>>, vector<1x32x1024xbf16>
    %275 = vector.shape_cast %274 : vector<1x32x1024xbf16> to vector<32x1024xbf16>
    %cst_120 = arith.constant dense<0.000000e+00> : vector<8x1024xf32>
    %276 = tpu.matmul %273, %275, %cst_120 {dimension_numbers = #tpu.dot_dimension_numbers<[1], [0], [0], [1], [0, 0, 1, 1], [], []>} : vector<8x32xbf16>, vector<32x1024xbf16>, vector<8x1024xf32> -> vector<8x1024xf32>
    %277 = arith.addf %270, %276 : vector<8x1024xf32>
    %c0_121 = arith.constant 0 : index
    %c0_122 = arith.constant 0 : index
    %278 = vector.load %arg7[%c0_121, %c0_122] : memref<1x1024xf32, #tpu.memory_space<vmem>>, vector<1x1024xf32>
    %279 = vector.broadcast %278 : vector<1x1024xf32> to vector<8x1024xf32>
    %280 = arith.addf %277, %279 : vector<8x1024xf32>
    %cst_123 = arith.constant 0.000000e+00 : f32
    %281 = vector.broadcast %cst_123 : f32 to vector<8x1024xf32>
    %282 = arith.maximumf %280, %281 : vector<8x1024xf32>
    %283 = arith.truncf %282 : vector<8x1024xf32> to vector<8x1024xbf16>
    %c0_124 = arith.constant 0 : index
    %c0_125 = arith.constant 0 : index
    %284 = vector.load %arg13[%c0_124, %c0_125] : memref<1024x256xbf16, #tpu.memory_space<vmem>>, vector<1024x256xbf16>
    %cst_126 = arith.constant dense<0.000000e+00> : vector<8x256xf32>
    %285 = tpu.matmul %283, %284, %cst_126 {dimension_numbers = #tpu.dot_dimension_numbers<[1], [0], [0], [1], [0, 0, 1, 1], [], []>} : vector<8x1024xbf16>, vector<1024x256xbf16>, vector<8x256xf32> -> vector<8x256xf32>
    %c0_127 = arith.constant 0 : index
    %c0_128 = arith.constant 0 : index
    %286 = vector.load %arg8[%c0_127, %c0_128] : memref<1x256xf32, #tpu.memory_space<vmem>>, vector<1x256xf32>
    %287 = vector.broadcast %286 : vector<1x256xf32> to vector<8x256xf32>
    %288 = arith.addf %285, %287 : vector<8x256xf32>
    %c0_129 = arith.constant 0 : index
    %c0_130 = arith.constant 0 : index
    %289 = vector.load %arg11[%c0_129, %c0_130] : memref<8x256xf32, #tpu.memory_space<vmem>>, vector<8x256xf32>
    tpu.vector_store %arg11[%c0_129, %c0_130], %288 {strides = array<i32>} : memref<8x256xf32, #tpu.memory_space<vmem>>, vector<8x256xf32>,
    return
  }
}

</mosaic_0001>

<bundles_post_ra>
// kernel: _lambda_.1
= control target key start
LH: loop header
LB: loop body
LE: loop exit
PB: predicated region body
PF: predicated region fallthrough
CT: control target
= control target key end

     0   :  { %v5328_v0 = vmov 0.0   ;;  %vm5329_vm0 = vmmov 0   ;;  %vm115_vm1 = vcmask 130048   ;;  %v5330_v6 = vmov 0   ;;  %s5332_s26 = smov 32   ;;  %s6187_s1 = inlined_call_operand.vmem [shape: bf16[16,128], index: 1, kind: input, shape index: {}]   ;;  %s6188_s2 = inlined_call_operand.vmem [shape: bf16[32,128], index: 2, kind: input, shape index: {}]   ;;  %s6189_s0 = inlined_call_operand.vmem [shape: bf16[32,16], index: 0, kind: input, shape index: {}]   ;;  %s6190_s3 = inlined_call_operand.vmem [shape: f32[1,128], index: 3, kind: input, shape index: {}]   ;;  %s6191_s4 = inlined_call_operand.vmem [shape: bf16[32,128], index: 4, kind: input, shape index: {}]   ;;  %s6192_s5 = inlined_call_operand.vmem [shape: bf16[32,128], index: 5, kind: input, shape index: {}]   ;;  %s6193_s6 = inlined_call_operand.vmem [shape: f32[1,128], index: 6, kind: input, shape index: {}]   ;;  %s6194_s7 = inlined_call_operand.vmem [shape: f32[1,1024], index: 7, kind: input, shape index: {}]   ;;  %s6195_s8 = inlined_call_operand.vmem [shape: f32[1,256], index: 8, kind: input, shape index: {}]   ;;  %s6196_s9 = inlined_call_operand.hbm [shape: bf16[8,32,1024], index: 9, kind: input, shape index: {}]   ;;  %s6197_s11 = inlined_call_operand.vmem [shape: f32[8,256], index: 11, kind: output, shape index: {}]   ;;  %s6198_s10 = inlined_call_operand.hbm [shape: bf16[1024,256], index: 10, kind: input, shape index: {}]  }
   0x1   :  { %4932 = vmatprep.subr.bf16.mxu1 %v5328_v0  ;;  %v5035_v1 = vld [vmem:[%s6187_s1] sm:$0xff]   ;;  %4936 = vmatprep.mubr.msk.bf16.mxu1 %vm5329_vm0, %v5328_v0  ;;  %v5404_v2 = vld [vmem:[%s6188_s2 + $0x8] sm:$0xff]   ;;  %vm86_vm2 = vcmask 261120  }
   0x2   :  { %4926 = vmatprep.subr.bf16.mxu0 %v5035_v1  ;;  %v5037_v3 = vld [vmem:[%s6189_s0] sm:$0xff]   ;;  %4933 = vmatpush3.bf16.msra.mxu1 %v5404_v2  ;;  %v5038_v4 = vld [vmem:[%s6189_s0 + $0x8] sm:$0xff]   ;;  %91 = vst.msk [vmem:[#allocation5 + $0x20] sm:$0xff] %vm86_vm2, %v5328_v0  ;;  %92 = vst.msk [vmem:[#allocation5 + $0x28] sm:$0xff] %vm86_vm2, %v5328_v0 }
   0x3   :  { %4927 = vmatpush3.bf16.msra.mxu0 %v5035_v1  ;;  %4928 = vmatprep.mubr.msk.bf16.mxu0 %vm115_vm1, %v5037_v3  ;;  %v5417_v5 = vld [vmem:[%s6188_s2] sm:$0xff]   ;;  %v5448_v30 = vld [vmem:[%s6191_s4 + $0x8] sm:$0xff]   ;;  %93 = vst.msk [vmem:[#allocation5 + $0x30] sm:$0xff] %vm86_vm2, %v5328_v0  ;;  %94 = vst.msk [vmem:[#allocation5 + $0x38] sm:$0xff] %vm86_vm2, %v5328_v0 }
   0x4   :  { %4934 = vmatprep.subr.bf16.mxu1 %v5328_v0  ;;  %4940 = vmatprep.subr.bf16.mxu0 %v5328_v0  ;;  %v5434_v7 = vld [vmem:[%s6190_s3] ss:$0 sm:$0xff]  ;;  %s5331_s3 = smov 64   ;;  %87 = vst.msk [vmem:[#allocation5] sm:$0xff] %vm86_vm2, %v5328_v0  ;;  %88 = vst.msk [vmem:[#allocation5 + $0x8] sm:$0xff] %vm86_vm2, %v5328_v0 }
   0x5   :  { %v5454_v31 = vld [vmem:[%s6191_s4] sm:$0xff]   ;;  %89 = vst.msk [vmem:[#allocation5 + $0x10] sm:$0xff] %vm86_vm2, %v5328_v0  ;;  %90 = vst.msk [vmem:[#allocation5 + $0x18] sm:$0xff] %vm86_vm2, %v5328_v0 }
   0x6   :  { %4929 = vmatmul.mubr.msk.bf16.vlgmr.msra.gmra.mxu0 %vm115_vm1, %v5038_v4  ;;  %4935 = vmatpush3.bf16.msra.mxu1 %v5417_v5 }
   0x7   :  { %4944 = vmatprep.mubr.msk.bf16.mxu0 %vm5329_vm0, %v5328_v0  ;;  %4948 = vmatprep.subr.bf16.mxu1 %v5328_v0 }
   0x8   :  { %4941 = vmatpush3.bf16.msra.mxu0 %v5448_v30 }
   0x9   :  { %4937 = vmatmul.mubr.bf16.vlgmr.msra.gmra.mxu1 %v5330_v6  ;;  %4942 = vmatprep.subr.bf16.mxu0 %v5328_v0 }
   0xa   :  { %4949 = vmatpush3.bf16.msra.mxu1 %v5404_v2  ;;  %4952 = vmatprep.mubr.msk.bf16.mxu1 %vm5329_vm0, %v5328_v0 }
   0xb   :  { %4950 = vmatprep.subr.bf16.mxu1 %v5328_v0 }
   0xc   :  { %4943 = vmatpush3.bf16.msra.mxu0 %v5454_v31 }
   0xd   :  { %4956 = vmatprep.subr.bf16.mxu0 %v5328_v0 }
   0xe   :  { %4951 = vmatpush3.bf16.msra.mxu1 %v5417_v5 }
   0xf   :  { %4964 = vmatprep.subr.bf16.mxu1 %v5328_v0 }
  0xc6   :  { %v4930_v8 = vpop.f32.mrf.mxu0 }
  0xc7   :  { %v5437_v9 = vadd.f32 %v4930_v8, %v5434_v7 }
  0xc8   :  { %v156_v10 = vpop.f32.mrf.mxu0 }
  0xc9   :  { %v171_v11 = vadd.f32 %v5434_v7, %v156_v10  ;;  %v224_v12 = vpop.f32.mrf.mxu1 }
  0xca   :  { %v4931_v13 = vpop.f32.mrf.mxu0 }
  0xcb   :  { %v230_v14 = vadd.f32 %v224_v12, %v171_v11  ;;  %v5441_v15 = vadd.f32 %v4931_v13, %v5434_v7  ;;  %v4938_v16 = vpop.f32.mrf.mxu1 }
  0xcc   :  { %v159_v37 = vpop.f32.mrf.mxu0 }
  0xcd   :  { %v4567_v17 = vmul.f32 -1.442695, %v230_v14  ;;  %v227_v18 = vpop.f32.mrf.mxu1  ;;  %v172_v38 = vadd.f32 %v5434_v7, %v159_v37 }
  0xcf   :  { %5044 = vpow2.f32 %v4567_v17  ;;  %v4939_v19 = vpop.f32.mrf.mxu1 }
  0xdc   :  { %v5045_v20 = vpop.eup %5044 }
  0xdd   :  { %v234_v21 = vadd.f32 1.0, %v5045_v20 }
  0xdf   :  { %5046 = vrcp.f32 %v234_v21 }
  0xec   :  { %v5047_v22 = vpop.eup %5046 }
  0xed   :  { %v237_v23 = vmul.f32 2.0, %v5047_v22  ;;  %v239_v27 = vmul.f32 0.0, %v5047_v22 }
  0xef   :  { %v4568_v24 = vadd.f32 -1.0, %v237_v23 }
  0xf1   :  { %241 = vrot.lane.b32.xlu0 %v4568_v24, %s5331_s3 }
 0x163   :  { %v242_v25 = vpop.permute.xlu0 %241 }
 0x164   :  { %v244_v26 = vmul.f32 %v5047_v22, %v242_v25 }
 0x166   :  { %246 = vrot.lane.b32.xlu0 %v244_v26, %s5332_s26 }
 0x1d8   :  { %v247_v28 = vpop.permute.xlu0 %246 }
 0x1d9   :  { %v249_v29 = vadd.f32 %v247_v28, %v239_v27  ;;  %v5525_v27 = vld [vmem:[%s6192_s5 + $0x8] sm:$0xff]  }
 0x1db   :  { %5048 = vtanh.f32 %v249_v29 }
 0x1e8   :  { %v5049_v32 = vpop.eup %5048 }
 0x1e9   :  { %252 = vrot.lane.b32.xlu1 %v5049_v32, %s5331_s3 }
 0x25b   :  { %v253_v33 = vpop.permute.xlu1 %252 }
 0x25c   :  { %v255_v34 = vmul.f32 %v5047_v22, %v253_v33 }
 0x25e   :  { %v256_v35 = vpack.c.bf16 %v255_v34, %v255_v34 }
 0x260   :  { %258 = vrot.lane.b32.xlu1 %v256_v35, %s5332_s26 }
 0x2d2   :  { %v259_v36 = vpop.permute.xlu1 %258 }
 0x2d3   :  { %4945 = vmatmul.mubr.msk.bf16.vlgmr.msra.gmra.mxu0 %vm86_vm2, %v259_v36  ;;  %4953 = vmatmul.mubr.msk.bf16.vlgmr.msra.gmra.mxu1 %vm86_vm2, %v259_v36  ;;  %v5558_v36 = vld [vmem:[%s6193_s6] ss:$0 sm:$0xff]  ;;  %s5333_s6 = smov [#allocation2]  }
 0x2d4   :  { %4965 = vmatpush3.bf16.msra.mxu1 %v5404_v2  ;;  %4957 = vmatpush3.bf16.msra.mxu0 %v5448_v30  ;;  %s42_s16 = sshll.u32 %s5333_s6, 4  ;;  %s43_s16 = int_to_ptr.vmem [resolvable:$true] %s42_s16 }
 0x2d5   :  { %4966 = vmatprep.subr.bf16.mxu1 %v5328_v0  ;;  %4958 = vmatprep.subr.bf16.mxu0 %v5328_v0  ;;  %s5292_s17 = scalar_lea.vmem %s43_s16, 16384  ;;  %p5297_p1 = scmp.lt.s32.totalorder %s43_s16, %s43_s16 }
 0x2d6   :  { %4960 = vmatprep.mubr.msk.bf16.mxu0 %vm5329_vm0, %v5328_v0  ;;  %4968 = vmatprep.mubr.msk.bf16.mxu1 %vm5329_vm0, %v5328_v0  ;;  %p5293_p0 = scmp.ne.s32.totalorder %s43_s16, %s5292_s17  ;;  %p5298_p2 = scmp.lt.s32.totalorder %s5292_s17, %s5292_s17 }
 0x2d8   :  { %4967 = vmatpush3.bf16.msra.mxu1 %v5417_v5  ;;  %4959 = vmatpush3.bf16.msra.mxu0 %v5454_v31  ;;  %p5299_p3 = por %p5298_p2, %p5297_p1 }
 0x2d9   :  { %4980 = vmatprep.subr.bf16.mxu1 %v5328_v0  ;;  %4972 = vmatprep.subr.bf16.mxu0 %v5328_v0 }
 0x2da   :  { %p5300_p4 = pnand %p5299_p3, %p5293_p0 }
 0x393   :  { %v5492_v39 = vpop.f32.mrf.mxu0  ;;  %v350_v40 = vpop.f32.mrf.mxu1 }
 0x394   :  { %v356_v41 = vadd.f32 %v350_v40, %v172_v38 }
 0x395   :  { %v4946_v42 = vpop.f32.mrf.mxu0  ;;  %v4954_v43 = vpop.f32.mrf.mxu1 }
 0x396   :  { %v4573_v44 = vmul.f32 -1.442695, %v356_v41  ;;  %v315_v42 = vadd.f32 %v5558_v36, %v5492_v39 }
 0x397   :  { %v312_v45 = vpop.f32.mrf.mxu0  ;;  %v353_v46 = vpop.f32.mrf.mxu1 }
 0x398   :  { %5050 = vpow2.f32 %v4573_v44 }
 0x399   :  { %v4947_v47 = vpop.f32.mrf.mxu0  ;;  %v4955_v48 = vpop.f32.mrf.mxu1 }
 0x3a5   :  { %v5051_v49 = vpop.eup %5050 }
 0x3a6   :  { %v360_v50 = vadd.f32 1.0, %v5051_v49 }
 0x3a8   :  { %5052 = vrcp.f32 %v360_v50 }
 0x3b5   :  { %v5053_v51 = vpop.eup %5052 }
 0x3b6   :  { %v363_v52 = vmul.f32 2.0, %v5053_v51  ;;  %v365_v56 = vmul.f32 %v5053_v51, %v249_v29  ;;  %v5533_v29 = vld [vmem:[%s6192_s5] sm:$0xff]  }
 0x3b8   :  { %v4574_v53 = vadd.f32 -1.0, %v363_v52 }
 0x3ba   :  { %367 = vrot.lane.b32.xlu0 %v4574_v53, %s5331_s3 }
 0x42c   :  { %v368_v54 = vpop.permute.xlu0 %367 }
 0x42d   :  { %v370_v55 = vmul.f32 %v5053_v51, %v368_v54 }
 0x42f   :  { %372 = vrot.lane.b32.xlu1 %v370_v55, %s5332_s26 }
 0x4a1   :  { %v373_v57 = vpop.permute.xlu1 %372 }
 0x4a2   :  { %v375_v58 = vadd.f32 %v373_v57, %v365_v56 }
 0x4a4   :  { %5054 = vtanh.f32 %v375_v58 }
 0x4b1   :  { %v5055_v59 = vpop.eup %5054 }
 0x4b2   :  { %378 = vrot.lane.b32.xlu0 %v5055_v59, %s5331_s3 }
 0x524   :  { %v379_v60 = vpop.permute.xlu0 %378 }
 0x525   :  { %v381_v61 = vmul.f32 %v5053_v51, %v379_v60 }
 0x527   :  { %v382_v62 = vpack.c.bf16 %v381_v61, %v381_v61 }
 0x529   :  { %384 = vrot.lane.b32.xlu1 %v382_v62, %s5332_s26 }
 0x59b   :  { %v385_v63 = vpop.permute.xlu1 %384 }
 0x59c   :  { %4961 = vmatmul.mubr.msk.bf16.vlgmr.msra.gmra.mxu0 %vm86_vm2, %v385_v63  ;;  %4969 = vmatmul.mubr.msk.bf16.vlgmr.msra.gmra.mxu1 %vm86_vm2, %v385_v63 }
 0x59d   :  { %4981 = vmatpush3.bf16.msra.mxu1 %v5404_v2  ;;  %4973 = vmatpush3.bf16.msra.mxu0 %v5448_v30 }
 0x59e   :  { %4982 = vmatprep.subr.bf16.mxu1 %v5328_v0  ;;  %4974 = vmatprep.subr.bf16.mxu0 %v5328_v0 }
 0x59f   :  { %4984 = vmatprep.mubr.msk.bf16.mxu1 %vm5329_vm0, %v5328_v0  ;;  %4976 = vmatprep.mubr.msk.bf16.mxu0 %vm5329_vm0, %v5328_v0 }
 0x5a1   :  { %4983 = vmatpush3.bf16.msra.mxu1 %v5417_v5  ;;  %4975 = vmatpush3.bf16.msra.mxu0 %v5454_v31 }
 0x5a2   :  { %4996 = vmatprep.subr.bf16.mxu1 %v5328_v0  ;;  %4988 = vmatprep.subr.bf16.mxu0 %v5328_v0 }
 0x65c   :  { %v5512_v1 = vpop.f32.mrf.mxu0  ;;  %v464_v2 = vpop.f32.mrf.mxu1 }
 0x65d   :  { %v470_v3 = vadd.f32 %v464_v2, %v5437_v9 }
 0x65e   :  { %v4962_v4 = vpop.f32.mrf.mxu0  ;;  %v4970_v7 = vpop.f32.mrf.mxu1 }
 0x65f   :  { %v4577_v8 = vmul.f32 -1.442695, %v470_v3 }
 0x660   :  { %v426_v10 = vpop.f32.mrf.mxu0  ;;  %v467_v11 = vpop.f32.mrf.mxu1 }
 0x661   :  { %5056 = vpow2.f32 %v4577_v8 }
 0x662   :  { %v4963_v12 = vpop.f32.mrf.mxu0  ;;  %v4971_v13 = vpop.f32.mrf.mxu1 }
 0x66e   :  { %v5057_v5 = vpop.eup %5056 }
 0x66f   :  { %v474_v14 = vadd.f32 1.0, %v5057_v5 }
 0x671   :  { %5058 = vrcp.f32 %v474_v14 }
 0x67e   :  { %v5059_v16 = vpop.eup %5058 }
 0x67f   :  { %v477_v17 = vmul.f32 2.0, %v5059_v16  ;;  %v479_v9 = vmul.f32 %v5059_v16, %v375_v58 }
 0x681   :  { %v4578_v18 = vadd.f32 -1.0, %v477_v17 }
 0x683   :  { %481 = vrot.lane.b32.xlu0 %v4578_v18, %s5331_s3 }
 0x6f5   :  { %v482_v19 = vpop.permute.xlu0 %481 }
 0x6f6   :  { %v484_v20 = vmul.f32 %v5059_v16, %v482_v19 }
 0x6f8   :  { %486 = vrot.lane.b32.xlu1 %v484_v20, %s5332_s26 }
 0x76a   :  { %v487_v21 = vpop.permute.xlu1 %486 }
 0x76b   :  { %v5517_v22 = vadd.f32 %v487_v21, %v479_v9  ;;  %v429_v21 = vadd.f32 %v5558_v36, %v5512_v1 }
 0x76d   :  { %5060 = vtanh.f32 %v5517_v22 }
 0x77a   :  { %v5061_v23 = vpop.eup %5060 }
 0x77b   :  { %492 = vrot.lane.b32.xlu0 %v5061_v23, %s5331_s3 }
 0x7ed   :  { %v493_v24 = vpop.permute.xlu0 %492 }
 0x7ee   :  { %v495_v25 = vmul.f32 %v5059_v16, %v493_v24 }
 0x7f0   :  { %v496_v26 = vpack.c.bf16 %v495_v25, %v495_v25 }
 0x7f2   :  { %498 = vrot.lane.b32.xlu1 %v496_v26, %s5332_s26 }
 0x864   :  { %v499_v28 = vpop.permute.xlu1 %498 }
 0x865   :  { %4977 = vmatmul.mubr.msk.bf16.vlgmr.msra.gmra.mxu0 %vm86_vm2, %v499_v28  ;;  %4985 = vmatmul.mubr.msk.bf16.vlgmr.msra.gmra.mxu1 %vm86_vm2, %v499_v28 }
 0x866   :  { %4997 = vmatpush3.bf16.msra.mxu1 %v5525_v27  ;;  %5000 = vmatprep.mubr.msk.bf16.mxu1 %vm5329_vm0, %v5328_v0 }
 0x867   :  { %4998 = vmatprep.subr.bf16.mxu1 %v5328_v0  ;;  %4989 = vmatpush3.bf16.msra.mxu0 %v5448_v30 }
 0x868   :  { %4990 = vmatprep.subr.bf16.mxu0 %v5328_v0  ;;  %4992 = vmatprep.mubr.msk.bf16.mxu0 %vm5329_vm0, %v5328_v0 }
 0x86a   :  { %4999 = vmatpush3.bf16.msra.mxu1 %v5533_v29 }
 0x86b   :  { %4991 = vmatpush3.bf16.msra.mxu0 %v5454_v31  ;;  %5012 = vmatprep.subr.bf16.mxu1 %v5328_v0 }
 0x86c   :  { %5004 = vmatprep.subr.bf16.mxu0 %v5328_v0 }
 0x86d   :  { %5001 = vmatmul.mubr.bf16.vlgmr.msra.gmra.mxu1 %v5330_v6 }
 0x86e   :  { %5013 = vmatpush3.bf16.msra.mxu1 %v5525_v27  ;;  %5016 = vmatprep.mubr.msk.bf16.mxu1 %vm5329_vm0, %v5328_v0 }
 0x86f   :  { %5014 = vmatprep.subr.bf16.mxu1 %v5328_v0 }
 0x872   :  { %5015 = vmatpush3.bf16.msra.mxu1 %v5533_v29 }
 0x925   :  { %v5552_v30 = vpop.f32.mrf.mxu0  ;;  %v578_v32 = vpop.f32.mrf.mxu1 }
 0x926   :  { %v584_v31 = vadd.f32 %v578_v32, %v5441_v15 }
 0x927   :  { %v4978_v33 = vpop.f32.mrf.mxu0  ;;  %v4986_v34 = vpop.f32.mrf.mxu1 }
 0x928   :  { %v4581_v35 = vmul.f32 -1.442695, %v584_v31 }
 0x929   :  { %v540_v37 = vpop.f32.mrf.mxu0  ;;  %v581_v38 = vpop.f32.mrf.mxu1 }
 0x92a   :  { %5062 = vpow2.f32 %v4581_v35 }
 0x92b   :  { %v4979_v40 = vpop.f32.mrf.mxu0  ;;  %v4987_v41 = vpop.f32.mrf.mxu1 }
 0x92d   :  { %v704_v43 = vpop.f32.mrf.mxu1 }
 0x92e   :  { %v710_v44 = vadd.f32 %v704_v43, %v315_v42 }
 0x92f   :  { %v5002_v45 = vpop.f32.mrf.mxu1 }
 0x930   :  { %v4586_v15 = vmul.f32 -1.442695, %v710_v44  ;;  %v543_v44 = vadd.f32 %v5558_v36, %v5552_v30 }
 0x931   :  { %v707_v46 = vpop.f32.mrf.mxu1 }
 0x932   :  { %5064 = vpow2.f32 %v4586_v15 }
 0x933   :  { %v5003_v47 = vpop.f32.mrf.mxu1 }
 0x937   :  { %v5063_v48 = vpop.eup %5062 }
 0x938   :  { %v588_v49 = vadd.f32 1.0, %v5063_v48 }
 0x93a   :  { %5066 = vrcp.f32 %v588_v49 }
 0x93f   :  { %v5065_v50 = vpop.eup %5064 }
 0x940   :  { %v714_v51 = vadd.f32 1.0, %v5065_v50 }
 0x942   :  { %5068 = vrcp.f32 %v714_v51 }
 0x947   :  { %v5067_v52 = vpop.eup %5066 }
 0x948   :  { %v591_v53 = vmul.f32 2.0, %v5067_v52  ;;  %v593_v61 = vmul.f32 %v5067_v52, %v5517_v22 }
 0x94a   :  { %v4582_v54 = vadd.f32 -1.0, %v591_v53 }
 0x94c   :  { %595 = vrot.lane.b32.xlu0 %v4582_v54, %s5331_s3 }
 0x94f   :  { %v5069_v55 = vpop.eup %5068 }
 0x950   :  { %v717_v39 = vmul.f32 2.0, %v5069_v55  ;;  %v719_v2 = vmul.f32 0.0, %v5069_v55 }
 0x952   :  { %v4587_v56 = vadd.f32 -1.0, %v717_v39 }
 0x954   :  { %721 = vrot.lane.b32.xlu1 %v4587_v56, %s5331_s3 }
 0x9be   :  { %v596_v57 = vpop.permute.xlu0 %595 }
 0x9bf   :  { %v598_v58 = vmul.f32 %v5067_v52, %v596_v57 }
 0x9c1   :  { %600 = vrot.lane.b32.xlu0 %v598_v58, %s5332_s26 }
 0x9c6   :  { %v722_v59 = vpop.permute.xlu1 %721 }
 0x9c7   :  { %v724_v60 = vmul.f32 %v5069_v55, %v722_v59 }
 0x9c9   :  { %726 = vrot.lane.b32.xlu1 %v724_v60, %s5332_s26 }
 0xa33   :  { %v601_v62 = vpop.permute.xlu0 %600 }
 0xa34   :  { %v603_v63 = vadd.f32 %v601_v62, %v593_v61 }
 0xa36   :  { %5070 = vtanh.f32 %v603_v63 }
 0xa3b   :  { %v727_v3 = vpop.permute.xlu1 %726 }
 0xa3c   :  { %v729_v4 = vadd.f32 %v727_v3, %v719_v2 }
 0xa3e   :  { %5072 = vtanh.f32 %v729_v4 }
 0xa43   :  { %v5071_v7 = vpop.eup %5070 }
 0xa44   :  { %606 = vrot.lane.b32.xlu0 %v5071_v7, %s5331_s3 }
 0xa4b   :  { %v5073_v8 = vpop.eup %5072 }
 0xa4c   :  { %732 = vrot.lane.b32.xlu1 %v5073_v8, %s5331_s3 }
 0xab6   :  { %v607_v10 = vpop.permute.xlu0 %606 }
 0xab7   :  { %v609_v11 = vmul.f32 %v5067_v52, %v607_v10 }
 0xab9   :  { %v610_v12 = vpack.c.bf16 %v609_v11, %v609_v11 }
 0xabb   :  { %612 = vrot.lane.b32.xlu0 %v610_v12, %s5332_s26 }
 0xabe   :  { %v733_v13 = vpop.permute.xlu1 %732 }
 0xabf   :  { %v5570_v5 = vmul.f32 %v5069_v55, %v733_v13 }
 0xac1   :  { %v736_v14 = vpack.c.bf16 %v5570_v5, %v5570_v5 }
 0xac3   :  { %743 = vrot.lane.b32.xlu1 %v736_v14, %s5332_s26 }
 0xb2d   :  { %v613_v16 = vpop.permute.xlu0 %612 }
 0xb2e   :  { %4993 = vmatmul.mubr.msk.bf16.vlgmr.msra.gmra.mxu0 %vm86_vm2, %v613_v16 }
 0xb2f   :  { %5005 = vmatpush3.bf16.msra.mxu0 %v5525_v27  ;;  %5008 = vmatprep.mubr.msk.bf16.mxu0 %vm5329_vm0, %v5328_v0 }
 0xb30   :  { %5006 = vmatprep.subr.bf16.mxu0 %v5328_v0 }
 0xb33   :  { %5007 = vmatpush3.bf16.msra.mxu0 %v5533_v29 }
 0xb34   :  { %5020 = vmatprep.subr.bf16.mxu0 %v5328_v0 }
 0xb35   :  { %v744_v17 = vpop.permute.xlu1 %743 }
 0xb36   :  { %5009 = vmatmul.mubr.msk.bf16.vlgmr.msra.gmra.mxu0 %vm86_vm2, %v744_v17 }
 0xb37   :  { %5021 = vmatpush3.bf16.msra.mxu0 %v5525_v27  ;;  %5024 = vmatprep.mubr.msk.bf16.mxu0 %vm5329_vm0, %v5328_v0 }
 0xb38   :  { %5022 = vmatprep.subr.bf16.mxu0 %v5328_v0 }
 0xb3b   :  { %5023 = vmatpush3.bf16.msra.mxu0 %v5533_v29 }
 0xbee   :  { %v5588_v18 = vpop.f32.mrf.mxu0 }
 0xbef   :  { %v657_v63 = vadd.f32 %v5558_v36, %v5588_v18 }
 0xbf0   :  { %v4994_v19 = vpop.f32.mrf.mxu0 }
 0xbf2   :  { %v654_v20 = vpop.f32.mrf.mxu0 }
 0xbf4   :  { %v4995_v9 = vpop.f32.mrf.mxu0 }
 0xbf6   :  { %v782_v22 = vpop.f32.mrf.mxu0 }
 0xbf7   :  { %v788_v23 = vadd.f32 %v782_v22, %v429_v21 }
 0xbf8   :  { %v5010_v24 = vpop.f32.mrf.mxu0 }
 0xbf9   :  { %v4589_v25 = vmul.f32 -1.442695, %v788_v23 }
 0xbfa   :  { %v785_v26 = vpop.f32.mrf.mxu0 }
 0xbfb   :  { %5074 = vpow2.f32 %v4589_v25 }
 0xbfc   :  { %v5011_v27 = vpop.f32.mrf.mxu0 }
 0xc08   :  { %v5075_v28 = vpop.eup %5074 }
 0xc09   :  { %v792_v32 = vadd.f32 1.0, %v5075_v28 }
 0xc0b   :  { %5076 = vrcp.f32 %v792_v32 }
 0xc18   :  { %v5077_v0 = vpop.eup %5076 }
 0xc19   :  { %v795_v29 = vmul.f32 2.0, %v5077_v0  ;;  %v797_v1 = vmul.f32 %v5077_v0, %v729_v4 }
 0xc1b   :  { %v4590_v31 = vadd.f32 -1.0, %v795_v29 }
 0xc1d   :  { %799 = vrot.lane.b32.xlu0 %v4590_v31, %s5331_s3 }
 0xc8f   :  { %v800_v33 = vpop.permute.xlu0 %799 }
 0xc90   :  { %v802_v34 = vmul.f32 %v5077_v0, %v800_v33 }
 0xc92   :  { %804 = vrot.lane.b32.xlu1 %v802_v34, %s5332_s26 }
 0xd04   :  { %v805_v35 = vpop.permute.xlu1 %804 }
 0xd05   :  { %v807_v37 = vadd.f32 %v805_v35, %v797_v1 }
 0xd07   :  { %5078 = vtanh.f32 %v807_v37 }
 0xd14   :  { %v5079_v38 = vpop.eup %5078 }
 0xd15   :  { %810 = vrot.lane.b32.xlu0 %v5079_v38, %s5331_s3 }
 0xd87   :  { %v811_v40 = vpop.permute.xlu0 %810 }
 0xd88   :  { %v5595_v41 = vmul.f32 %v5077_v0, %v811_v40 }
 0xd8a   :  { %v814_v42 = vpack.c.bf16 %v5595_v41, %v5595_v41 }
 0xd8c   :  { %822 = vrot.lane.b32.xlu1 %v814_v42, %s5332_s26 }
 0xdfe   :  { %v823_v43 = vpop.permute.xlu1 %822 }
 0xdff   :  { %5017 = vmatmul.mubr.msk.bf16.vlgmr.msra.gmra.mxu1 %vm86_vm2, %v823_v43 }
 0xebf   :  { %v861_v45 = vpop.f32.mrf.mxu1 }
 0xec0   :  { %v867_v15 = vadd.f32 %v861_v45, %v543_v44 }
 0xec1   :  { %v5018_v46 = vpop.f32.mrf.mxu1 }
 0xec2   :  { %v4592_v47 = vmul.f32 -1.442695, %v867_v15 }
 0xec3   :  { %v864_v48 = vpop.f32.mrf.mxu1 }
 0xec4   :  { %5080 = vpow2.f32 %v4592_v47 }
 0xec5   :  { %v5019_v49 = vpop.f32.mrf.mxu1 }
 0xed1   :  { %v5081_v50 = vpop.eup %5080 }
 0xed2   :  { %v871_v51 = vadd.f32 1.0, %v5081_v50 }
 0xed4   :  { %5082 = vrcp.f32 %v871_v51 }
 0xee1   :  { %v5083_v52 = vpop.eup %5082 }
 0xee2   :  { %v874_v53 = vmul.f32 2.0, %v5083_v52  ;;  %v876_v30 = vmul.f32 %v5083_v52, %v807_v37 }
 0xee4   :  { %v4593_v54 = vadd.f32 -1.0, %v874_v53 }
 0xee6   :  { %878 = vrot.lane.b32.xlu0 %v4593_v54, %s5331_s3 }
 0xf58   :  { %v879_v55 = vpop.permute.xlu0 %878 }
 0xf59   :  { %v881_v39 = vmul.f32 %v5083_v52, %v879_v55 }
 0xf5b   :  { %883 = vrot.lane.b32.xlu1 %v881_v39, %s5332_s26 }
 0xfcd   :  { %v884_v56 = vpop.permute.xlu1 %883 }
 0xfce   :  { %v886_v57 = vadd.f32 %v884_v56, %v876_v30 }
 0xfd0   :  { %5084 = vtanh.f32 %v886_v57 }
 0xfdd   :  { %v5085_v58 = vpop.eup %5084 }
 0xfde   :  { %889 = vrot.lane.b32.xlu0 %v5085_v58, %s5331_s3 }
0x1050   :  { %v890_v59 = vpop.permute.xlu0 %889 }
0x1051   :  { %v892_v60 = vmul.f32 %v5083_v52, %v890_v59 }
0x1053   :  { %v893_v61 = vpack.c.bf16 %v892_v60, %v892_v60 }
0x1055   :  { %901 = vrot.lane.b32.xlu1 %v893_v61, %s5332_s26 }
0x10c7   :  { %v902_v62 = vpop.permute.xlu1 %901 }
0x10c8   :  { %5025 = vmatmul.mubr.msk.bf16.vlgmr.msra.gmra.mxu0 %vm86_vm2, %v902_v62 }
0x1188   :  { %v940_v2 = vpop.f32.mrf.mxu0 }
0x1189   :  { %v946_v3 = vadd.f32 %v940_v2, %v657_v63 }
0x118a   :  { %v5026_v4 = vpop.f32.mrf.mxu0 }
0x118b   :  { %v4595_v7 = vmul.f32 -1.442695, %v946_v3 }
0x118c   :  { %v943_v8 = vpop.f32.mrf.mxu0 }
0x118d   :  { %5086 = vpow2.f32 %v4595_v7 }
0x118e   :  { %v5027_v10 = vpop.f32.mrf.mxu0 }
0x119a   :  { %v5087_v11 = vpop.eup %5086 }
0x119b   :  { %v950_v12 = vadd.f32 1.0, %v5087_v11 }
0x119d   :  { %5088 = vrcp.f32 %v950_v12 }
0x11aa   :  { %v5089_v13 = vpop.eup %5088 }
0x11ab   :  { %v953_v14 = vmul.f32 2.0, %v5089_v13  ;;  %v955_v36 = vmul.f32 %v5089_v13, %v886_v57 }
0x11ad   :  { %v4596_v16 = vadd.f32 -1.0, %v953_v14 }
0x11af   :  { %957 = vrot.lane.b32.xlu0 %v4596_v16, %s5331_s3 }
0x1221   :  { %v958_v17 = vpop.permute.xlu0 %957 }
0x1222   :  { %v960_v19 = vmul.f32 %v5089_v13, %v958_v17 }
0x1224   :  { %962 = vrot.lane.b32.xlu1 %v960_v19, %s5332_s26 }
0x1228   :  { %738 = vrot.lane.b32.xlu1 %v5570_v5, %s5332_s26 }
0x122c   :  { %895 = vrot.lane.b32.xlu1 %v892_v60, %s5332_s26 }
0x1296   :  { %v963_v18 = vpop.permute.xlu1 %962 }
0x1297   :  { %v965_v20 = vadd.f32 %v963_v18, %v955_v36 }
0x1299   :  { %5090 = vtanh.f32 %v965_v20 }
0x129a   :  { %v739_v9 = vpop.permute.xlu1 %738 }
0x129b   :  { %741 = vst.msk [vmem:[#allocation5] sm:$0xff] %vm86_vm2, %v739_v9 }
0x129e   :  { %v896_v21 = vpop.permute.xlu1 %895 }
0x129f   :  { %899 = vst.msk [vmem:[#allocation5 + $0x10] sm:$0xff] %vm86_vm2, %v896_v21 }
0x12a0   :  { %5303 = shalt.err (!%p5300_p4)  }
0x12a1   :  { %45 = dma.hbm_to_vmem [thread:$0]  %s6196_s9, 16384, %s43_s16, [#allocation4] }
0x12a2   :  { %s5334_s20 = smov [#allocation3]  }
0x12a3   :  { %s54_s21 = sshll.u32 %s5334_s20, 4  ;;  %s55_s21 = int_to_ptr.vmem [resolvable:$true] %s54_s21 }
0x12a4   :  { %s5312_s22 = scalar_lea.vmem %s55_s21, 16384  ;;  %p5317_p6 = scmp.lt.s32.totalorder %s55_s21, %s55_s21 }
0x12a5   :  { %p5313_p5 = scmp.ne.s32.totalorder %s55_s21, %s5312_s22  ;;  %p5318_p7 = scmp.lt.s32.totalorder %s5312_s22, %s5312_s22 }
0x12a6   :  { %v5091_v5 = vpop.eup %5090 }
0x12a7   :  { %968 = vrot.lane.b32.xlu0 %v5091_v5, %s5331_s3  ;;  %p5319_p8 = por %p5318_p7, %p5317_p6 }
0x12a9   :  { %p5320_p9 = pnand %p5319_p8, %p5313_p5 }
0x12ab   :  { %816 = vrot.lane.b32.xlu0 %v5595_v41, %s5332_s26 }
0x12ac   :  { %5323 = shalt.err (!%p5320_p9)  }
0x12ad   :  { %57 = dma.hbm_to_vmem [thread:$0]  %s6198_s10, 16384, %s55_s21, [#allocation4 + $0x1] }
0x1319   :  { %v969_v22 = vpop.permute.xlu0 %968 }
0x131a   :  { %v971_v23 = vmul.f32 %v5089_v13, %v969_v22 }
0x131c   :  { %973 = vrot.lane.b32.xlu0 %v971_v23, %s5332_s26 }
0x131d   :  { %v817_v24 = vpop.permute.xlu0 %816 }
0x131e   :  { %820 = vst.msk [vmem:[#allocation5 + $0x8] sm:$0xff] %vm86_vm2, %v817_v24 }
0x138e   :  { %v974_v25 = vpop.permute.xlu0 %973 }
0x138f   :  { %977 = vst.msk [vmem:[#allocation5 + $0x18] sm:$0xff] %vm86_vm2, %v974_v25 }
0x1390   :  { %5324 = dma.done.wait [#allocation4], 16384 }
0x1391   :  { %5325 = vsyncadd [#allocation4], 4294950912 }
0x1392   :  { %5326 = dma.done.wait [#allocation4 + $0x1], 16384 }
0x1393   :  { %5327 = vsyncadd [#allocation4 + $0x1], 4294950912  ;;  %1205 = vmatprep.mubr.bf16.mxu1 %v5330_v6  ;;  %1246 = vmatprep.mubr.bf16.mxu0 %v5330_v6  ;;  %v1044_v26 = vld [vmem:[#allocation2 + $0xc0] sm:$0xff]  ;;  %v1045_v28 = vld [vmem:[#allocation2 + $0xc8] sm:$0xff]  ;;  %vm1069_vm3 = vcmask 1041409   ;;  %vm1072_vm4 = vcmask 1042434  }
0x1394   :  { %v1048_v27 = vld [vmem:[#allocation2 + $0xe0] sm:$0xff]  ;;  %v1049_v29 = vld [vmem:[#allocation2 + $0xe8] sm:$0xff]  ;;  %v5631_v40 = vld [vmem:[#allocation2 + $0xd0] sm:$0xff]  ;;  %vm1075_vm5 = vcmask 1043459   ;;  %vm1078_vm6 = vcmask 1044484   ;;  %vm1081_vm7 = vcmask 1045509  }
0x1395   :  { %v4606_v32 = vcombine.high %v1044_v26, %v1048_v27  ;;  %v4605_v0 = vcombine.low %v1044_v26, %v1048_v27  ;;  %v1036_v31 = vld [vmem:[#allocation2 + $0x80] sm:$0xff]  ;;  %v4608_v34 = vcombine.high %v1045_v28, %v1049_v29  ;;  %v4607_v1 = vcombine.low %v1045_v28, %v1049_v29  ;;  %v1037_v37 = vld [vmem:[#allocation2 + $0x88] sm:$0xff]  ;;  %v5633_v43 = vld [vmem:[#allocation2 + $0xf0] sm:$0xff] }
0x1396   :  { %v1040_v33 = vld [vmem:[#allocation2 + $0xa0] sm:$0xff]  ;;  %v1041_v38 = vld [vmem:[#allocation2 + $0xa8] sm:$0xff]  ;;  %v4610_v46 = vcombine.high %v5631_v40, %v5633_v43  ;;  %v1021_v47 = vld [vmem:[#allocation5 + $0x11] sm:$0x1]  ;;  %vm1084_vm8 = vcmask 1046534   ;;  %vm1087_vm9 = vcmask 1047559   ;;  %v4609_v26 = vcombine.low %v5631_v40, %v5633_v43 }
0x1397   :  { %v4598_v35 = vcombine.high %v1036_v31, %v1040_v33  ;;  %1185 = vmatprep.subr.bf16.mxu1 %v4606_v32  ;;  %v4597_v41 = vcombine.low %v1036_v31, %v1040_v33  ;;  %v4600_v42 = vcombine.high %v1037_v37, %v1041_v38  ;;  %v1019_v44 = vld [vmem:[#allocation5 + $0x1] sm:$0x1]  ;;  %v1020_v45 = vld [vmem:[#allocation5 + $0x9] sm:$0x1]  ;;  %1226 = vmatprep.subr.bf16.mxu0 %v4608_v34  ;;  %v1022_v48 = vld [vmem:[#allocation5 + $0x19] sm:$0x1] }
0x1398   :  { %1186 = vmatpush1.bf16.msra.mxu1 %v4605_v0  ;;  %v4599_v15 = vcombine.low %v1037_v37, %v1041_v38  ;;  %v1023_v49 = vld [vmem:[#allocation5 + $0x21] sm:$0x1]  ;;  %v1027_v50 = vpack.c.bf16 %v1019_v44, %v1019_v44  ;;  %1227 = vmatpush1.bf16.msra.mxu0 %v4607_v1  ;;  %v1024_v51 = vld [vmem:[#allocation5 + $0x29] sm:$0x1]  ;;  %v1025_v52 = vld [vmem:[#allocation5 + $0x31] sm:$0x1]  ;;  %v1028_v54 = vpack.c.bf16 %v1020_v45, %v1020_v45 }
0x1399   :  { %1187 = vmatprep.subr.bf16.mxu1 %v4598_v35  ;;  %v1026_v53 = vld [vmem:[#allocation5 + $0x39] sm:$0x1]  ;;  %v1029_v55 = vpack.c.bf16 %v1021_v47, %v1021_v47  ;;  %v1030_v39 = vpack.c.bf16 %v1022_v48, %v1022_v48  ;;  %1228 = vmatprep.subr.bf16.mxu0 %v4600_v42  ;;  %v1031_v30 = vpack.c.bf16 %v1023_v49, %v1023_v49  ;;  %v5644_v19 = vld [vmem:[#allocation2 + $0x90] sm:$0xff]  ;;  %v987_v23 = vld [vmem:[#allocation5] sm:$0x1] }
0x139a   :  { %v1032_v56 = vpack.c.bf16 %v1024_v51, %v1024_v51  ;;  %v1033_v57 = vpack.c.bf16 %v1025_v52, %v1025_v52  ;;  %v1034_v58 = vpack.c.bf16 %v1026_v53, %v1026_v53  ;;  %v1060_v59 = vunpack.c.l.b16 %v1027_v50  ;;  %v5637_v7 = vld [vmem:[#allocation2 + $0xd8] sm:$0xff]  ;;  %v5647_v9 = vld [vmem:[#allocation2 + $0xb0] sm:$0xff]  ;;  %v988_v24 = vld [vmem:[#allocation5 + $0x8] sm:$0x1] }
0x139b   :  { %v1061_v60 = vunpack.c.l.b16 %v1028_v54  ;;  %v1062_v61 = vunpack.c.l.b16 %v1029_v55  ;;  %v1063_v62 = vunpack.c.l.b16 %v1030_v39  ;;  %v1064_v63 = vunpack.c.l.b16 %v1031_v30  ;;  %v5639_v8 = vld [vmem:[#allocation2 + $0xf8] sm:$0xff]  ;;  %v989_v25 = vld [vmem:[#allocation5 + $0x10] sm:$0x1]  ;;  %v991_v32 = vld [vmem:[#allocation5 + $0x20] sm:$0x1] }
0x139c   :  { %1188 = vmatpush1.bf16.msra.mxu1 %v4597_v41  ;;  %v1065_v2 = vunpack.c.l.b16 %v1032_v56  ;;  %v1066_v3 = vunpack.c.l.b16 %v1033_v57  ;;  %v1067_v4 = vunpack.c.l.b16 %v1034_v58  ;;  %1229 = vmatpush1.bf16.msra.mxu0 %v4599_v15  ;;  %v4612_v17 = vcombine.high %v5637_v7, %v5639_v8  ;;  %v5649_v21 = vld [vmem:[#allocation2 + $0x98] sm:$0xff]  ;;  %v992_v0 = vld [vmem:[#allocation5 + $0x28] sm:$0x1]  ;;  %v993_v1 = vld [vmem:[#allocation5 + $0x30] sm:$0x1] }
0x139d   :  { %1267 = vmatprep.subr.bf16.mxu1 %v4610_v46  ;;  %v1068_v10 = vrot.slane %v1061_v60, 7  ;;  %v1071_v11 = vrot.slane %v1062_v61, 6  ;;  %v1074_v12 = vrot.slane %v1063_v62, 5  ;;  %v1077_v13 = vrot.slane %v1064_v63, 4  ;;  %v5651_v5 = vld [vmem:[#allocation2 + $0xb8] sm:$0xff]  ;;  %v5668_v46 = vld [vmem:[#allocation2 + $0x40] sm:$0xff] }
0x139e   :  { %v1080_v16 = vrot.slane %v1065_v2, 3  ;;  %v1083_v18 = vrot.slane %v1066_v3, 2  ;;  %v1086_v20 = vrot.slane %v1067_v4, 1  ;;  %1308 = vmatprep.subr.bf16.mxu0 %v4612_v17  ;;  %v990_v28 = vld [vmem:[#allocation5 + $0x18] sm:$0x1]  ;;  %v4611_v31 = vcombine.low %v5637_v7, %v5639_v8  ;;  %v5670_v50 = vld [vmem:[#allocation2 + $0x60] sm:$0xff] }
0x139f   :  { %v1070_v14 = vsel %vm1069_vm3, %v1068_v10, %v1060_v59  ;;  %v4602_v33 = vcombine.high %v5644_v19, %v5647_v9  ;;  %v4604_v34 = vcombine.high %v5649_v21, %v5651_v5  ;;  %v994_v35 = vld [vmem:[#allocation5 + $0x38] sm:$0x1]  ;;  %v995_v38 = vpack.c.bf16 %v987_v23, %v987_v23  ;;  %v5672_v51 = vld [vmem:[#allocation2 + $0x48] sm:$0xff]  ;;  %v5688_v3 = vld [vmem:[#allocation2] sm:$0xff] }
0x13a0   :  { %v1073_v36 = vsel %vm1072_vm4, %v1071_v11, %v1070_v14  ;;  %v996_v40 = vpack.c.bf16 %v988_v24, %v988_v24  ;;  %v997_v41 = vpack.c.bf16 %v989_v25, %v989_v25  ;;  %v998_v43 = vpack.c.bf16 %v990_v28, %v990_v28  ;;  %v5674_v52 = vld [vmem:[#allocation2 + $0x68] sm:$0xff]  ;;  %v5690_v4 = vld [vmem:[#allocation2 + $0x20] sm:$0xff]  ;;  %v5701_v14 = vld [vmem:[#allocation2 + $0x50] sm:$0xff] }
0x13a1   :  { %v1076_v22 = vsel %vm1075_vm5, %v1074_v12, %v1073_v36  ;;  %v999_v44 = vpack.c.bf16 %v991_v32, %v991_v32  ;;  %v1000_v45 = vpack.c.bf16 %v992_v0, %v992_v0  ;;  %v1001_v47 = vpack.c.bf16 %v993_v1, %v993_v1  ;;  %v5694_v8 = vld [vmem:[#allocation2 + $0x8] sm:$0xff]  ;;  %v1615_v25 = vld [vmem:[#allocation5 + $0x2] sm:$0x1] }
0x13a2   :  { %v1079_v27 = vsel %vm1078_vm6, %v1077_v13, %v1076_v22  ;;  %v1002_v48 = vpack.c.bf16 %v994_v35, %v994_v35  ;;  %v1345_v49 = vunpack.c.l.b16 %v995_v38  ;;  %v1346_v53 = vunpack.c.l.b16 %v996_v40  ;;  %v5696_v10 = vld [vmem:[#allocation2 + $0x28] sm:$0xff]  ;;  %v1619_v35 = vld [vmem:[#allocation5 + $0x22] sm:$0x1]  ;;  %v1621_v38 = vld [vmem:[#allocation5 + $0x32] sm:$0x1] }
0x13a3   :  { %v1082_v29 = vsel %vm1081_vm7, %v1080_v16, %v1079_v27  ;;  %v1347_v54 = vunpack.c.l.b16 %v997_v41  ;;  %v1348_v55 = vunpack.c.l.b16 %v998_v43  ;;  %v1349_v39 = vunpack.c.l.b16 %v999_v44  ;;  %v5703_v16 = vld [vmem:[#allocation2 + $0x70] sm:$0xff]  ;;  %v1622_v41 = vld [vmem:[#allocation5 + $0x3a] sm:$0x1] }
0x13a4   :  { %v1085_v37 = vsel %vm1084_vm8, %v1083_v18, %v1082_v29  ;;  %v4601_v30 = vcombine.low %v5644_v19, %v5647_v9  ;;  %v4603_v56 = vcombine.low %v5649_v21, %v5651_v5  ;;  %v1350_v57 = vunpack.c.l.b16 %v1000_v45  ;;  %v5711_v21 = vld [vmem:[#allocation2 + $0x58] sm:$0xff]  ;;  %v1617_v29 = vld [vmem:[#allocation5 + $0x12] sm:$0x1] }
0x13a5   :  { %v1088_v42 = vsel %vm1087_vm9, %v1086_v20, %v1085_v37  ;;  %v1351_v58 = vunpack.c.l.b16 %v1001_v47  ;;  %v1352_v59 = vunpack.c.l.b16 %v1002_v48  ;;  %v1353_v60 = vrot.slane %v1346_v53, 7  ;;  %v5713_v5 = vld [vmem:[#allocation2 + $0x78] sm:$0xff]  ;;  %v1620_v37 = vld [vmem:[#allocation5 + $0x2a] sm:$0x1]  ;;  %v5739_v45 = vld [vmem:[#allocation2 + $0x10] sm:$0xff] }
0x13a6   :  { %v5666_v15 = vpack.c.b16 %v1088_v42, %v1088_v42  ;;  %v1355_v61 = vrot.slane %v1347_v54, 6  ;;  %v1357_v62 = vrot.slane %v1348_v55, 5  ;;  %v4626_v63 = vcombine.high %v5668_v46, %v5670_v50  ;;  %v1006_v48 = vld [vmem:[#allocation2 + $0x18] sm:$0xff] }
0x13a7   :  { %v4628_v2 = vcombine.high %v5672_v51, %v5674_v52  ;;  %v1359_v7 = vrot.slane %v1349_v39, 4  ;;  %v1354_v11 = vsel %vm1069_vm3, %v1353_v60, %v1345_v49  ;;  %v1361_v12 = vrot.slane %v1350_v57, 3  ;;  %v1010_v49 = vld [vmem:[#allocation2 + $0x38] sm:$0xff] }
0x13a8   :  { %4613 = vmatmul.mubr.msk.bf16.vlgmr.msra.gmra.mxu1 %vm86_vm2, %v5666_v15  ;;  %4614 = vmatmul.mubr.msk.bf16.vlgmr.msra.gmra.mxu0 %vm86_vm2, %v5666_v15  ;;  %v4625_v13 = vcombine.low %v5668_v46, %v5670_v50  ;;  %v1356_v17 = vsel %vm1072_vm4, %v1355_v61, %v1354_v11  ;;  %v1363_v19 = vrot.slane %v1351_v58, 2  ;;  %v4627_v36 = vcombine.low %v5672_v51, %v5674_v52  ;;  %v5747_v61 = vld [vmem:[#allocation2 + $0x140] sm:$0xff] }
0x13a9   :  { %1268 = vmatpush1.bf16.msra.mxu1 %v4609_v26  ;;  %1309 = vmatpush1.bf16.msra.mxu0 %v4611_v31  ;;  %v4617_v18 = vcombine.low %v5688_v3, %v5690_v4  ;;  %v1358_v20 = vsel %vm1075_vm5, %v1357_v62, %v1356_v17  ;;  %v1365_v9 = vrot.slane %v1352_v59, 1  ;;  %v4618_v22 = vcombine.high %v5688_v3, %v5690_v4  ;;  %v1616_v26 = vld [vmem:[#allocation5 + $0xa] sm:$0x1]  ;;  %v1618_v31 = vld [vmem:[#allocation5 + $0x1a] sm:$0x1]  ;;  %v1644_v3 = vld [vmem:[#allocation2 + $0x160] sm:$0xff] }
0x13aa   :  { %1269 = vmatprep.subr.bf16.mxu1 %v4602_v33  ;;  %1310 = vmatprep.subr.bf16.mxu0 %v4604_v34  ;;  %v4620_v23 = vcombine.high %v5694_v8, %v5696_v10  ;;  %v1360_v24 = vsel %vm1078_vm6, %v1359_v7, %v1358_v20  ;;  %v4619_v27 = vcombine.low %v5694_v8, %v5696_v10  ;;  %v1641_v4 = vld [vmem:[#allocation2 + $0x148] sm:$0xff]  ;;  %v5760_v20 = vld [vmem:[#allocation2 + $0x120] sm:$0xff] }
0x13ab   :  { %1287 = vmatprep.mubr.bf16.mxu1 %v5330_v6  ;;  %1328 = vmatprep.mubr.bf16.mxu0 %v5330_v6  ;;  %v4629_v28 = vcombine.low %v5701_v14, %v5703_v16  ;;  %v4630_v32 = vcombine.high %v5701_v14, %v5703_v16  ;;  %v1362_v0 = vsel %vm1081_vm7, %v1361_v12, %v1360_v24  ;;  %v1645_v7 = vld [vmem:[#allocation2 + $0x168] sm:$0xff]  ;;  %v1934_v24 = vld [vmem:[#allocation5 + $0x3] sm:$0x1] }
0x13ac   :  { %v1364_v33 = vsel %vm1084_vm8, %v1363_v19, %v1362_v0  ;;  %v4631_v34 = vcombine.low %v5711_v21, %v5713_v5  ;;  %v4632_v1 = vcombine.high %v5711_v21, %v5713_v5  ;;  %v1623_v42 = vpack.c.bf16 %v1615_v25, %v1615_v25  ;;  %v5765_v21 = vld [vmem:[#allocation2 + $0x108] sm:$0xff]  ;;  %v1937_v0 = vld [vmem:[#allocation5 + $0x1b] sm:$0x1] }
0x13ad   :  { %1270 = vmatpush1.bf16.msra.mxu1 %v4601_v30  ;;  %1311 = vmatpush1.bf16.msra.mxu0 %v4603_v56  ;;  %v1366_v40 = vsel %vm1087_vm9, %v1365_v9, %v1364_v33  ;;  %v1624_v43 = vpack.c.bf16 %v1616_v26, %v1616_v26  ;;  %v1625_v46 = vpack.c.bf16 %v1617_v29, %v1617_v29  ;;  %v1637_v5 = vld [vmem:[#allocation2 + $0x128] sm:$0xff] }
0x13ae   :  { %1463 = vmatprep.subr.bf16.mxu1 %v4626_v63  ;;  %1504 = vmatprep.subr.bf16.mxu0 %v4628_v2  ;;  %v5737_v44 = vpack.c.b16 %v1366_v40, %v1366_v40  ;;  %v1626_v47 = vpack.c.bf16 %v1618_v31, %v1618_v31  ;;  %v1627_v50 = vpack.c.bf16 %v1619_v35, %v1619_v35  ;;  %v1656_v53 = vunpack.c.l.b16 %v1623_v42  ;;  %v1940_v35 = vld [vmem:[#allocation5 + $0x33] sm:$0x1] }
0x13af   :  { %v1628_v51 = vpack.c.bf16 %v1620_v37, %v1620_v37  ;;  %v1629_v52 = vpack.c.bf16 %v1621_v38, %v1621_v38  ;;  %v1630_v54 = vpack.c.bf16 %v1622_v41, %v1622_v41  ;;  %v1657_v55 = vunpack.c.l.b16 %v1624_v43  ;;  %v1642_v40 = vld [vmem:[#allocation2 + $0x150] sm:$0xff] }
0x13b0   :  { %4615 = vmatmul.mubr.msk.bf16.vlgmr.msra.gmra.mxu1 %vm86_vm2, %v5666_v15  ;;  %4616 = vmatmul.mubr.msk.bf16.vlgmr.msra.gmra.mxu0 %vm86_vm2, %v5666_v15  ;;  %v5741_v15 = vld [vmem:[#allocation2 + $0x30] sm:$0xff]  ;;  %v1658_v39 = vunpack.c.l.b16 %v1625_v46  ;;  %v1659_v30 = vunpack.c.l.b16 %v1626_v47  ;;  %v1660_v57 = vunpack.c.l.b16 %v1627_v50  ;;  %v4624_v60 = vcombine.high %v1006_v48, %v1010_v49 }
0x13b1   :  { %1464 = vmatpush1.bf16.msra.mxu1 %v4625_v13  ;;  %1505 = vmatpush1.bf16.msra.mxu0 %v4627_v36  ;;  %v4622_v56 = vcombine.high %v5739_v45, %v5741_v15  ;;  %v1661_v58 = vunpack.c.l.b16 %v1628_v51  ;;  %v1662_v59 = vunpack.c.l.b16 %v1629_v52  ;;  %v1664_v62 = vrot.slane %v1657_v55, 7  ;;  %v1646_v42 = vld [vmem:[#allocation2 + $0x170] sm:$0xff] }
0x13b2   :  { %1465 = vmatprep.subr.bf16.mxu1 %v4618_v22  ;;  %1506 = vmatprep.subr.bf16.mxu0 %v4620_v23  ;;  %v1666_v63 = vrot.slane %v1658_v39, 6  ;;  %v1668_v2 = vrot.slane %v1659_v30, 5  ;;  %v1663_v8 = vunpack.c.l.b16 %v1630_v54  ;;  %v1670_v10 = vrot.slane %v1660_v57, 4  ;;  %v1941_v57 = vld [vmem:[#allocation5 + $0x3b] sm:$0x1] }
0x13b3   :  { %1483 = vmatprep.mubr.bf16.mxu1 %v5330_v6  ;;  %1524 = vmatprep.mubr.bf16.mxu0 %v5330_v6  ;;  %v1665_v11 = vsel %vm1069_vm3, %v1664_v62, %v1656_v53  ;;  %v1672_v12 = vrot.slane %v1661_v58, 3  ;;  %v4621_v13 = vcombine.low %v5739_v45, %v5741_v15  ;;  %v4623_v14 = vcombine.low %v1006_v48, %v1010_v49  ;;  %v1643_v45 = vld [vmem:[#allocation2 + $0x158] sm:$0xff] }
0x13b4   :  { %v1667_v16 = vsel %vm1072_vm4, %v1666_v63, %v1665_v11  ;;  %v1674_v17 = vrot.slane %v1662_v59, 2  ;;  %v4646_v19 = vcombine.high %v5747_v61, %v1644_v3  ;;  %v4648_v36 = vcombine.high %v1641_v4, %v1645_v7  ;;  %v1647_v15 = vld [vmem:[#allocation2 + $0x178] sm:$0xff] }
0x13b5   :  { %1466 = vmatpush1.bf16.msra.mxu1 %v4617_v18  ;;  %1507 = vmatpush1.bf16.msra.mxu0 %v4619_v27  ;;  %v5758_v18 = vld [vmem:[#allocation2 + $0x100] sm:$0xff]  ;;  %v1669_v9 = vsel %vm1075_vm5, %v1668_v2, %v1667_v16  ;;  %v1676_v23 = vrot.slane %v1663_v8, 1  ;;  %v4645_v25 = vcombine.low %v5747_v61, %v1644_v3  ;;  %v4647_v26 = vcombine.low %v1641_v4, %v1645_v7  ;;  %v1639_v61 = vld [vmem:[#allocation2 + $0x138] sm:$0xff] }
0x13b6   :  { %1545 = vmatprep.subr.bf16.mxu1 %v4630_v32  ;;  %1586 = vmatprep.subr.bf16.mxu0 %v4632_v1  ;;  %v1671_v22 = vsel %vm1078_vm6, %v1670_v10, %v1669_v9  ;;  %v1936_v32 = vld [vmem:[#allocation5 + $0x13] sm:$0x1]  ;;  %v4637_v29 = vcombine.low %v5758_v18, %v5760_v20  ;;  %v4638_v31 = vcombine.high %v5758_v18, %v5760_v20  ;;  %v1939_v1 = vld [vmem:[#allocation5 + $0x2b] sm:$0x1]  ;;  %v5790_v16 = vld [vmem:[#allocation2 + $0x1c0] sm:$0xff] }
0x13b7   :  { %v1673_v27 = vsel %vm1081_vm7, %v1672_v12, %v1671_v22  ;;  %v4639_v37 = vcombine.low %v5765_v21, %v1637_v5  ;;  %v4640_v38 = vcombine.high %v5765_v21, %v1637_v5  ;;  %v1942_v41 = vpack.c.bf16 %v1934_v24, %v1934_v24  ;;  %v1960_v18 = vld [vmem:[#allocation2 + $0x1c8] sm:$0xff]  ;;  %v5798_v21 = vld [vmem:[#allocation2 + $0x180] sm:$0xff] }
0x13b8   :  { %4633 = vmatmul.mubr.msk.bf16.vlgmr.msra.gmra.mxu1 %vm86_vm2, %v5737_v44  ;;  %4634 = vmatmul.mubr.msk.bf16.vlgmr.msra.gmra.mxu0 %vm86_vm2, %v5737_v44  ;;  %v1675_v33 = vsel %vm1084_vm8, %v1674_v17, %v1673_v27  ;;  %v1944_v47 = vpack.c.bf16 %v1936_v32, %v1936_v32  ;;  %v1945_v48 = vpack.c.bf16 %v1937_v0, %v1937_v0  ;;  %v1964_v20 = vld [vmem:[#allocation2 + $0x1e8] sm:$0xff]  ;;  %v2253_v22 = vld [vmem:[#allocation5 + $0x4] sm:$0x1]  ;;  %v2255_v32 = vld [vmem:[#allocation5 + $0x14] sm:$0x1] }
0x13b9   :  { %1546 = vmatpush1.bf16.msra.mxu1 %v4629_v28  ;;  %1587 = vmatpush1.bf16.msra.mxu0 %v4631_v34  ;;  %v1935_v28 = vld [vmem:[#allocation5 + $0xb] sm:$0x1]  ;;  %v1938_v34 = vld [vmem:[#allocation5 + $0x23] sm:$0x1]  ;;  %v1677_v43 = vsel %vm1087_vm9, %v1676_v23, %v1675_v33  ;;  %v1947_v50 = vpack.c.bf16 %v1939_v1, %v1939_v1  ;;  %v1948_v51 = vpack.c.bf16 %v1940_v35, %v1940_v35  ;;  %v1975_v52 = vunpack.c.l.b16 %v1942_v41  ;;  %v2254_v23 = vld [vmem:[#allocation5 + $0xc] sm:$0x1] }
0x13ba   :  { %1547 = vmatprep.subr.bf16.mxu1 %v4622_v56  ;;  %1588 = vmatprep.subr.bf16.mxu0 %v4624_v60  ;;  %v1943_v46 = vpack.c.bf16 %v1935_v28, %v1935_v28  ;;  %v1946_v49 = vpack.c.bf16 %v1938_v34, %v1938_v34  ;;  %v1977_v54 = vunpack.c.l.b16 %v1944_v47  ;;  %v1978_v55 = vunpack.c.l.b16 %v1945_v48  ;;  %v5782_v56 = vld [vmem:[#allocation2 + $0x110] sm:$0xff]  ;;  %v1635_v60 = vld [vmem:[#allocation2 + $0x118] sm:$0xff]  ;;  %v1952_v33 = vld [vmem:[#allocation2 + $0x188] sm:$0xff] }
0x13bb   :  { %1565 = vmatprep.mubr.bf16.mxu1 %v5330_v6  ;;  %1606 = vmatprep.mubr.bf16.mxu0 %v5330_v6  ;;  %v4650_v39 = vcombine.high %v1642_v40, %v1646_v42  ;;  %v4652_v30 = vcombine.high %v1643_v45, %v1647_v15  ;;  %v1980_v59 = vunpack.c.l.b16 %v1947_v50  ;;  %v4649_v3 = vcombine.low %v1642_v40, %v1646_v42  ;;  %v2256_v0 = vld [vmem:[#allocation5 + $0x1c] sm:$0x1]  ;;  %v1956_v34 = vld [vmem:[#allocation2 + $0x1a8] sm:$0xff]  ;;  %v2257_v35 = vld [vmem:[#allocation5 + $0x24] sm:$0x1] }
0x13bc   :  { %v1976_v53 = vunpack.c.l.b16 %v1943_v46  ;;  %v1979_v58 = vunpack.c.l.b16 %v1946_v49  ;;  %v1985_v63 = vrot.slane %v1977_v54, 6  ;;  %v1987_v2 = vrot.slane %v1978_v55, 5  ;;  %v2258_v42 = vld [vmem:[#allocation5 + $0x2c] sm:$0x1]  ;;  %v5812_v50 = vld [vmem:[#allocation2 + $0x1d0] sm:$0xff] }
0x13bd   :  { %1548 = vmatpush1.bf16.msra.mxu1 %v4621_v13  ;;  %1589 = vmatpush1.bf16.msra.mxu0 %v4623_v14  ;;  %v5786_v4 = vpack.c.b16 %v1677_v43, %v1677_v43  ;;  %v4651_v8 = vcombine.low %v1643_v45, %v1647_v15  ;;  %v1949_v10 = vpack.c.bf16 %v1941_v57, %v1941_v57  ;;  %v1981_v11 = vunpack.c.l.b16 %v1948_v51  ;;  %v5814_v51 = vld [vmem:[#allocation2 + $0x1f0] sm:$0xff] }
0x13be   :  { %1774 = vmatprep.subr.bf16.mxu1 %v4646_v19  ;;  %1815 = vmatprep.subr.bf16.mxu0 %v4648_v36  ;;  %v1983_v62 = vrot.slane %v1976_v53, 7  ;;  %v1989_v7 = vrot.slane %v1979_v58, 4  ;;  %v4644_v14 = vcombine.high %v1635_v60, %v1639_v61  ;;  %v1991_v19 = vrot.slane %v1980_v59, 3  ;;  %v1963_v36 = vld [vmem:[#allocation2 + $0x1e0] sm:$0xff] }
0x13bf   :  { %v1982_v27 = vunpack.c.l.b16 %v1949_v10  ;;  %v1993_v28 = vrot.slane %v1981_v11, 2  ;;  %v2261_v40 = vpack.c.bf16 %v2253_v22, %v2253_v22  ;;  %v2262_v43 = vpack.c.bf16 %v2254_v23, %v2254_v23  ;;  %v1957_v11 = vld [vmem:[#allocation2 + $0x1b0] sm:$0xff] }
0x13c0   :  { %4635 = vmatmul.mubr.msk.bf16.vlgmr.msra.gmra.mxu1 %vm86_vm2, %v5737_v44  ;;  %4636 = vmatmul.mubr.msk.bf16.vlgmr.msra.gmra.mxu0 %vm86_vm2, %v5737_v44  ;;  %v1638_v44 = vld [vmem:[#allocation2 + $0x130] sm:$0xff]  ;;  %v1984_v12 = vsel %vm1069_vm3, %v1983_v62, %v1975_v52  ;;  %v2263_v45 = vpack.c.bf16 %v2255_v32, %v2255_v32  ;;  %v2264_v15 = vpack.c.bf16 %v2256_v0, %v2256_v0  ;;  %v2575_v0 = vld [vmem:[#allocation5 + $0x1d] sm:$0x1] }
0x13c1   :  { %1775 = vmatpush1.bf16.msra.mxu1 %v4645_v25  ;;  %1816 = vmatpush1.bf16.msra.mxu0 %v4647_v26  ;;  %v4642_v13 = vcombine.high %v5782_v56, %v1638_v44  ;;  %v1986_v17 = vsel %vm1072_vm4, %v1985_v63, %v1984_v12  ;;  %v4641_v24 = vcombine.low %v5782_v56, %v1638_v44  ;;  %v5802_v26 = vld [vmem:[#allocation2 + $0x1a0] sm:$0xff]  ;;  %v1995_v48 = vrot.slane %v1982_v27, 1  ;;  %v2259_v56 = vld [vmem:[#allocation5 + $0x34] sm:$0x1]  ;;  %v1954_v12 = vld [vmem:[#allocation2 + $0x198] sm:$0xff] }
0x13c2   :  { %1776 = vmatprep.subr.bf16.mxu1 %v4638_v31  ;;  %1817 = vmatprep.subr.bf16.mxu0 %v4640_v38  ;;  %v1988_v9 = vsel %vm1075_vm5, %v1987_v2, %v1986_v17  ;;  %v4643_v25 = vcombine.low %v1635_v60, %v1639_v61  ;;  %v4668_v31 = vcombine.high %v1960_v18, %v1964_v20  ;;  %v2294_v52 = vunpack.c.l.b16 %v2261_v40  ;;  %v5853_v40 = vld [vmem:[#allocation2 + $0x220] sm:$0xff] }
0x13c3   :  { %1794 = vmatprep.mubr.bf16.mxu1 %v5330_v6  ;;  %1835 = vmatprep.mubr.bf16.mxu0 %v5330_v6  ;;  %v1990_v5 = vsel %vm1078_vm6, %v1989_v7, %v1988_v9  ;;  %v4667_v38 = vcombine.low %v1960_v18, %v1964_v20  ;;  %v4658_v41 = vcombine.high %v5798_v21, %v5802_v26  ;;  %v2295_v53 = vunpack.c.l.b16 %v2262_v43  ;;  %v5825_v7 = vld [vmem:[#allocation2 + $0x190] sm:$0xff]  ;;  %v5835_v20 = vld [vmem:[#allocation2 + $0x240] sm:$0xff] }
0x13c4   :  { %v1992_v1 = vsel %vm1081_vm7, %v1991_v19, %v1990_v5  ;;  %v4660_v46 = vcombine.high %v1952_v33, %v1956_v34  ;;  %v2265_v49 = vpack.c.bf16 %v2257_v35, %v2257_v35  ;;  %v2296_v54 = vunpack.c.l.b16 %v2263_v45  ;;  %v5837_v9 = vld [vmem:[#allocation2 + $0x260] sm:$0xff]  ;;  %v5841_v5 = vld [vmem:[#allocation2 + $0x268] sm:$0xff] }
0x13c5   :  { %1777 = vmatpush1.bf16.msra.mxu1 %v4637_v29  ;;  %1818 = vmatpush1.bf16.msra.mxu0 %v4639_v37  ;;  %v4666_v29 = vcombine.high %v5790_v16, %v1963_v36  ;;  %v4665_v37 = vcombine.low %v5790_v16, %v1963_v36  ;;  %v1994_v47 = vsel %vm1084_vm8, %v1993_v28, %v1992_v1  ;;  %v2297_v55 = vunpack.c.l.b16 %v2264_v15 }
0x13c6   :  { %1856 = vmatprep.subr.bf16.mxu1 %v4650_v39  ;;  %1897 = vmatprep.subr.bf16.mxu0 %v4652_v30  ;;  %v1962_v39 = vld [vmem:[#allocation2 + $0x1d8] sm:$0xff]  ;;  %v2266_v57 = vpack.c.bf16 %v2258_v42, %v2258_v42  ;;  %v4657_v58 = vcombine.low %v5798_v21, %v5802_v26  ;;  %v2298_v59 = vunpack.c.l.b16 %v2265_v49  ;;  %v2302_v44 = vrot.slane %v2295_v53, 7  ;;  %v5839_v21 = vld [vmem:[#allocation2 + $0x248] sm:$0xff]  ;;  %v2574_v26 = vld [vmem:[#allocation5 + $0x15] sm:$0x1] }
0x13c7   :  { %v1966_v30 = vld [vmem:[#allocation2 + $0x1f8] sm:$0xff]  ;;  %v2304_v60 = vrot.slane %v2296_v54, 6  ;;  %v4659_v61 = vcombine.low %v1952_v33, %v1956_v34  ;;  %v4670_v62 = vcombine.high %v5812_v50, %v5814_v51  ;;  %v1996_v63 = vsel %vm1087_vm9, %v1995_v48, %v1994_v47  ;;  %v2576_v33 = vld [vmem:[#allocation5 + $0x25] sm:$0x1]  ;;  %v5857_v42 = vld [vmem:[#allocation2 + $0x228] sm:$0xff] }
0x13c8   :  { %4653 = vmatmul.mubr.msk.bf16.vlgmr.msra.gmra.mxu1 %vm86_vm2, %v5786_v4  ;;  %4654 = vmatmul.mubr.msk.bf16.vlgmr.msra.gmra.mxu0 %vm86_vm2, %v5786_v4  ;;  %v2306_v2 = vrot.slane %v2297_v55, 5  ;;  %v2303_v10 = vsel %vm1069_vm3, %v2302_v44, %v2294_v52  ;;  %v4669_v17 = vcombine.low %v5812_v50, %v5814_v51  ;;  %v5833_v19 = vpack.c.b16 %v1996_v63, %v1996_v63  ;;  %v2577_v49 = vld [vmem:[#allocation5 + $0x2d] sm:$0x1]  ;;  %v5868_v55 = vld [vmem:[#allocation2 + $0x250] sm:$0xff] }
0x13c9   :  { %1857 = vmatpush1.bf16.msra.mxu1 %v4649_v3  ;;  %1898 = vmatpush1.bf16.msra.mxu0 %v4651_v8  ;;  %v4672_v3 = vcombine.high %v1962_v39, %v1966_v30  ;;  %v2267_v8 = vpack.c.bf16 %v2259_v56, %v2259_v56  ;;  %v2305_v16 = vsel %vm1072_vm4, %v2304_v60, %v2303_v10  ;;  %v2308_v36 = vrot.slane %v2298_v59, 4  ;;  %v5876_v59 = vld [vmem:[#allocation2 + $0x278] sm:$0xff]  ;;  %v2578_v44 = vld [vmem:[#allocation5 + $0x35] sm:$0x1] }
0x13ca   :  { %1858 = vmatprep.subr.bf16.mxu1 %v4642_v13  ;;  %1899 = vmatprep.subr.bf16.mxu0 %v4644_v14  ;;  %v1958_v13 = vld [vmem:[#allocation2 + $0x1b8] sm:$0xff]  ;;  %v2299_v14 = vunpack.c.l.b16 %v2266_v57  ;;  %v4671_v18 = vcombine.low %v1962_v39, %v1966_v30  ;;  %v2307_v23 = vsel %vm1075_vm5, %v2306_v2, %v2305_v16  ;;  %v4662_v27 = vcombine.high %v5825_v7, %v1957_v11  ;;  %v5870_v39 = vld [vmem:[#allocation2 + $0x270] sm:$0xff] }
0x13cb   :  { %1876 = vmatprep.mubr.bf16.mxu1 %v5330_v6  ;;  %1917 = vmatprep.mubr.bf16.mxu0 %v5330_v6  ;;  %v4664_v28 = vcombine.high %v1954_v12, %v1958_v13  ;;  %v2300_v32 = vunpack.c.l.b16 %v2267_v8  ;;  %v2309_v34 = vsel %vm1078_vm6, %v2308_v36, %v2307_v23  ;;  %v2582_v45 = vpack.c.bf16 %v2574_v26, %v2574_v26  ;;  %v5890_v10 = vld [vmem:[#allocation2 + $0x210] sm:$0xff]  ;;  %v5901_v36 = vld [vmem:[#allocation2 + $0x238] sm:$0xff]  ;;  %v2891_v23 = vld [vmem:[#allocation5 + $0x6] sm:$0x1] }
0x13cc   :  { %v2583_v15 = vpack.c.bf16 %v2575_v0, %v2575_v0  ;;  %v4688_v47 = vcombine.high %v5839_v21, %v5841_v5  ;;  %v4685_v54 = vcombine.low %v5835_v20, %v5837_v9  ;;  %v2584_v30 = vpack.c.bf16 %v2576_v33, %v2576_v33  ;;  %v5920_v33 = vld [vmem:[#allocation2 + $0x2c8] sm:$0xff] }
0x13cd   :  { %1859 = vmatpush1.bf16.msra.mxu1 %v4641_v24  ;;  %1900 = vmatpush1.bf16.msra.mxu0 %v4643_v25  ;;  %v2572_v24 = vld [vmem:[#allocation5 + $0x5] sm:$0x1]  ;;  %v2573_v25 = vld [vmem:[#allocation5 + $0xd] sm:$0x1]  ;;  %v2312_v48 = vrot.slane %v2300_v32, 2  ;;  %v2615_v53 = vunpack.c.l.b16 %v2582_v45  ;;  %v4687_v56 = vcombine.low %v5839_v21, %v5841_v5  ;;  %v4690_v16 = vcombine.high %v5868_v55, %v5870_v39 }
0x13ce   :  { %2093 = vmatprep.subr.bf16.mxu1 %v4666_v29  ;;  %2134 = vmatprep.subr.bf16.mxu0 %v4668_v31  ;;  %v4661_v29 = vcombine.low %v5825_v7, %v1957_v11  ;;  %v2310_v31 = vrot.slane %v2299_v14, 3  ;;  %v2580_v1 = vpack.c.bf16 %v2572_v24, %v2572_v24  ;;  %v2581_v35 = vpack.c.bf16 %v2573_v25, %v2573_v25  ;;  %v5892_v11 = vld [vmem:[#allocation2 + $0x230] sm:$0xff]  ;;  %v2894_v32 = vld [vmem:[#allocation5 + $0x1e] sm:$0x1] }
0x13cf   :  { %v2616_v60 = vunpack.c.l.b16 %v2583_v15  ;;  %v2585_v7 = vpack.c.bf16 %v2577_v49, %v2577_v49  ;;  %v2586_v5 = vpack.c.bf16 %v2578_v44, %v2578_v44  ;;  %v4689_v25 = vcombine.low %v5868_v55, %v5870_v39  ;;  %v5936_v49 = vld [vmem:[#allocation2 + $0x280] sm:$0xff] }
0x13d0   :  { %4655 = vmatmul.mubr.msk.bf16.vlgmr.msra.gmra.mxu1 %vm86_vm2, %v5786_v4  ;;  %4656 = vmatmul.mubr.msk.bf16.vlgmr.msra.gmra.mxu0 %vm86_vm2, %v5786_v4  ;;  %v2260_v4 = vld [vmem:[#allocation5 + $0x3c] sm:$0x1]  ;;  %v2311_v50 = vsel %vm1081_vm7, %v2310_v31, %v2309_v34  ;;  %v2613_v51 = vunpack.c.l.b16 %v2580_v1  ;;  %v2614_v52 = vunpack.c.l.b16 %v2581_v35  ;;  %v4682_v0 = vcombine.high %v5890_v10, %v5892_v11  ;;  %v5918_v31 = vld [vmem:[#allocation2 + $0x2e0] sm:$0xff]  ;;  %v5922_v34 = vld [vmem:[#allocation2 + $0x2e8] sm:$0xff] }
0x13d1   :  { %2094 = vmatpush1.bf16.msra.mxu1 %v4665_v37  ;;  %2135 = vmatpush1.bf16.msra.mxu0 %v4667_v38  ;;  %v2268_v22 = vpack.c.bf16 %v2260_v4, %v2260_v4  ;;  %v4663_v37 = vcombine.low %v1954_v12, %v1958_v13  ;;  %v5851_v38 = vld [vmem:[#allocation2 + $0x200] sm:$0xff]  ;;  %v2313_v2 = vsel %vm1084_vm8, %v2312_v48, %v2311_v50  ;;  %v2579_v12 = vld [vmem:[#allocation5 + $0x3d] sm:$0x1]  ;;  %v2617_v13 = vunpack.c.l.b16 %v2584_v30 }
0x13d2   :  { %2095 = vmatprep.subr.bf16.mxu1 %v4658_v41  ;;  %2136 = vmatprep.subr.bf16.mxu0 %v4660_v46  ;;  %v5855_v41 = vld [vmem:[#allocation2 + $0x208] sm:$0xff]  ;;  %v4686_v46 = vcombine.high %v5835_v20, %v5837_v9  ;;  %v4677_v8 = vcombine.low %v5851_v38, %v5853_v40  ;;  %v2893_v9 = vld [vmem:[#allocation5 + $0x16] sm:$0x1]  ;;  %v2618_v24 = vunpack.c.l.b16 %v2585_v7  ;;  %v2587_v1 = vpack.c.bf16 %v2579_v12, %v2579_v12  ;;  %v5938_v50 = vld [vmem:[#allocation2 + $0x2a0] sm:$0xff] }
0x13d3   :  { %2113 = vmatprep.mubr.bf16.mxu1 %v5330_v6  ;;  %2154 = vmatprep.mubr.bf16.mxu0 %v5330_v6  ;;  %v2301_v43 = vunpack.c.l.b16 %v2268_v22  ;;  %v4680_v63 = vcombine.high %v5855_v41, %v5857_v42  ;;  %v4679_v14 = vcombine.low %v5855_v41, %v5857_v42  ;;  %v2892_v20 = vld [vmem:[#allocation5 + $0xe] sm:$0x1]  ;;  %v2901_v41 = vpack.c.bf16 %v2893_v9, %v2893_v9  ;;  %v5959_v7 = vld [vmem:[#allocation2 + $0x2d8] sm:$0xff] }
0x13d4   :  { %v2629_v42 = vrot.slane %v2618_v24, 3  ;;  %v2899_v45 = vpack.c.bf16 %v2891_v23, %v2891_v23  ;;  %v4708_v39 = vcombine.high %v5920_v33, %v5922_v34  ;;  %v5982_v23 = vld [vmem:[#allocation2 + $0x2b0] sm:$0xff]  ;;  %v5984_v24 = vld [vmem:[#allocation2 + $0x298] sm:$0xff] }
0x13d5   :  { %2096 = vmatpush1.bf16.msra.mxu1 %v4657_v58  ;;  %2137 = vmatpush1.bf16.msra.mxu0 %v4659_v61  ;;  %v2314_v57 = vrot.slane %v2301_v43, 1  ;;  %v5874_v58 = vld [vmem:[#allocation2 + $0x258] sm:$0xff]  ;;  %v2621_v61 = vrot.slane %v2614_v52, 7  ;;  %v2895_v43 = vld [vmem:[#allocation5 + $0x26] sm:$0x1]  ;;  %v5942_v52 = vld [vmem:[#allocation2 + $0x2a8] sm:$0xff] }
0x13d6   :  { %2175 = vmatprep.subr.bf16.mxu1 %v4670_v62  ;;  %2216 = vmatprep.subr.bf16.mxu0 %v4672_v3  ;;  %v4678_v62 = vcombine.high %v5851_v38, %v5853_v40  ;;  %v2623_v3 = vrot.slane %v2615_v53, 6  ;;  %v4692_v21 = vcombine.high %v5874_v58, %v5876_v59  ;;  %v2619_v38 = vunpack.c.l.b16 %v2586_v5 }
0x13d7   :  { %v2622_v4 = vsel %vm1069_vm3, %v2621_v61, %v2613_v51  ;;  %v2900_v40 = vpack.c.bf16 %v2892_v20, %v2892_v20  ;;  %v5940_v51 = vld [vmem:[#allocation2 + $0x288] sm:$0xff]  ;;  %v2620_v53 = vunpack.c.l.b16 %v2587_v1  ;;  %v5953_v61 = vld [vmem:[#allocation2 + $0x2f0] sm:$0xff] }
0x13d8   :  { %4673 = vmatmul.mubr.msk.bf16.vlgmr.msra.gmra.mxu1 %vm86_vm2, %v5833_v19  ;;  %4674 = vmatmul.mubr.msk.bf16.vlgmr.msra.gmra.mxu0 %vm86_vm2, %v5833_v19  ;;  %v2624_v22 = vsel %vm1072_vm4, %v2623_v3, %v2622_v4  ;;  %v2631_v30 = vrot.slane %v2619_v38, 2  ;;  %v5961_v4 = vld [vmem:[#allocation2 + $0x2f8] sm:$0xff]  ;;  %v4700_v12 = vcombine.high %v5940_v51, %v5942_v52  ;;  %v4699_v9 = vcombine.low %v5940_v51, %v5942_v52 }
0x13d9   :  { %2176 = vmatpush1.bf16.msra.mxu1 %v4669_v17  ;;  %2217 = vmatpush1.bf16.msra.mxu0 %v4671_v18  ;;  %v2315_v17 = vsel %vm1087_vm9, %v2314_v57, %v2313_v2  ;;  %v2625_v18 = vrot.slane %v2616_v60, 5  ;;  %v5951_v60 = vld [vmem:[#allocation2 + $0x2d0] sm:$0xff]  ;;  %v4707_v2 = vcombine.low %v5920_v33, %v5922_v34  ;;  %v2633_v3 = vrot.slane %v2620_v53, 1 }
0x13da   :  { %2177 = vmatprep.subr.bf16.mxu1 %v4662_v27  ;;  %2218 = vmatprep.subr.bf16.mxu0 %v4664_v28  ;;  %v5910_v26 = vpack.c.b16 %v2315_v17, %v2315_v17  ;;  %v4691_v27 = vcombine.low %v5874_v58, %v5876_v59  ;;  %v2627_v28 = vrot.slane %v2617_v13, 4  ;;  %v2896_v58 = vld [vmem:[#allocation5 + $0x2e] sm:$0x1]  ;;  %v2932_v59 = vunpack.c.l.b16 %v2899_v45 }
0x13db   :  { %2195 = vmatprep.mubr.bf16.mxu1 %v5330_v6  ;;  %2236 = vmatprep.mubr.bf16.mxu0 %v5330_v6  ;;  %v2626_v35 = vsel %vm1075_vm5, %v2625_v18, %v2624_v22  ;;  %v2904_v17 = vpack.c.bf16 %v2896_v58, %v2896_v58  ;;  %v2898_v18 = vld [vmem:[#allocation5 + $0x3e] sm:$0x1]  ;;  %v5980_v22 = vld [vmem:[#allocation2 + $0x290] sm:$0xff]  ;;  %v4709_v34 = vcombine.low %v5951_v60, %v5953_v61  ;;  %v2913_v58 = vld [vmem:[#allocation2 + $0x328] sm:$0xff] }
0x13dc   :  { %v2628_v15 = vsel %vm1078_vm6, %v2627_v28, %v2626_v35  ;;  %v4712_v28 = vcombine.high %v5959_v7, %v5961_v4  ;;  %v4711_v38 = vcombine.low %v5959_v7, %v5961_v4  ;;  %v2906_v45 = vpack.c.bf16 %v2898_v18, %v2898_v18 }
0x13dd   :  { %2178 = vmatpush1.bf16.msra.mxu1 %v4661_v29  ;;  %2219 = vmatpush1.bf16.msra.mxu0 %v4663_v37  ;;  %v5916_v29 = vld [vmem:[#allocation2 + $0x2c0] sm:$0xff]  ;;  %v2630_v57 = vsel %vm1081_vm7, %v2629_v42, %v2628_v15  ;;  %v6003_v42 = vld [vmem:[#allocation2 + $0x348] sm:$0xff] }
0x13de   :  { %2412 = vmatprep.subr.bf16.mxu1 %v4686_v46  ;;  %2453 = vmatprep.subr.bf16.mxu0 %v4688_v47  ;;  %v2933_v46 = vunpack.c.l.b16 %v2900_v40  ;;  %v4681_v47 = vcombine.low %v5890_v10, %v5892_v11  ;;  %v4706_v55 = vcombine.high %v5916_v29, %v5918_v31  ;;  %v4698_v11 = vcombine.high %v5936_v49, %v5938_v50  ;;  %v5999_v40 = vld [vmem:[#allocation2 + $0x340] sm:$0xff] }
0x13df   :  { %v2632_v13 = vsel %vm1084_vm8, %v2631_v30, %v2630_v57  ;;  %v6021_v30 = vld [vmem:[#allocation2 + $0x300] sm:$0xff]  ;;  %v6025_v57 = vld [vmem:[#allocation2 + $0x308] sm:$0xff] }
0x13e0   :  { %4675 = vmatmul.mubr.msk.bf16.vlgmr.msra.gmra.mxu1 %vm86_vm2, %v5833_v19  ;;  %4676 = vmatmul.mubr.msk.bf16.vlgmr.msra.gmra.mxu0 %vm86_vm2, %v5833_v19  ;;  %v5899_v19 = vld [vmem:[#allocation2 + $0x218] sm:$0xff]  ;;  %v2940_v44 = vrot.slane %v2933_v46, 7  ;;  %v2634_v5 = vsel %vm1087_vm9, %v2633_v3, %v2632_v13  ;;  %v4702_v46 = vcombine.high %v5980_v22, %v5982_v23 }
0x13e1   :  { %2413 = vmatpush1.bf16.msra.mxu1 %v4685_v54  ;;  %2454 = vmatpush1.bf16.msra.mxu0 %v4687_v56  ;;  %v4684_v37 = vcombine.high %v5899_v19, %v5901_v36  ;;  %v4683_v48 = vcombine.low %v5899_v19, %v5901_v36  ;;  %v2902_v54 = vpack.c.bf16 %v2894_v32, %v2894_v32  ;;  %v2934_v56 = vunpack.c.l.b16 %v2901_v41  ;;  %v6001_v41 = vld [vmem:[#allocation2 + $0x360] sm:$0xff] }
0x13e2   :  { %2414 = vmatprep.subr.bf16.mxu1 %v4678_v62  ;;  %2455 = vmatprep.subr.bf16.mxu0 %v4680_v63  ;;  %v2903_v62 = vpack.c.bf16 %v2895_v43, %v2895_v43  ;;  %v4705_v63 = vcombine.low %v5916_v29, %v5918_v31  ;;  %v2941_v19 = vsel %vm1069_vm3, %v2940_v44, %v2932_v59  ;;  %v3210_v29 = vld [vmem:[#allocation5 + $0x7] sm:$0x1]  ;;  %v2937_v31 = vunpack.c.l.b16 %v2904_v17  ;;  %v6005_v43 = vld [vmem:[#allocation2 + $0x368] sm:$0xff]  ;;  %v2923_v17 = vld [vmem:[#allocation2 + $0x378] sm:$0xff] }
0x13e3   :  { %2432 = vmatprep.mubr.bf16.mxu1 %v5330_v6  ;;  %2473 = vmatprep.mubr.bf16.mxu0 %v5330_v6  ;;  %v2935_v10 = vunpack.c.l.b16 %v2902_v54  ;;  %v4697_v36 = vcombine.low %v5936_v49, %v5938_v50  ;;  %v5995_v1 = vpack.c.b16 %v2634_v5, %v2634_v5  ;;  %v3218_v51 = vpack.c.bf16 %v3210_v29, %v3210_v29  ;;  %v3214_v54 = vld [vmem:[#allocation5 + $0x27] sm:$0x1]  ;;  %v3217_v29 = vld [vmem:[#allocation5 + $0x3f] sm:$0x1] }
0x13e4   :  { %v2936_v20 = vunpack.c.l.b16 %v2903_v62  ;;  %v2948_v50 = vrot.slane %v2937_v31, 3  ;;  %v2939_v59 = vunpack.c.l.b16 %v2906_v45  ;;  %v4727_v13 = vcombine.low %v6003_v42, %v6005_v43 }
0x13e5   :  { %2415 = vmatpush1.bf16.msra.mxu1 %v4677_v8  ;;  %2456 = vmatpush1.bf16.msra.mxu0 %v4679_v14  ;;  %v2897_v8 = vld [vmem:[#allocation5 + $0x36] sm:$0x1]  ;;  %v2942_v14 = vrot.slane %v2934_v56, 6  ;;  %v6023_v56 = vld [vmem:[#allocation2 + $0x320] sm:$0xff]  ;;  %v3251_v7 = vunpack.c.l.b16 %v3218_v51  ;;  %v3240_v51 = vld [vmem:[#allocation2 + $0x3e8] sm:$0xff] }
0x13e6   :  { %2494 = vmatprep.subr.bf16.mxu1 %v4690_v16  ;;  %2535 = vmatprep.subr.bf16.mxu0 %v4692_v21  ;;  %v3211_v16 = vld [vmem:[#allocation5 + $0xf] sm:$0x1]  ;;  %v4710_v21 = vcombine.high %v5951_v60, %v5953_v61  ;;  %v2905_v32 = vpack.c.bf16 %v2897_v8, %v2897_v8  ;;  %v2946_v35 = vrot.slane %v2936_v20, 4  ;;  %v4726_v60 = vcombine.high %v5999_v40, %v6001_v41  ;;  %v6034_v8 = vld [vmem:[#allocation2 + $0x350] sm:$0xff] }
0x13e7   :  { %v3219_v33 = vpack.c.bf16 %v3211_v16, %v3211_v16  ;;  %v4728_v61 = vcombine.high %v6003_v42, %v6005_v43  ;;  %v2919_v16 = vld [vmem:[#allocation2 + $0x358] sm:$0xff]  ;;  %v4718_v18 = vcombine.high %v6021_v30, %v6023_v56  ;;  %v4720_v20 = vcombine.high %v6025_v57, %v2913_v58 }
0x13e8   :  { %4693 = vmatmul.mubr.msk.bf16.vlgmr.msra.gmra.mxu1 %vm86_vm2, %v5910_v26  ;;  %4694 = vmatmul.mubr.msk.bf16.vlgmr.msra.gmra.mxu0 %vm86_vm2, %v5910_v26  ;;  %v4731_v42 = vcombine.low %v2919_v16, %v2923_v17  ;;  %v3225_v43 = vpack.c.bf16 %v3217_v29, %v3217_v29  ;;  %v5100_v29 = vld [vmem:[#allocation3 + $0x64] ss:$8 sps:$4 sm:$0xff]  }
0x13e9   :  { %2495 = vmatpush1.bf16.msra.mxu1 %v4689_v25  ;;  %2536 = vmatpush1.bf16.msra.mxu0 %v4691_v27  ;;  %v5986_v25 = vld [vmem:[#allocation2 + $0x2b8] sm:$0xff]  ;;  %v3212_v27 = vld [vmem:[#allocation5 + $0x17] sm:$0x1]  ;;  %v3252_v52 = vunpack.c.l.b16 %v3219_v33 }
0x13ea   :  { %2496 = vmatprep.subr.bf16.mxu1 %v4682_v0  ;;  %2537 = vmatprep.subr.bf16.mxu0 %v4684_v37  ;;  %v2943_v0 = vsel %vm1072_vm4, %v2942_v14, %v2941_v19  ;;  %v3213_v37 = vld [vmem:[#allocation5 + $0x1f] sm:$0x1]  ;;  %v3220_v49 = vpack.c.bf16 %v3212_v27, %v3212_v27  ;;  %v2952_v14 = vrot.slane %v2939_v59, 1  ;;  %v3216_v19 = vld [vmem:[#allocation5 + $0x37] sm:$0x1]  ;;  %v3231_v59 = vld [vmem:[#allocation2 + $0x3a0] sm:$0xff] }
0x13eb   :  { %2514 = vmatprep.mubr.bf16.mxu1 %v5330_v6  ;;  %2555 = vmatprep.mubr.bf16.mxu0 %v5330_v6  ;;  %v3221_v44 = vpack.c.bf16 %v3213_v37, %v3213_v37  ;;  %v3259_v4 = vrot.slane %v3252_v52, 7  ;;  %v3224_v31 = vpack.c.bf16 %v3216_v19, %v3216_v19 }
0x13ed   :  { %2497 = vmatpush1.bf16.msra.mxu1 %v4681_v47  ;;  %2538 = vmatpush1.bf16.msra.mxu0 %v4683_v48  ;;  %v4704_v47 = vcombine.high %v5984_v24, %v5986_v25  ;;  %v2938_v48 = vunpack.c.l.b16 %v2905_v32  ;;  %v4732_v32 = vcombine.high %v2919_v16, %v2923_v17 }
0x13ee   :  { %2731 = vmatprep.subr.bf16.mxu1 %v4706_v55  ;;  %2772 = vmatprep.subr.bf16.mxu0 %v4708_v39  ;;  %v4701_v55 = vcombine.low %v5980_v22, %v5982_v23  ;;  %v4703_v39 = vcombine.low %v5984_v24, %v5986_v25  ;;  %v3260_v22 = vsel %vm1069_vm3, %v3259_v4, %v3251_v7 }
0x13ef   :  { %v2950_v62 = vrot.slane %v2938_v48, 2  ;;  %v4717_v23 = vcombine.low %v6021_v30, %v6023_v56  ;;  %v4719_v25 = vcombine.low %v6025_v57, %v2913_v58  ;;  %v3257_v48 = vunpack.c.l.b16 %v3224_v31  ;;  %v3227_v57 = vld [vmem:[#allocation2 + $0x380] sm:$0xff] }
0x13f0   :  { %4695 = vmatmul.mubr.msk.bf16.vlgmr.msra.gmra.mxu1 %vm86_vm2, %v5910_v26  ;;  %4696 = vmatmul.mubr.msk.bf16.vlgmr.msra.gmra.mxu0 %vm86_vm2, %v5910_v26  ;;  %v2944_v26 = vrot.slane %v2935_v10, 5  ;;  %v6036_v10 = vld [vmem:[#allocation2 + $0x370] sm:$0xff]  ;;  %v5103_v31 = vld [vmem:[#allocation3 + $0x164] ss:$8 sps:$4 sm:$0xff]  }
0x13f1   :  { %2732 = vmatpush1.bf16.msra.mxu1 %v4705_v63  ;;  %2773 = vmatpush1.bf16.msra.mxu0 %v4707_v2  ;;  %v3215_v63 = vld [vmem:[#allocation5 + $0x2f] sm:$0x1]  ;;  %v3253_v2 = vunpack.c.l.b16 %v3220_v49  ;;  %v3239_v49 = vld [vmem:[#allocation2 + $0x3e0] sm:$0xff]  ;;  %v3269_v58 = vrot.slane %v3257_v48, 2 }
0x13f2   :  { %2733 = vmatprep.subr.bf16.mxu1 %v4698_v11  ;;  %2774 = vmatprep.subr.bf16.mxu0 %v4700_v12  ;;  %v2945_v15 = vsel %vm1075_vm5, %v2944_v26, %v2943_v0  ;;  %v3222_v11 = vpack.c.bf16 %v3214_v54, %v3214_v54  ;;  %v4725_v12 = vcombine.low %v5999_v40, %v6001_v41  ;;  %v2910_v0 = vld [vmem:[#allocation2 + $0x310] sm:$0xff]  ;;  %v5127_v48 = vld [vmem:[#allocation3 + $0x124] ss:$8 sps:$4 sm:$0xff]  }
0x13f3   :  { %2751 = vmatprep.mubr.bf16.mxu1 %v5330_v6  ;;  %2792 = vmatprep.mubr.bf16.mxu0 %v5330_v6  ;;  %v2947_v53 = vsel %vm1078_vm6, %v2946_v35, %v2945_v15  ;;  %v3223_v5 = vpack.c.bf16 %v3215_v63, %v3215_v63  ;;  %v4730_v26 = vcombine.high %v6034_v8, %v6036_v10  ;;  %v2915_v35 = vld [vmem:[#allocation2 + $0x338] sm:$0xff] }
0x13f4   :  { %v2949_v3 = vsel %vm1081_vm7, %v2948_v50, %v2947_v53  ;;  %v3255_v24 = vunpack.c.l.b16 %v3222_v11  ;;  %v3236_v50 = vld [vmem:[#allocation2 + $0x3c8] sm:$0xff]  ;;  %v3238_v11 = vld [vmem:[#allocation2 + $0x3d8] sm:$0xff] }
0x13f5   :  { %2734 = vmatpush1.bf16.msra.mxu1 %v4697_v36  ;;  %2775 = vmatpush1.bf16.msra.mxu0 %v4699_v9  ;;  %v3254_v36 = vunpack.c.l.b16 %v3221_v44  ;;  %v2951_v9 = vsel %vm1084_vm8, %v2950_v62, %v2949_v3  ;;  %v3256_v37 = vunpack.c.l.b16 %v3223_v5  ;;  %v4748_v56 = vcombine.high %v3236_v50, %v3240_v51  ;;  %v3228_v44 = vld [vmem:[#allocation2 + $0x388] sm:$0xff] }
0x13f6   :  { %2813 = vmatprep.subr.bf16.mxu1 %v4710_v21  ;;  %2854 = vmatprep.subr.bf16.mxu0 %v4712_v28  ;;  %v3261_v21 = vrot.slane %v3253_v2, 6  ;;  %v2953_v27 = vsel %vm1087_vm9, %v2952_v14, %v2951_v9  ;;  %v3265_v41 = vrot.slane %v3255_v24, 4  ;;  %v4747_v63 = vcombine.low %v3236_v50, %v3240_v51  ;;  %v3234_v9 = vld [vmem:[#allocation2 + $0x3b8] sm:$0xff]  ;;  %v5125_v50 = vld [vmem:[#allocation3 + $0x120] ss:$8 sps:$4 sm:$0xff]  }
0x13f7   :  { %v3263_v28 = vrot.slane %v3254_v36, 5  ;;  %v2954_v40 = vpack.c.b16 %v2953_v27, %v2953_v27  ;;  %v3267_v52 = vrot.slane %v3256_v37, 3  ;;  %v4738_v3 = vcombine.high %v3227_v57, %v3231_v59  ;;  %v3229_v36 = vld [vmem:[#allocation2 + $0x390] sm:$0xff] }
0x13f8   :  { %4713 = vmatmul.mubr.msk.bf16.vlgmr.msra.gmra.mxu1 %vm86_vm2, %v5995_v1  ;;  %4714 = vmatmul.mubr.msk.bf16.vlgmr.msra.gmra.mxu0 %vm86_vm2, %v5995_v1  ;;  %v3262_v33 = vsel %vm1072_vm4, %v3261_v21, %v3260_v22  ;;  %v5094_v27 = vld [vmem:[#allocation3 + $0x74] ss:$8 sps:$4 sm:$0xff]   ;;  %v5107_v37 = vld [vmem:[#allocation3 + $0x150] ss:$8 sps:$4 sm:$0xff]  }
0x13f9   :  { %2814 = vmatpush1.bf16.msra.mxu1 %v4709_v34  ;;  %2855 = vmatpush1.bf16.msra.mxu0 %v4711_v38  ;;  %v2914_v34 = vld [vmem:[#allocation2 + $0x330] sm:$0xff]  ;;  %v4729_v38 = vcombine.low %v6034_v8, %v6036_v10  ;;  %v3264_v45 = vsel %vm1075_vm5, %v3263_v28, %v3262_v33  ;;  %v5098_v33 = vld [vmem:[#allocation3 + $0x60] ss:$8 sps:$4 sm:$0xff]  }
0x13fa   :  { %2815 = vmatprep.subr.bf16.mxu1 %v4702_v46  ;;  %2856 = vmatprep.subr.bf16.mxu0 %v4704_v47  ;;  %v4722_v15 = vcombine.high %v2910_v0, %v2914_v34  ;;  %v3235_v47 = vld [vmem:[#allocation2 + $0x3c0] sm:$0xff]  ;;  %v3266_v53 = vsel %vm1078_vm6, %v3265_v41, %v3264_v45  ;;  %v4721_v54 = vcombine.low %v2910_v0, %v2914_v34  ;;  %v3237_v8 = vld [vmem:[#allocation2 + $0x3d0] sm:$0xff] }
0x13fb   :  { %2833 = vmatprep.mubr.bf16.mxu1 %v5330_v6  ;;  %2874 = vmatprep.mubr.bf16.mxu0 %v5330_v6  ;;  %v4746_v30 = vcombine.high %v3235_v47, %v3239_v49  ;;  %v4745_v62 = vcombine.low %v3235_v47, %v3239_v49  ;;  %v3241_v10 = vld [vmem:[#allocation2 + $0x3f0] sm:$0xff]  ;;  %v5101_v34 = vld [vmem:[#allocation3 + $0x160] ss:$8 sps:$4 sm:$0xff]   ;;  %v5124_v47 = vld [vmem:[#allocation3 + $0x24] ss:$8 sps:$4 sm:$0xff]  }
0x13fc   :  { %v4750_v17 = vcombine.high %v3237_v8, %v3241_v10  ;;  %v4749_v5 = vcombine.low %v3237_v8, %v3241_v10  ;;  %v5097_v28 = vld [vmem:[#allocation3 + $0x174] ss:$8 sps:$4 sm:$0xff]   ;;  %v5095_v0 = vld [vmem:[#allocation3 + $0x170] ss:$8 sps:$4 sm:$0xff]   ;;  %v5110_v41 = vld [vmem:[#allocation3 + $0x40] ss:$8 sps:$4 sm:$0xff]  }
0x13fd   :  { %2816 = vmatpush1.bf16.msra.mxu1 %v4701_v55  ;;  %2857 = vmatpush1.bf16.msra.mxu0 %v4703_v39  ;;  %v3258_v39 = vunpack.c.l.b16 %v3225_v43  ;;  %v5118_v43 = vld [vmem:[#allocation3 + $0x34] ss:$8 sps:$4 sm:$0xff]   ;;  %v5122_v49 = vld [vmem:[#allocation3 + $0x20] ss:$8 sps:$4 sm:$0xff]   ;;  %v5160_v8 = vld [vmem:[#allocation3 + $0xc4] ss:$8 sps:$4 sm:$0xff]  }
0x13fe   :  { %3050 = vmatprep.subr.bf16.mxu1 %v4726_v60  ;;  %3091 = vmatprep.subr.bf16.mxu0 %v4728_v61  ;;  %v3232_v60 = vld [vmem:[#allocation2 + $0x3a8] sm:$0xff]  ;;  %v3268_v61 = vsel %vm1081_vm7, %v3267_v52, %v3266_v53  ;;  %v5121_v45 = vld [vmem:[#allocation3 + $0x134] ss:$8 sps:$4 sm:$0xff]   ;;  %v5128_v53 = vld [vmem:[#allocation3 + $0x10] ss:$8 sps:$4 sm:$0xff]  }
0x13ff   :  { %v3271_v2 = vrot.slane %v3258_v39, 1  ;;  %v4740_v7 = vcombine.high %v3228_v44, %v3232_v60  ;;  %v3270_v4 = vsel %vm1084_vm8, %v3269_v58, %v3268_v61  ;;  %v4739_v14 = vcombine.low %v3228_v44, %v3232_v60  ;;  %v5130_v51 = vld [vmem:[#allocation3 + $0x14] ss:$8 sps:$4 sm:$0xff]   ;;  %v5139_v39 = vld [vmem:[#allocation3 + $0x104] ss:$8 sps:$4 sm:$0xff]  }
0x1400   :  { %4715 = vmatmul.mubr.msk.bf16.vlgmr.msra.gmra.mxu1 %vm86_vm2, %v5995_v1  ;;  %4716 = vmatmul.mubr.msk.bf16.vlgmr.msra.gmra.mxu0 %vm86_vm2, %v5995_v1  ;;  %v2911_v1 = vld [vmem:[#allocation2 + $0x318] sm:$0xff]  ;;  %v5148_v60 = vld [vmem:[#allocation3 + $0xe4] ss:$8 sps:$4 sm:$0xff]  }
0x1401   :  { %3051 = vmatpush1.bf16.msra.mxu1 %v4725_v12  ;;  %3092 = vmatpush1.bf16.msra.mxu0 %v4727_v13  ;;  %v4724_v46 = vcombine.high %v2911_v1, %v2915_v35  ;;  %v4723_v55 = vcombine.low %v2911_v1, %v2915_v35  ;;  %v3242_v12 = vld [vmem:[#allocation2 + $0x3f8] sm:$0xff]  ;;  %v4737_v13 = vcombine.low %v3227_v57, %v3231_v59  ;;  %v5151_v61 = vld [vmem:[#allocation3 + $0x1e4] ss:$8 sps:$4 sm:$0xff]  }
0x1402   :  { %3052 = vmatprep.subr.bf16.mxu1 %v4718_v18  ;;  %3093 = vmatprep.subr.bf16.mxu0 %v4720_v20  ;;  %v3272_v16 = vsel %vm1087_vm9, %v3271_v2, %v3270_v4  ;;  %v4752_v19 = vcombine.high %v3238_v11, %v3242_v12  ;;  %v3233_v18 = vld [vmem:[#allocation2 + $0x3b0] sm:$0xff]  ;;  %v3230_v20 = vld [vmem:[#allocation2 + $0x398] sm:$0xff]  ;;  %v4751_v22 = vcombine.low %v3238_v11, %v3242_v12  ;;  %v5163_v10 = vld [vmem:[#allocation3 + $0x1c4] ss:$8 sps:$4 sm:$0xff]  }
0x1403   :  { %3070 = vmatprep.mubr.bf16.mxu1 %v5330_v6  ;;  %3111 = vmatprep.mubr.bf16.mxu0 %v5330_v6  ;;  %v3273_v21 = vpack.c.b16 %v3272_v16, %v3272_v16  ;;  %v4744_v24 = vcombine.high %v3230_v20, %v3234_v9  ;;  %v5109_v1 = vld [vmem:[#allocation3 + $0x154] ss:$8 sps:$4 sm:$0xff]   ;;  %v5104_v35 = vld [vmem:[#allocation3 + $0x50] ss:$8 sps:$4 sm:$0xff]   ;;  %v5158_v11 = vld [vmem:[#allocation3 + $0xc0] ss:$8 sps:$4 sm:$0xff]  }
0x1404   :  { %v5133_v52 = vld [vmem:[#allocation3 + $0x114] ss:$8 sps:$4 sm:$0xff]   ;;  %v5140_v59 = vld [vmem:[#allocation3 + $0xf0] ss:$8 sps:$4 sm:$0xff]   ;;  %v5161_v12 = vld [vmem:[#allocation3 + $0x1c0] ss:$8 sps:$4 sm:$0xff]  }
0x1405   :  { %3053 = vmatpush1.bf16.msra.mxu1 %v4717_v23  ;;  %3094 = vmatpush1.bf16.msra.mxu0 %v4719_v25  ;;  %v4742_v23 = vcombine.high %v3229_v36, %v3233_v18  ;;  %v4741_v25 = vcombine.low %v3229_v36, %v3233_v18  ;;  %v5142_v57 = vld [vmem:[#allocation3 + $0xf4] ss:$8 sps:$4 sm:$0xff]   ;;  %v5143_v44 = vld [vmem:[#allocation3 + $0x1f0] ss:$8 sps:$4 sm:$0xff]   ;;  %v5175_v36 = vld [vmem:[#allocation3 + $0x1a4] ss:$8 sps:$4 sm:$0xff]  }
0x1406   :  { %3132 = vmatprep.subr.bf16.mxu1 %v4730_v26  ;;  %3173 = vmatprep.subr.bf16.mxu0 %v4732_v32  ;;  %v4743_v26 = vcombine.low %v3230_v20, %v3234_v9  ;;  %v5092_v32 = vld [vmem:[#allocation3 + $0x70] ss:$8 sps:$4 sm:$0xff]   ;;  %v5145_v58 = vld [vmem:[#allocation3 + $0x1f4] ss:$8 sps:$4 sm:$0xff]   ;;  %v5170_v18 = vld [vmem:[#allocation3 + $0xa0] ss:$8 sps:$4 sm:$0xff]   ;;  %v3531_v9 = vlaneseq }
0x1407   :  { %v5154_v2 = vld [vmem:[#allocation3 + $0xd4] ss:$8 sps:$4 sm:$0xff]   ;;  %v5155_v4 = vld [vmem:[#allocation3 + $0x1d0] ss:$8 sps:$4 sm:$0xff]   ;;  %v5173_v20 = vld [vmem:[#allocation3 + $0x1a0] ss:$8 sps:$4 sm:$0xff]  }
0x1408   :  { %4733 = vmatmul.mubr.msk.bf16.vlgmr.msra.gmra.mxu1 %vm86_vm2, %v2954_v40  ;;  %4734 = vmatmul.mubr.msk.bf16.vlgmr.msra.gmra.mxu0 %vm86_vm2, %v2954_v40  ;;  %v5164_v16 = vld [vmem:[#allocation3 + $0xb0] ss:$8 sps:$4 sm:$0xff]  }
0x1409   :  { %3133 = vmatpush1.bf16.msra.mxu1 %v4729_v38  ;;  %3174 = vmatpush1.bf16.msra.mxu0 %v4731_v42  ;;  %v5112_v38 = vld [vmem:[#allocation3 + $0x44] ss:$8 sps:$4 sm:$0xff]   ;;  %v5113_v42 = vld [vmem:[#allocation3 + $0x140] ss:$8 sps:$4 sm:$0xff]  }
0x140a   :  { %3134 = vmatprep.subr.bf16.mxu1 %v4722_v15  ;;  %3175 = vmatprep.subr.bf16.mxu0 %v4724_v46  ;;  %v5116_v15 = vld [vmem:[#allocation3 + $0x30] ss:$8 sps:$4 sm:$0xff]  }
0x140b   :  { %3152 = vmatprep.mubr.bf16.mxu1 %v5330_v6  ;;  %3193 = vmatprep.mubr.bf16.mxu0 %v5330_v6  ;;  %v5119_v46 = vld [vmem:[#allocation3 + $0x130] ss:$8 sps:$4 sm:$0xff]  }
0x140d   :  { %3135 = vmatpush1.bf16.msra.mxu1 %v4721_v54  ;;  %3176 = vmatpush1.bf16.msra.mxu0 %v4723_v55  ;;  %v5131_v54 = vld [vmem:[#allocation3 + $0x110] ss:$8 sps:$4 sm:$0xff]   ;;  %v5136_v55 = vld [vmem:[#allocation3 + $0x4] ss:$8 sps:$4 sm:$0xff]  }
0x140e   :  { %3369 = vmatprep.subr.bf16.mxu1 %v4746_v30  ;;  %3410 = vmatprep.subr.bf16.mxu0 %v4748_v56  ;;  %v5134_v30 = vld [vmem:[#allocation3] ss:$8 sps:$4 sm:$0xff]  }
0x140f   :  { %v5137_v56 = vld [vmem:[#allocation3 + $0x100] ss:$8 sps:$4 sm:$0xff]  }
0x1410   :  { %4735 = vmatmul.mubr.msk.bf16.vlgmr.msra.gmra.mxu1 %vm86_vm2, %v2954_v40  ;;  %4736 = vmatmul.mubr.msk.bf16.vlgmr.msra.gmra.mxu0 %vm86_vm2, %v2954_v40  ;;  %v5115_v40 = vld [vmem:[#allocation3 + $0x144] ss:$8 sps:$4 sm:$0xff]  }
0x1411   :  { %3370 = vmatpush1.bf16.msra.mxu1 %v4745_v62  ;;  %3411 = vmatpush1.bf16.msra.mxu0 %v4747_v63  ;;  %v5146_v62 = vld [vmem:[#allocation3 + $0xe0] ss:$8 sps:$4 sm:$0xff]  }
0x1412   :  { %3371 = vmatprep.subr.bf16.mxu1 %v4738_v3  ;;  %3412 = vmatprep.subr.bf16.mxu0 %v4740_v7  ;;  %v5149_v63 = vld [vmem:[#allocation3 + $0x1e0] ss:$8 sps:$4 sm:$0xff]   ;;  %v5157_v3 = vld [vmem:[#allocation3 + $0x1d4] ss:$8 sps:$4 sm:$0xff]   ;;  %v5152_v7 = vld [vmem:[#allocation3 + $0xd0] ss:$8 sps:$4 sm:$0xff]  }
0x1413   :  { %3389 = vmatprep.mubr.bf16.mxu1 %v5330_v6  ;;  %3430 = vmatprep.mubr.bf16.mxu0 %v5330_v6 }
0x1415   :  { %3372 = vmatpush1.bf16.msra.mxu1 %v4737_v13  ;;  %3413 = vmatpush1.bf16.msra.mxu0 %v4739_v14  ;;  %v5166_v13 = vld [vmem:[#allocation3 + $0xb4] ss:$8 sps:$4 sm:$0xff]  }
0x1416   :  { %3451 = vmatprep.subr.bf16.mxu1 %v4750_v17  ;;  %3492 = vmatprep.subr.bf16.mxu0 %v4752_v19  ;;  %v5169_v14 = vld [vmem:[#allocation3 + $0x1b4] ss:$8 sps:$4 sm:$0xff]   ;;  %v5167_v17 = vld [vmem:[#allocation3 + $0x1b0] ss:$8 sps:$4 sm:$0xff]   ;;  %v5172_v19 = vld [vmem:[#allocation3 + $0xa4] ss:$8 sps:$4 sm:$0xff]  }
0x1418   :  { %4753 = vmatmul.mubr.msk.bf16.vlgmr.msra.gmra.mxu1 %vm86_vm2, %v3273_v21  ;;  %4754 = vmatmul.mubr.msk.bf16.vlgmr.msra.gmra.mxu0 %vm86_vm2, %v3273_v21 }
0x1419   :  { %3452 = vmatpush1.bf16.msra.mxu1 %v4749_v5  ;;  %3493 = vmatpush1.bf16.msra.mxu0 %v4751_v22  ;;  %v5181_v5 = vld [vmem:[#allocation3 + $0x194] ss:$8 sps:$4 sm:$0xff]   ;;  %v5176_v22 = vld [vmem:[#allocation3 + $0x90] ss:$8 sps:$4 sm:$0xff]  }
0x141a   :  { %3453 = vmatprep.subr.bf16.mxu1 %v4742_v23  ;;  %3494 = vmatprep.subr.bf16.mxu0 %v4744_v24  ;;  %v5179_v23 = vld [vmem:[#allocation3 + $0x190] ss:$8 sps:$4 sm:$0xff]   ;;  %v6081_v24 = vshrl.u32 %v3531_v9, 7 }
0x141b   :  { %3471 = vmatprep.mubr.bf16.mxu1 %v5330_v6  ;;  %3512 = vmatprep.mubr.bf16.mxu0 %v5330_v6  ;;  %v5106_v6 = vld [vmem:[#allocation3 + $0x54] ss:$8 sps:$4 sm:$0xff]  }
0x141d   :  { %3454 = vmatpush1.bf16.msra.mxu1 %v4741_v25  ;;  %3495 = vmatpush1.bf16.msra.mxu0 %v4743_v26  ;;  %v5184_v25 = vld [vmem:[#allocation3 + $0x84] ss:$8 sps:$4 sm:$0xff]  }
0x141e   :  { %4375 = vmatprep.subr.bf16.mxu1 %v5094_v27  ;;  %4416 = vmatprep.subr.bf16.mxu0 %v5097_v28  ;;  %v5187_v26 = vld [vmem:[#allocation3 + $0x184] ss:$8 sps:$4 sm:$0xff]   ;;  %v5182_v27 = vld [vmem:[#allocation3 + $0x80] ss:$8 sps:$4 sm:$0xff]  }
0x141f   :  { %v5185_v28 = vld [vmem:[#allocation3 + $0x180] ss:$8 sps:$4 sm:$0xff]  }
0x1420   :  { %4755 = vmatmul.mubr.msk.bf16.vlgmr.msra.gmra.mxu1 %vm86_vm2, %v3273_v21  ;;  %4756 = vmatmul.mubr.msk.bf16.vlgmr.msra.gmra.mxu0 %vm86_vm2, %v3273_v21  ;;  %v5178_v21 = vld [vmem:[#allocation3 + $0x94] ss:$8 sps:$4 sm:$0xff]  }
0x1421   :  { %4376 = vmatpush1.bf16.msra.mxu1 %v5092_v32  ;;  %4417 = vmatpush1.bf16.msra.mxu0 %v5095_v0  ;;  %v3549_v32 = vsub.s32 4, %v6081_v24  ;;  %v3557_v0 = vsub.s32 6, %v6081_v24 }
0x1422   :  { %4377 = vmatprep.subr.bf16.mxu1 %v5100_v29  ;;  %4418 = vmatprep.subr.bf16.mxu0 %v5103_v31  ;;  %v6088_v29 = vld [vmem:[%s6194_s7] sm:$0xff] }
0x1423   :  { %v6091_v31 = vrot.slane %v6088_v29, %v3549_v32 }
0x1425   :  { %4378 = vmatpush1.bf16.msra.mxu1 %v5098_v33  ;;  %4419 = vmatpush1.bf16.msra.mxu0 %v5101_v34  ;;  %v6094_v33 = vrot.slane %v6088_v29, %v3557_v0  ;;  %v5190_v34 = vld [vmem:[#allocation3 + $0x274] ss:$8 sps:$4 sm:$0xff]  }
0x1426   :  { %4379 = vmatprep.subr.bf16.mxu1 %v5106_v6  ;;  %4420 = vmatprep.subr.bf16.mxu0 %v5109_v1  ;;  %v5193_v6 = vld [vmem:[#allocation3 + $0x374] ss:$8 sps:$4 sm:$0xff]  }
0x1429   :  { %4380 = vmatpush1.bf16.msra.mxu1 %v5104_v35  ;;  %4421 = vmatpush1.bf16.msra.mxu0 %v5107_v37 }
0x142a   :  { %4381 = vmatprep.subr.bf16.mxu1 %v5112_v38  ;;  %4422 = vmatprep.subr.bf16.mxu0 %v5115_v40 }
0x142d   :  { %4382 = vmatpush1.bf16.msra.mxu1 %v5110_v41  ;;  %4423 = vmatpush1.bf16.msra.mxu0 %v5113_v42 }
0x142e   :  { %4383 = vmatprep.subr.bf16.mxu1 %v5118_v43  ;;  %4424 = vmatprep.subr.bf16.mxu0 %v5121_v45 }
0x1431   :  { %4384 = vmatpush1.bf16.msra.mxu1 %v5116_v15  ;;  %4425 = vmatpush1.bf16.msra.mxu0 %v5119_v46 }
0x1432   :  { %4385 = vmatprep.subr.bf16.mxu1 %v5124_v47  ;;  %4426 = vmatprep.subr.bf16.mxu0 %v5127_v48 }
0x1435   :  { %4386 = vmatpush1.bf16.msra.mxu1 %v5122_v49  ;;  %4427 = vmatpush1.bf16.msra.mxu0 %v5125_v50 }
0x1436   :  { %4387 = vmatprep.subr.bf16.mxu1 %v5130_v51  ;;  %4428 = vmatprep.subr.bf16.mxu0 %v5133_v52 }
0x1439   :  { %4388 = vmatpush1.bf16.msra.mxu1 %v5128_v53  ;;  %4429 = vmatpush1.bf16.msra.mxu0 %v5131_v54 }
0x143a   :  { %4389 = vmatprep.subr.bf16.mxu1 %v5136_v55  ;;  %4430 = vmatprep.subr.bf16.mxu0 %v5139_v39 }
0x143d   :  { %4390 = vmatpush1.bf16.msra.mxu1 %v5134_v30  ;;  %4431 = vmatpush1.bf16.msra.mxu0 %v5137_v56 }
0x143e   :  { %4391 = vmatprep.subr.bf16.mxu1 %v5142_v57  ;;  %4432 = vmatprep.subr.bf16.mxu0 %v5145_v58 }
0x1441   :  { %4392 = vmatpush2.bf16.msra.mxu1 %v5140_v59  ;;  %4433 = vmatpush2.bf16.msra.mxu0 %v5143_v44 }
0x1442   :  { %4393 = vmatprep.subr.bf16.mxu1 %v5148_v60  ;;  %4434 = vmatprep.subr.bf16.mxu0 %v5151_v61 }
0x1445   :  { %4394 = vmatpush2.bf16.msra.mxu1 %v5146_v62  ;;  %4435 = vmatpush2.bf16.msra.mxu0 %v5149_v63 }
0x1446   :  { %4395 = vmatprep.subr.bf16.mxu1 %v5154_v2  ;;  %4436 = vmatprep.subr.bf16.mxu0 %v5157_v3 }
0x1449   :  { %4396 = vmatpush2.bf16.msra.mxu1 %v5152_v7  ;;  %4437 = vmatpush2.bf16.msra.mxu0 %v5155_v4 }
0x144a   :  { %4397 = vmatprep.subr.bf16.mxu1 %v5160_v8  ;;  %4438 = vmatprep.subr.bf16.mxu0 %v5163_v10 }
0x144d   :  { %4398 = vmatpush2.bf16.msra.mxu1 %v5158_v11  ;;  %4439 = vmatpush2.bf16.msra.mxu0 %v5161_v12 }
0x144e   :  { %4399 = vmatprep.subr.bf16.mxu1 %v5166_v13  ;;  %4440 = vmatprep.subr.bf16.mxu0 %v5169_v14 }
0x1451   :  { %4400 = vmatpush2.bf16.msra.mxu1 %v5164_v16  ;;  %4441 = vmatpush2.bf16.msra.mxu0 %v5167_v17 }
0x1452   :  { %4401 = vmatprep.subr.bf16.mxu1 %v5172_v19  ;;  %4442 = vmatprep.subr.bf16.mxu0 %v5175_v36 }
0x1455   :  { %4402 = vmatpush2.bf16.msra.mxu1 %v5170_v18  ;;  %4443 = vmatpush2.bf16.msra.mxu0 %v5173_v20 }
0x1456   :  { %4403 = vmatprep.subr.bf16.mxu1 %v5178_v21  ;;  %4444 = vmatprep.subr.bf16.mxu0 %v5181_v5 }
0x1459   :  { %4404 = vmatpush2.bf16.msra.mxu1 %v5176_v22  ;;  %4445 = vmatpush2.bf16.msra.mxu0 %v5179_v23 }
0x145a   :  { %4405 = vmatprep.subr.bf16.mxu1 %v5184_v25  ;;  %4446 = vmatprep.subr.bf16.mxu0 %v5187_v26 }
0x145d   :  { %4406 = vmatpush2.bf16.msra.mxu1 %v5182_v27  ;;  %4447 = vmatpush2.bf16.msra.mxu0 %v5185_v28 }
0x145e   :  { %4457 = vmatprep.subr.bf16.mxu1 %v5190_v34  ;;  %4498 = vmatprep.subr.bf16.mxu0 %v5193_v6 }
0x1468   :  { %v1207_v1 = vpop.f32.mrf.mxu1  ;;  %v1248_v35 = vpop.f32.mrf.mxu0 }
0x146a   :  { %v1209_v37 = vpop.f32.mrf.mxu1  ;;  %v1250_v38 = vpop.f32.mrf.mxu0 }
0x146c   :  { %v1211_v40 = vpop.f32.mrf.mxu1  ;;  %v1252_v41 = vpop.f32.mrf.mxu0 }
0x146e   :  { %v1212_v42 = vpop.f32.mrf.mxu1  ;;  %v1253_v43 = vpop.f32.mrf.mxu0 }
0x1470   :  { %v1289_v45 = vpop.f32.mrf.mxu1  ;;  %v1330_v15 = vpop.f32.mrf.mxu0 }
0x1472   :  { %v1291_v46 = vpop.f32.mrf.mxu1  ;;  %v1332_v47 = vpop.f32.mrf.mxu0 }
0x1474   :  { %v1293_v48 = vpop.f32.mrf.mxu1  ;;  %v1334_v49 = vpop.f32.mrf.mxu0 }
0x1476   :  { %v1294_v50 = vpop.f32.mrf.mxu1  ;;  %v1335_v51 = vpop.f32.mrf.mxu0 }
0x1478   :  { %v1485_v52 = vpop.f32.mrf.mxu1  ;;  %v1526_v53 = vpop.f32.mrf.mxu0 }
0x1479   :  { %v1486_v54 = vadd.f32 %v1485_v52, %v1207_v1  ;;  %v1527_v55 = vadd.f32 %v1526_v53, %v1248_v35 }
0x147a   :  { %v1487_v39 = vpop.f32.mrf.mxu1  ;;  %v1528_v30 = vpop.f32.mrf.mxu0 }
0x147b   :  { %v1488_v56 = vadd.f32 %v1487_v39, %v1209_v37  ;;  %v1529_v57 = vadd.f32 %v1528_v30, %v1250_v38 }
0x147c   :  { %v1489_v58 = vpop.f32.mrf.mxu1  ;;  %v1530_v59 = vpop.f32.mrf.mxu0 }
0x147e   :  { %v1490_v44 = vpop.f32.mrf.mxu1  ;;  %v1531_v60 = vpop.f32.mrf.mxu0 }
0x1480   :  { %v1567_v61 = vpop.f32.mrf.mxu1  ;;  %v1608_v62 = vpop.f32.mrf.mxu0 }
0x1481   :  { %v1568_v63 = vadd.f32 %v1567_v61, %v1289_v45  ;;  %v1609_v2 = vadd.f32 %v1608_v62, %v1330_v15 }
0x1482   :  { %v1569_v3 = vpop.f32.mrf.mxu1  ;;  %v1610_v7 = vpop.f32.mrf.mxu0 }
0x1483   :  { %v1570_v4 = vadd.f32 %v1569_v3, %v1291_v46  ;;  %v1611_v8 = vadd.f32 %v1610_v7, %v1332_v47 }
0x1484   :  { %v1571_v10 = vpop.f32.mrf.mxu1  ;;  %v1612_v11 = vpop.f32.mrf.mxu0 }
0x1486   :  { %v1572_v12 = vpop.f32.mrf.mxu1  ;;  %v1613_v13 = vpop.f32.mrf.mxu0 }
0x1488   :  { %v1796_v14 = vpop.f32.mrf.mxu1  ;;  %v1837_v16 = vpop.f32.mrf.mxu0 }
0x1489   :  { %v6096_v17 = vadd.f32 %v1796_v14, %v1486_v54  ;;  %v6098_v19 = vadd.f32 %v1837_v16, %v1527_v55 }
0x148a   :  { %v1798_v36 = vpop.f32.mrf.mxu1  ;;  %v1839_v18 = vpop.f32.mrf.mxu0 }
0x148b   :  { %v6100_v20 = vadd.f32 %v1798_v36, %v1488_v56  ;;  %v6102_v9 = vadd.f32 %v1839_v18, %v1529_v57 }
0x148c   :  { %v1800_v21 = vpop.f32.mrf.mxu1  ;;  %v1841_v5 = vpop.f32.mrf.mxu0 }
0x148e   :  { %v1801_v22 = vpop.f32.mrf.mxu1  ;;  %v1842_v23 = vpop.f32.mrf.mxu0 }
0x1490   :  { %v1878_v25 = vpop.f32.mrf.mxu1  ;;  %v1919_v26 = vpop.f32.mrf.mxu0 }
0x1491   :  { %v1930_v27 = vadd.f32 %v1878_v25, %v1568_v63  ;;  %v1932_v28 = vadd.f32 %v1919_v26, %v1609_v2 }
0x1492   :  { %v1880_v32 = vpop.f32.mrf.mxu1  ;;  %v1921_v0 = vpop.f32.mrf.mxu0 }
0x1493   :  { %v6104_v34 = vadd.f32 %v1880_v32, %v1570_v4  ;;  %v6106_v6 = vadd.f32 %v1921_v0, %v1611_v8 }
0x1494   :  { %v1882_v1 = vpop.f32.mrf.mxu1  ;;  %v1923_v35 = vpop.f32.mrf.mxu0 }
0x1496   :  { %v1883_v37 = vpop.f32.mrf.mxu1  ;;  %v1924_v38 = vpop.f32.mrf.mxu0 }
0x1498   :  { %v6108_v40 = vpop.f32.mrf.mxu1  ;;  %v6110_v41 = vpop.f32.mrf.mxu0 }
0x149a   :  { %v6112_v42 = vpop.f32.mrf.mxu1  ;;  %v6114_v43 = vpop.f32.mrf.mxu0 }
0x149c   :  { %v2119_v45 = vpop.f32.mrf.mxu1  ;;  %v2160_v15 = vpop.f32.mrf.mxu0 }
0x149e   :  { %v2120_v46 = vpop.f32.mrf.mxu1  ;;  %v2161_v47 = vpop.f32.mrf.mxu0 }
0x14a0   :  { %v2197_v48 = vpop.f32.mrf.mxu1  ;;  %v2238_v49 = vpop.f32.mrf.mxu0 }
0x14a1   :  { %v2249_v50 = vadd.f32 %v2197_v48, %v1930_v27  ;;  %v2251_v51 = vadd.f32 %v2238_v49, %v1932_v28 }
0x14a2   :  { %v6116_v52 = vpop.f32.mrf.mxu1  ;;  %v6118_v53 = vpop.f32.mrf.mxu0 }
0x14a4   :  { %v2201_v54 = vpop.f32.mrf.mxu1  ;;  %v2242_v55 = vpop.f32.mrf.mxu0 }
0x14a6   :  { %v2202_v39 = vpop.f32.mrf.mxu1  ;;  %v2243_v30 = vpop.f32.mrf.mxu0 }
0x14a7   :  { %v2245_v39 = vadd.f32 %v6108_v40, %v6096_v17  ;;  %v2247_v30 = vadd.f32 %v6110_v41, %v6098_v19  ;;  %v3537_v41 = vsub.s32 1, %v6081_v24 }
0x14a8   :  { %v2434_v56 = vpop.f32.mrf.mxu1  ;;  %v2475_v57 = vpop.f32.mrf.mxu0 }
0x14a9   :  { %v2564_v17 = vadd.f32 %v2434_v56, %v2245_v39  ;;  %v2566_v40 = vadd.f32 %v2475_v57, %v2247_v30 }
0x14aa   :  { %v2436_v58 = vpop.f32.mrf.mxu1  ;;  %v2477_v59 = vpop.f32.mrf.mxu0 }
0x14ac   :  { %v2438_v44 = vpop.f32.mrf.mxu1  ;;  %v2479_v60 = vpop.f32.mrf.mxu0 }
0x14ae   :  { %v2439_v61 = vpop.f32.mrf.mxu1  ;;  %v2480_v62 = vpop.f32.mrf.mxu0 }
0x14b0   :  { %v2516_v63 = vpop.f32.mrf.mxu1  ;;  %v2557_v2 = vpop.f32.mrf.mxu0 }
0x14b1   :  { %v2568_v3 = vadd.f32 %v2516_v63, %v2249_v50  ;;  %v2570_v7 = vadd.f32 %v2557_v2, %v2251_v51  ;;  %v3533_v63 = vsub.s32 0, %v6081_v24  ;;  %v3541_v2 = vsub.s32 2, %v6081_v24 }
0x14b2   :  { %v6120_v4 = vpop.f32.mrf.mxu1  ;;  %v6122_v8 = vpop.f32.mrf.mxu0 }
0x14b4   :  { %v2520_v10 = vpop.f32.mrf.mxu1  ;;  %v2561_v11 = vpop.f32.mrf.mxu0 }
0x14b5   :  { %v3545_v11 = vsub.s32 3, %v6081_v24 }
0x14b6   :  { %v2521_v12 = vpop.f32.mrf.mxu1  ;;  %v2562_v13 = vpop.f32.mrf.mxu0 }
0x14b8   :  { %v2753_v14 = vpop.f32.mrf.mxu1  ;;  %v2794_v16 = vpop.f32.mrf.mxu0 }
0x14ba   :  { %v2755_v36 = vpop.f32.mrf.mxu1  ;;  %v2796_v18 = vpop.f32.mrf.mxu0 }
0x14bc   :  { %v2757_v21 = vpop.f32.mrf.mxu1  ;;  %v2798_v5 = vpop.f32.mrf.mxu0 }
0x14bd   :  { %v2883_v21 = vadd.f32 %v2753_v14, %v2564_v17  ;;  %v2885_v5 = vadd.f32 %v2794_v16, %v2566_v40 }
0x14be   :  { %v2758_v22 = vpop.f32.mrf.mxu1  ;;  %v2799_v23 = vpop.f32.mrf.mxu0 }
0x14c0   :  { %v2835_v25 = vpop.f32.mrf.mxu1  ;;  %v2876_v26 = vpop.f32.mrf.mxu0 }
0x14c1   :  { %v2887_v27 = vadd.f32 %v2835_v25, %v2568_v3  ;;  %v2889_v28 = vadd.f32 %v2876_v26, %v2570_v7  ;;  %v2246_v3 = vadd.f32 %v6112_v42, %v6100_v20  ;;  %v2248_v7 = vadd.f32 %v6114_v43, %v6102_v9 }
0x14c2   :  { %v6124_v32 = vpop.f32.mrf.mxu1  ;;  %v6126_v0 = vpop.f32.mrf.mxu0  ;;  %v3534_v20 = vrot.slane %v6088_v29, %v3533_v63  ;;  %v3542_v9 = vrot.slane %v6088_v29, %v3541_v2 }
0x14c3   :  { %v2565_v12 = vadd.f32 %v2436_v58, %v2246_v3  ;;  %v2567_v13 = vadd.f32 %v2477_v59, %v2248_v7  ;;  %v3538_v58 = vrot.slane %v6088_v29, %v3537_v41  ;;  %v3546_v59 = vrot.slane %v6088_v29, %v3545_v11 }
0x14c4   :  { %v2839_v1 = vpop.f32.mrf.mxu1  ;;  %v2880_v35 = vpop.f32.mrf.mxu0 }
0x14c5   :  { %v2884_v42 = vadd.f32 %v2755_v36, %v2565_v12  ;;  %v2886_v43 = vadd.f32 %v2796_v18, %v2567_v13  ;;  %v2250_v1 = vadd.f32 %v6116_v52, %v6104_v34  ;;  %v2252_v36 = vadd.f32 %v6118_v53, %v6106_v6  ;;  %v5188_v12 = vld [vmem:[#allocation3 + $0x270] ss:$8 sps:$4 sm:$0xff]  }
0x14c6   :  { %v2840_v37 = vpop.f32.mrf.mxu1  ;;  %v2881_v38 = vpop.f32.mrf.mxu0 }
0x14c8   :  { %v3072_v45 = vpop.f32.mrf.mxu1  ;;  %v3113_v15 = vpop.f32.mrf.mxu0 }
0x14c9   :  { %v3202_v56 = vadd.f32 %v3072_v45, %v2883_v21  ;;  %v3204_v57 = vadd.f32 %v3113_v15, %v2885_v5 }
0x14ca   :  { %v3074_v46 = vpop.f32.mrf.mxu1  ;;  %v3115_v47 = vpop.f32.mrf.mxu0 }
0x14cb   :  { %v3203_v14 = vadd.f32 %v3074_v46, %v2884_v42  ;;  %v3205_v16 = vadd.f32 %v3115_v47, %v2886_v43  ;;  %v5199_v42 = vld [vmem:[#allocation3 + $0x364] ss:$8 sps:$4 sm:$0xff]  }
0x14cc   :  { %v3076_v48 = vpop.f32.mrf.mxu1  ;;  %v3117_v49 = vpop.f32.mrf.mxu0 }
0x14cd   :  { %v2569_v48 = vadd.f32 %v6120_v4, %v2250_v1  ;;  %v2571_v49 = vadd.f32 %v6122_v8, %v2252_v36  ;;  %v5203_v1 = vld [vmem:[#allocation3 + $0x350] ss:$8 sps:$4 sm:$0xff]   ;;  %v5208_v36 = vld [vmem:[#allocation3 + $0x244] ss:$8 sps:$4 sm:$0xff]  }
0x14ce   :  { %v3077_v50 = vpop.f32.mrf.mxu1  ;;  %v3118_v51 = vpop.f32.mrf.mxu0 }
0x14cf   :  { %v3553_v50 = vsub.s32 5, %v6081_v24  ;;  %v3561_v51 = vsub.s32 7, %v6081_v24  ;;  %v2888_v6 = vadd.f32 %v6124_v32, %v2569_v48  ;;  %v2890_v53 = vadd.f32 %v6126_v0, %v2571_v49  ;;  %v5215_v48 = vld [vmem:[#allocation3 + $0x330] ss:$8 sps:$4 sm:$0xff]   ;;  %v5220_v49 = vld [vmem:[#allocation3 + $0x224] ss:$8 sps:$4 sm:$0xff]  }
0x14d0   :  { %v3154_v54 = vpop.f32.mrf.mxu1  ;;  %v3195_v55 = vpop.f32.mrf.mxu0 }
0x14d1   :  { %v6132_v44 = vadd.f32 %v3154_v54, %v2887_v27  ;;  %v6134_v60 = vadd.f32 %v3195_v55, %v2889_v28  ;;  %v3554_v40 = vrot.slane %v6088_v29, %v3553_v50  ;;  %v5221_v50 = vld [vmem:[#allocation3 + $0x320] ss:$8 sps:$4 sm:$0xff]  }
0x14d2   :  { %v3156_v61 = vpop.f32.mrf.mxu1  ;;  %v3197_v62 = vpop.f32.mrf.mxu0 }
0x14d3   :  { %v3207_v3 = vadd.f32 %v3156_v61, %v2888_v6  ;;  %v3209_v8 = vadd.f32 %v3197_v62, %v2890_v53  ;;  %v5196_v61 = vld [vmem:[#allocation3 + $0x264] ss:$8 sps:$4 sm:$0xff]   ;;  %v5227_v6 = vld [vmem:[#allocation3 + $0x310] ss:$8 sps:$4 sm:$0xff]  }
0x14d4   :  { %v3158_v10 = vpop.f32.mrf.mxu1  ;;  %v3199_v19 = vpop.f32.mrf.mxu0  ;;  %v5232_v53 = vld [vmem:[#allocation3 + $0x204] ss:$8 sps:$4 sm:$0xff]  }
0x14d5   :  { %v3562_v10 = vrot.slane %v6088_v29, %v3561_v51  ;;  %v5226_v51 = vld [vmem:[#allocation3 + $0x214] ss:$8 sps:$4 sm:$0xff]  }
0x14d6   :  { %v3159_v22 = vpop.f32.mrf.mxu1  ;;  %v3200_v23 = vpop.f32.mrf.mxu0 }
0x14d7   :  { %v5191_v23 = vld [vmem:[#allocation3 + $0x370] ss:$8 sps:$4 sm:$0xff]  }
0x14d8   :  { %v3391_v25 = vpop.f32.mrf.mxu1  ;;  %v3432_v26 = vpop.f32.mrf.mxu0 }
0x14d9   :  { %v3521_v27 = vadd.f32 %v3391_v25, %v3202_v56  ;;  %v3523_v28 = vadd.f32 %v3432_v26, %v3204_v57  ;;  %v5194_v57 = vld [vmem:[#allocation3 + $0x260] ss:$8 sps:$4 sm:$0xff]   ;;  %v5202_v25 = vld [vmem:[#allocation3 + $0x254] ss:$8 sps:$4 sm:$0xff]  }
0x14da   :  { %v3393_v18 = vpop.f32.mrf.mxu1  ;;  %v3434_v35 = vpop.f32.mrf.mxu0 }
0x14db   :  { %v3571_v37 = vadd.f32 %v3534_v20, %v3521_v27  ;;  %v3573_v38 = vadd.f32 %v3542_v9, %v3523_v28  ;;  %v3522_v45 = vadd.f32 %v3393_v18, %v3203_v14  ;;  %v3524_v15 = vadd.f32 %v3434_v35, %v3205_v16  ;;  %v5205_v14 = vld [vmem:[#allocation3 + $0x354] ss:$8 sps:$4 sm:$0xff]   ;;  %v5200_v28 = vld [vmem:[#allocation3 + $0x250] ss:$8 sps:$4 sm:$0xff]   ;;  %v5211_v18 = vld [vmem:[#allocation3 + $0x344] ss:$8 sps:$4 sm:$0xff]  }
0x14dc   :  { %v3395_v46 = vpop.f32.mrf.mxu1  ;;  %v3436_v47 = vpop.f32.mrf.mxu0  ;;  %v5206_v35 = vld [vmem:[#allocation3 + $0x240] ss:$8 sps:$4 sm:$0xff]  }
0x14dd   :  { %v3572_v34 = vadd.f32 %v3538_v58, %v3522_v45  ;;  %v3574_v52 = vadd.f32 %v3546_v59, %v3524_v15  ;;  %v3579_v54 = vmax.f32 %v3571_v37, 0.0  ;;  %v3581_v55 = vmax.f32 %v3573_v38, 0.0  ;;  %v5209_v37 = vld [vmem:[#allocation3 + $0x340] ss:$8 sps:$4 sm:$0xff]   ;;  %v5214_v38 = vld [vmem:[#allocation3 + $0x234] ss:$8 sps:$4 sm:$0xff]  }
0x14de   :  { %v3396_v39 = vpop.f32.mrf.mxu1  ;;  %v3437_v30 = vpop.f32.mrf.mxu0  ;;  %v5217_v45 = vld [vmem:[#allocation3 + $0x334] ss:$8 sps:$4 sm:$0xff]   ;;  %v5212_v15 = vld [vmem:[#allocation3 + $0x230] ss:$8 sps:$4 sm:$0xff]   ;;  %v5223_v46 = vld [vmem:[#allocation3 + $0x324] ss:$8 sps:$4 sm:$0xff]  }
0x14df   :  { %v3580_v2 = vmax.f32 %v3572_v34, 0.0  ;;  %v3582_v4 = vmax.f32 %v3574_v52, 0.0  ;;  %v3587_v13 = vpack.c.bf16 %v3579_v54, %v3579_v54  ;;  %v3589_v21 = vpack.c.bf16 %v3581_v55, %v3581_v55  ;;  %v5218_v47 = vld [vmem:[#allocation3 + $0x220] ss:$8 sps:$4 sm:$0xff]   ;;  %v5229_v34 = vld [vmem:[#allocation3 + $0x314] ss:$8 sps:$4 sm:$0xff]  }
0x14e0   :  { %v3473_v7 = vpop.f32.mrf.mxu1  ;;  %v3514_v17 = vpop.f32.mrf.mxu0  ;;  %v5224_v52 = vld [vmem:[#allocation3 + $0x210] ss:$8 sps:$4 sm:$0xff]   ;;  %v5235_v54 = vld [vmem:[#allocation3 + $0x304] ss:$8 sps:$4 sm:$0xff]   ;;  %v5230_v55 = vld [vmem:[#allocation3 + $0x200] ss:$8 sps:$4 sm:$0xff]  }
0x14e1   :  { %v3588_v19 = vpack.c.bf16 %v3580_v2, %v3580_v2  ;;  %v3590_v11 = vpack.c.bf16 %v3582_v4, %v3582_v4  ;;  %v3525_v32 = vadd.f32 %v3473_v7, %v6132_v44  ;;  %v3527_v0 = vadd.f32 %v3514_v17, %v6134_v60  ;;  %v5233_v39 = vld [vmem:[#allocation3 + $0x300] ss:$8 sps:$4 sm:$0xff]   ;;  %v5238_v30 = vld [vmem:[#allocation3 + $0x2f4] ss:$8 sps:$4 sm:$0xff]   ;;  %v5236_v4 = vld [vmem:[#allocation3 + $0x2f0] ss:$8 sps:$4 sm:$0xff]  }
0x14e2   :  { %v3475_v5 = vpop.f32.mrf.mxu1  ;;  %v3516_v22 = vpop.f32.mrf.mxu0  ;;  %v5241_v2 = vld [vmem:[#allocation3 + $0x3f4] ss:$8 sps:$4 sm:$0xff]   ;;  %v5247_v7 = vld [vmem:[#allocation3 + $0x3e4] ss:$8 sps:$4 sm:$0xff]   ;;  %v5242_v17 = vld [vmem:[#allocation3 + $0x2e0] ss:$8 sps:$4 sm:$0xff]  }
0x14e3   :  { %v6167_v62 = vadd.f32 %v6091_v31, %v3525_v32  ;;  %v6170_v20 = vadd.f32 %v6094_v33, %v3527_v0  ;;  %v3526_v29 = vadd.f32 %v3475_v5, %v3207_v3  ;;  %v3528_v9 = vadd.f32 %v3516_v22, %v3209_v8  ;;  %4407 = vmatprep.mubr.bf16.mxu1 %v3588_v19  ;;  %v5197_v31 = vld [vmem:[#allocation3 + $0x360] ss:$8 sps:$4 sm:$0xff]   ;;  %v5239_v3 = vld [vmem:[#allocation3 + $0x3f0] ss:$8 sps:$4 sm:$0xff]   ;;  %v5244_v8 = vld [vmem:[#allocation3 + $0x2e4] ss:$8 sps:$4 sm:$0xff]  }
0x14e4   :  { %4448 = vmatprep.mubr.bf16.mxu0 %v3590_v11  ;;  %4408 = vmatmul.mubr.bf16.vlgmr.msra.gmra.mxu1 %v3587_v13  ;;  %v3477_v44 = vpop.f32.mrf.mxu1  ;;  %v3518_v60 = vpop.f32.mrf.mxu0  ;;  %v5253_v19 = vld [vmem:[#allocation3 + $0x3d4] ss:$8 sps:$4 sm:$0xff]   ;;  %v5248_v11 = vld [vmem:[#allocation3 + $0x2d0] ss:$8 sps:$4 sm:$0xff]   ;;  %v5256_v0 = vld [vmem:[#allocation3 + $0x2c4] ss:$8 sps:$4 sm:$0xff]  }
0x14e5   :  { %v3576_v43 = vadd.f32 %v3554_v40, %v3526_v29  ;;  %v3578_v56 = vadd.f32 %v3562_v10, %v3528_v9  ;;  %4449 = vmatmul.mubr.bf16.vlgmr.msra.gmra.mxu0 %v3589_v21  ;;  %4458 = vmatpush1.bf16.msra.mxu1 %v5188_v12  ;;  %v5245_v40 = vld [vmem:[#allocation3 + $0x3e0] ss:$8 sps:$4 sm:$0xff]   ;;  %v5250_v10 = vld [vmem:[#allocation3 + $0x2d4] ss:$8 sps:$4 sm:$0xff]   ;;  %v5251_v32 = vld [vmem:[#allocation3 + $0x3d0] ss:$8 sps:$4 sm:$0xff]  }
0x14e6   :  { %4499 = vmatpush1.bf16.msra.mxu0 %v5191_v23  ;;  %4459 = vmatprep.subr.bf16.mxu1 %v5196_v61  ;;  %v3478_v26 = vpop.f32.mrf.mxu1  ;;  %v3519_v33 = vpop.f32.mrf.mxu0  ;;  %v5259_v12 = vld [vmem:[#allocation3 + $0x3c4] ss:$8 sps:$4 sm:$0xff]   ;;  %v5254_v13 = vld [vmem:[#allocation3 + $0x2c0] ss:$8 sps:$4 sm:$0xff]   ;;  %v5262_v5 = vld [vmem:[#allocation3 + $0x2b4] ss:$8 sps:$4 sm:$0xff]  }
0x14e7   :  { %v3584_v58 = vmax.f32 %v3576_v43, 0.0  ;;  %v3586_v59 = vmax.f32 %v3578_v56, 0.0  ;;  %4500 = vmatprep.subr.bf16.mxu0 %v5199_v42  ;;  %v5257_v21 = vld [vmem:[#allocation3 + $0x3c0] ss:$8 sps:$4 sm:$0xff]   ;;  %v5265_v22 = vld [vmem:[#allocation3 + $0x3b4] ss:$8 sps:$4 sm:$0xff]  }
0x14e8   :  { %v5260_v23 = vld [vmem:[#allocation3 + $0x2b0] ss:$8 sps:$4 sm:$0xff]   ;;  %v5268_v29 = vld [vmem:[#allocation3 + $0x2a4] ss:$8 sps:$4 sm:$0xff]   ;;  %v5266_v42 = vld [vmem:[#allocation3 + $0x2a0] ss:$8 sps:$4 sm:$0xff]  }
0x14e9   :  { %v3592_v16 = vpack.c.bf16 %v3584_v58, %v3584_v58  ;;  %v3594_v27 = vpack.c.bf16 %v3586_v59, %v3586_v59  ;;  %4460 = vmatpush1.bf16.msra.mxu1 %v5194_v57  ;;  %v5263_v61 = vld [vmem:[#allocation3 + $0x3b0] ss:$8 sps:$4 sm:$0xff]   ;;  %v5271_v9 = vld [vmem:[#allocation3 + $0x3a4] ss:$8 sps:$4 sm:$0xff]   ;;  %v5269_v44 = vld [vmem:[#allocation3 + $0x3a0] ss:$8 sps:$4 sm:$0xff]  }
0x14ea   :  { %4501 = vmatpush1.bf16.msra.mxu0 %v5197_v31  ;;  %4461 = vmatprep.subr.bf16.mxu1 %v5202_v25  ;;  %v5274_v60 = vld [vmem:[#allocation3 + $0x294] ss:$8 sps:$4 sm:$0xff]   ;;  %v5272_v56 = vld [vmem:[#allocation3 + $0x290] ss:$8 sps:$4 sm:$0xff]   ;;  %v5280_v31 = vld [vmem:[#allocation3 + $0x284] ss:$8 sps:$4 sm:$0xff]  }
0x14eb   :  { %4489 = vmatprep.mubr.bf16.mxu1 %v3592_v16  ;;  %4502 = vmatprep.subr.bf16.mxu0 %v5205_v14  ;;  %v5277_v43 = vld [vmem:[#allocation3 + $0x394] ss:$8 sps:$4 sm:$0xff]   ;;  %v5275_v57 = vld [vmem:[#allocation3 + $0x390] ss:$8 sps:$4 sm:$0xff]   ;;  %v5283_v25 = vld [vmem:[#allocation3 + $0x384] ss:$8 sps:$4 sm:$0xff]  }
0x14ec   :  { %4530 = vmatprep.mubr.bf16.mxu0 %v3594_v27  ;;  %v5278_v26 = vld [vmem:[#allocation3 + $0x280] ss:$8 sps:$4 sm:$0xff]   ;;  %v3583_v33 = vmax.f32 %v6167_v62, 0.0  ;;  %v3585_v59 = vmax.f32 %v6170_v20, 0.0 }
0x14ed   :  { %4462 = vmatpush1.bf16.msra.mxu1 %v5200_v28  ;;  %v5281_v58 = vld [vmem:[#allocation3 + $0x380] ss:$8 sps:$4 sm:$0xff]  }
0x14ee   :  { %4503 = vmatpush1.bf16.msra.mxu0 %v5203_v1  ;;  %4463 = vmatprep.subr.bf16.mxu1 %v5208_v36  ;;  %v3591_v14 = vpack.c.bf16 %v3583_v33, %v3583_v33  ;;  %v3593_v16 = vpack.c.bf16 %v3585_v59, %v3585_v59 }
0x14ef   :  { %4504 = vmatprep.subr.bf16.mxu0 %v5211_v18 }
0x14f1   :  { %4464 = vmatpush1.bf16.msra.mxu1 %v5206_v35 }
0x14f2   :  { %4505 = vmatpush1.bf16.msra.mxu0 %v5209_v37  ;;  %4465 = vmatprep.subr.bf16.mxu1 %v5214_v38  ;;  %v3723_v38 = vld [vmem:[%s6195_s8] sm:$0x3] }
0x14f3   :  { %4506 = vmatprep.subr.bf16.mxu0 %v5217_v45  ;;  %v3728_v20 = vrot.slane %v3723_v38, %v3533_v63  ;;  %v3732_v45 = vrot.slane %v3723_v38, %v3537_v41 }
0x14f5   :  { %4466 = vmatpush1.bf16.msra.mxu1 %v5212_v15 }
0x14f6   :  { %4507 = vmatpush1.bf16.msra.mxu0 %v5215_v48  ;;  %4467 = vmatprep.subr.bf16.mxu1 %v5220_v49 }
0x14f7   :  { %4508 = vmatprep.subr.bf16.mxu0 %v5223_v46 }
0x14f9   :  { %4468 = vmatpush1.bf16.msra.mxu1 %v5218_v47 }
0x14fa   :  { %4509 = vmatpush1.bf16.msra.mxu0 %v5221_v50  ;;  %4469 = vmatprep.subr.bf16.mxu1 %v5226_v51 }
0x14fb   :  { %4510 = vmatprep.subr.bf16.mxu0 %v5229_v34 }
0x14fd   :  { %4470 = vmatpush1.bf16.msra.mxu1 %v5224_v52 }
0x14fe   :  { %4511 = vmatpush1.bf16.msra.mxu0 %v5227_v6  ;;  %4471 = vmatprep.subr.bf16.mxu1 %v5232_v53 }
0x14ff   :  { %4512 = vmatprep.subr.bf16.mxu0 %v5235_v54 }
0x1501   :  { %4472 = vmatpush1.bf16.msra.mxu1 %v5230_v55 }
0x1502   :  { %4513 = vmatpush1.bf16.msra.mxu0 %v5233_v39  ;;  %4473 = vmatprep.subr.bf16.mxu1 %v5238_v30 }
0x1503   :  { %4514 = vmatprep.subr.bf16.mxu0 %v5241_v2 }
0x1505   :  { %4474 = vmatpush2.bf16.msra.mxu1 %v5236_v4 }
0x1506   :  { %4515 = vmatpush2.bf16.msra.mxu0 %v5239_v3  ;;  %4475 = vmatprep.subr.bf16.mxu1 %v5244_v8 }
0x1507   :  { %4516 = vmatprep.subr.bf16.mxu0 %v5247_v7 }
0x1509   :  { %4476 = vmatpush2.bf16.msra.mxu1 %v5242_v17 }
0x150a   :  { %4517 = vmatpush2.bf16.msra.mxu0 %v5245_v40  ;;  %4477 = vmatprep.subr.bf16.mxu1 %v5250_v10 }
0x150b   :  { %4518 = vmatprep.subr.bf16.mxu0 %v5253_v19 }
0x150d   :  { %4478 = vmatpush2.bf16.msra.mxu1 %v5248_v11 }
0x150e   :  { %4519 = vmatpush2.bf16.msra.mxu0 %v5251_v32  ;;  %4479 = vmatprep.subr.bf16.mxu1 %v5256_v0 }
0x150f   :  { %4520 = vmatprep.subr.bf16.mxu0 %v5259_v12 }
0x1511   :  { %4480 = vmatpush2.bf16.msra.mxu1 %v5254_v13 }
0x1512   :  { %4521 = vmatpush2.bf16.msra.mxu0 %v5257_v21  ;;  %4481 = vmatprep.subr.bf16.mxu1 %v5262_v5 }
0x1513   :  { %4522 = vmatprep.subr.bf16.mxu0 %v5265_v22 }
0x1515   :  { %4482 = vmatpush2.bf16.msra.mxu1 %v5260_v23 }
0x1516   :  { %4523 = vmatpush2.bf16.msra.mxu0 %v5263_v61  ;;  %4483 = vmatprep.subr.bf16.mxu1 %v5268_v29 }
0x1517   :  { %4524 = vmatprep.subr.bf16.mxu0 %v5271_v9 }
0x1519   :  { %4484 = vmatpush2.bf16.msra.mxu1 %v5266_v42 }
0x151a   :  { %4525 = vmatpush2.bf16.msra.mxu0 %v5269_v44  ;;  %4485 = vmatprep.subr.bf16.mxu1 %v5274_v60 }
0x151b   :  { %4526 = vmatprep.subr.bf16.mxu0 %v5277_v43 }
0x151d   :  { %4486 = vmatpush2.bf16.msra.mxu1 %v5272_v56 }
0x151e   :  { %4527 = vmatpush2.bf16.msra.mxu0 %v5275_v57  ;;  %4487 = vmatprep.subr.bf16.mxu1 %v5280_v31 }
0x151f   :  { %4528 = vmatprep.subr.bf16.mxu0 %v5283_v25 }
0x1521   :  { %4488 = vmatpush2.bf16.msra.mxu1 %v5278_v26 }
0x1522   :  { %4529 = vmatpush2.bf16.msra.mxu0 %v5281_v58 }
0x1524   :  { %4490 = vmatmul.mubr.bf16.vlgmr.msra.gmra.mxu1 %v3591_v14 }
0x1525   :  { %4531 = vmatmul.mubr.bf16.vlgmr.msra.gmra.mxu0 %v3593_v16 }
0x15a4   :  { %v4409_v27 = vpop.f32.mrf.mxu1 }
0x15a5   :  { %v4450_v28 = vpop.f32.mrf.mxu0  ;;  %v4410_v15 = vadd.f32 %v4409_v27, %v3728_v20 }
0x15a6   :  { %v4411_v1 = vpop.f32.mrf.mxu1 }
0x15a7   :  { %v4452_v36 = vpop.f32.mrf.mxu0  ;;  %v4412_v48 = vadd.f32 %v4411_v1, %v3732_v45  ;;  %v4451_v49 = vadd.f32 %v4450_v28, %v4410_v15 }
0x15a8   :  { %v4413_v18 = vpop.f32.mrf.mxu1 }
0x15a9   :  { %v4454_v35 = vpop.f32.mrf.mxu0  ;;  %v4453_v47 = vadd.f32 %v4452_v36, %v4412_v48 }
0x15aa   :  { %v4414_v37 = vpop.f32.mrf.mxu1 }
0x15ab   :  { %v4455_v62 = vpop.f32.mrf.mxu0 }
0x15e4   :  { %v4491_v46 = vpop.f32.mrf.mxu1 }
0x15e5   :  { %v4492_v50 = vadd.f32 %v4491_v46, %v4451_v49  ;;  %v4532_v51 = vpop.f32.mrf.mxu0 }
0x15e6   :  { %v4493_v34 = vpop.f32.mrf.mxu1 }
0x15e7   :  { %v4533_v52 = vadd.f32 %v4532_v51, %v4492_v50  ;;  %v4494_v6 = vadd.f32 %v4493_v34, %v4453_v47  ;;  %v4534_v53 = vpop.f32.mrf.mxu0 }
0x15e8   :  { %v4495_v54 = vpop.f32.mrf.mxu1 }
0x15e9   :  { %4539 = vst [vmem:[%s6197_s11] sm:$0xff] %v4533_v52  ;;  %v4535_v63 = vadd.f32 %v4534_v53, %v4494_v6  ;;  %v4536_v55 = vpop.f32.mrf.mxu0 }
0x15ea   :  { %v4496_v24 = vpop.f32.mrf.mxu1 }
0x15eb   :  { %4540 = vst [vmem:[%s6197_s11 + $0x8] sm:$0xff] %v4535_v63  ;;  %v4537_v41 = vpop.f32.mrf.mxu0 }
0x15ec   :  { %4545 = vsyncmov [#allocation4] }
0x15ef   :  { %s4546_s3 = vpop.sfrf %4545 }
0x15f0   :  { %p4885_p10 = scmp.ne.s32.totalorder %s4546_s3, 0 }
0x15f2   :  { %4550 = shalt.err (%p4885_p10)  }
0x15f3   :  { %4552 = vsyncmov [#allocation4 + $0x1] }
0x15f6   :  { %s4553_s26 = vpop.sfrf %4552 }
0x15f7   :  { %p4886_p11 = scmp.ne.s32.totalorder %s4553_s26, 0 }
0x15f9   :  { %4557 = shalt.err (%p4886_p11)  }

</bundles_post_ra>
